<compile_context>
chip_gen: v6e
topology: v6e:2x2x1
jax: 0.10.0
libtpu: 0.0.40
codegen_flags: <defaults>
</compile_context>

<pallas_src>
import functools

import jax
import jax.numpy as jnp
from jax.experimental import pallas as pl
from jax.experimental.pallas import tpu as pltpu


VMEM_LIMIT_BYTES = 32 * 1024 * 1024   # safe scoped-VMEM ceiling on v5e/v6e/v7x
LN_ROW_TILE = 512                     # mem-bound kernels: ~85% HBM roofline at 512 rows
MLP_ROW_TILE = 256                    # conservative for v7x (64 MiB physical VMEM, hidden=4D)
EPS = 1e-6                            # matches partial(nn.LayerNorm, eps=1e-06) in the reference


def _cparams(n_axes=1):
    return pltpu.CompilerParams(
        dimension_semantics=("parallel",) * n_axes,
        vmem_limit_bytes=VMEM_LIMIT_BYTES,
    )


def _row_tile(m, want):
    """Largest row tile <= `want` that divides m and keeps (8,128) block legality."""
    if m <= want or m % 8 != 0:
        return m
    t = min(want, m)
    t -= t % 8
    while t >= 8:
        if m % t == 0:
            return t
        t -= 8
    return m


# ----------------------------------------------------------------------------
# Pallas kernels
# ----------------------------------------------------------------------------

def _patch_embed_kernel(x_ref, w_ref, b_ref, pos_ref, o_ref):
    # one (b,t) frame: patches [P, CPP] (bf16) @ W [CPP, D] (bf16) + bias + pos_embed
    y = jnp.dot(x_ref[0], w_ref[...], preferred_element_type=jnp.float32)
    o_ref[0] = y + b_ref[...] + pos_ref[...]


def patch_embed(patches_bf16, w_pe_bf16, bias_1d, pos_pd):
    BT, P, CPP = patches_bf16.shape
    D = w_pe_bf16.shape[1]
    flops = 2 * BT * P * CPP * D
    bytes_acc = (patches_bf16.size + w_pe_bf16.size) * 2 + (BT * P * D + P * D + D) * 4
    return pl.pallas_call(
        _patch_embed_kernel,
        grid=(BT,),
        in_specs=[
            pl.BlockSpec((1, P, CPP), lambda b: (b, 0, 0)),
            pl.BlockSpec((CPP, D), lambda b: (0, 0)),   # weight resident in VMEM
            pl.BlockSpec((1, D), lambda b: (0, 0)),
            pl.BlockSpec((P, D), lambda b: (0, 0)),     # pos_embed resident (never tiled over BT)
        ],
        out_specs=pl.BlockSpec((1, P, D), lambda b: (b, 0, 0)),
        out_shape=jax.ShapeDtypeStruct((BT, P, D), jnp.float32),
        compiler_params=_cparams(1),
        cost_estimate=pl.CostEstimate(flops=flops, transcendentals=0,
                                      bytes_accessed=bytes_acc),
    )(patches_bf16, w_pe_bf16, bias_1d, pos_pd)


def _layernorm_kernel(x_ref, g_ref, b_ref, o_ref):
    x = x_ref[...]
    mu = jnp.mean(x, axis=-1, keepdims=True)
    var = jnp.mean((x - mu) ** 2, axis=-1, keepdims=True)
    o_ref[...] = (x - mu) * jax.lax.rsqrt(var + EPS) * g_ref[...] + b_ref[...]


def layernorm(x, g, b):
    M, D = x.shape
    tm = _row_tile(M, LN_ROW_TILE)
    return pl.pallas_call(
        _layernorm_kernel,
        grid=(M // tm,),
        in_specs=[
            pl.BlockSpec((tm, D), lambda i: (i, 0)),
            pl.BlockSpec((1, D), lambda i: (0, 0)),
            pl.BlockSpec((1, D), lambda i: (0, 0)),
        ],
        out_specs=pl.BlockSpec((tm, D), lambda i: (i, 0)),
        out_shape=jax.ShapeDtypeStruct((M, D), jnp.float32),
        compiler_params=_cparams(1),
    )(x, g.reshape(1, D), b.reshape(1, D))


def _cmul_kernel(xr_ref, xi_ref, wr_ref, wi_ref, yr_ref, yi_ref):
    xr, xi = xr_ref[0], xi_ref[0]
    wr, wi = wr_ref[...], wi_ref[...]
    yr_ref[0] = xr * wr - xi * wi
    yi_ref[0] = xr * wi + xi * wr


def complex_multiply(xr, xi, wr, wi):
    # xr/xi: [BT, S, D]; wr/wi: [S, D] (passed ONCE, resident across the BT grid)
    BT, S, D = xr.shape
    shp = jax.ShapeDtypeStruct((BT, S, D), jnp.float32)
    x_spec = pl.BlockSpec((1, S, D), lambda b: (b, 0, 0))
    w_spec = pl.BlockSpec((S, D), lambda b: (0, 0))
    return pl.pallas_call(
        _cmul_kernel,
        grid=(BT,),
        in_specs=[x_spec, x_spec, w_spec, w_spec],
        out_specs=(x_spec, x_spec),
        out_shape=(shp, shp),
        compiler_params=_cparams(1),
    )(xr, xi, wr, wi)


def _mlp_block_kernel(y_ref, res_ref, g_ref, be_ref, w1_ref, b1_ref, w2_ref, b2_ref, o_ref):
    # LayerNorm(norm2) -> Linear -> GELU(tanh) -> Linear -> + residual  (fused)
    y = y_ref[...]
    mu = jnp.mean(y, axis=-1, keepdims=True)
    var = jnp.mean((y - mu) ** 2, axis=-1, keepdims=True)
    yn = (y - mu) * jax.lax.rsqrt(var + EPS) * g_ref[...] + be_ref[...]
    h = jnp.dot(yn.astype(jnp.bfloat16), w1_ref[...],
                preferred_element_type=jnp.float32) + b1_ref[...]
    h = jax.nn.gelu(h, approximate=True)          # tanh form -> EUP slot, frees VALU
    out = jnp.dot(h.astype(jnp.bfloat16), w2_ref[...],
                  preferred_element_type=jnp.float32) + b2_ref[...]
    o_ref[...] = res_ref[...] + out


def mlp_block(y_filtered, residual, g, be, w1_bf16, b1, w2_bf16, b2):
    M, D = residual.shape
    hidden = w1_bf16.shape[1]
    tm = _row_tile(M, MLP_ROW_TILE)
    flops = 4 * M * D * hidden
    bytes_acc = 4 * (3 * M * D) + 2 * (2 * D * hidden) + 4 * (hidden + 3 * D)
    return pl.pallas_call(
        _mlp_block_kernel,
        grid=(M // tm,),
        in_specs=[
            pl.BlockSpec((tm, D), lambda i: (i, 0)),
            pl.BlockSpec((tm, D), lambda i: (i, 0)),
            pl.BlockSpec((1, D), lambda i: (0, 0)),
            pl.BlockSpec((1, D), lambda i: (0, 0)),
            pl.BlockSpec((D, hidden), lambda i: (0, 0)),
            pl.BlockSpec((1, hidden), lambda i: (0, 0)),
            pl.BlockSpec((hidden, D), lambda i: (0, 0)),
            pl.BlockSpec((1, D), lambda i: (0, 0)),
        ],
        out_specs=pl.BlockSpec((tm, D), lambda i: (i, 0)),
        out_shape=jax.ShapeDtypeStruct((M, D), jnp.float32),
        compiler_params=_cparams(1),
        cost_estimate=pl.CostEstimate(flops=flops, transcendentals=M * hidden,
                                      bytes_accessed=bytes_acc),
    )(y_filtered, residual, g.reshape(1, D), be.reshape(1, D),
      w1_bf16, b1.reshape(1, hidden), w2_bf16, b2.reshape(1, D))


def _ln_linproj_kernel(x_ref, g_ref, be_ref, w1_ref, b1_ref, w2_ref, b2_ref,
                       w3_ref, b3_ref, o_ref):
    # final LayerNorm + the three stride==kernel ConvTranspose2d stages, fused.
    # Stage-2/3 weights are block-diagonal so everything stays a plain lane-dense
    # [rows, N] matmul chain with no in-kernel reshapes.
    x = x_ref[...]
    mu = jnp.mean(x, axis=-1, keepdims=True)
    var = jnp.mean((x - mu) ** 2, axis=-1, keepdims=True)
    xn = (x - mu) * jax.lax.rsqrt(var + EPS) * g_ref[...] + be_ref[...]
    y1 = jnp.tanh(jnp.dot(xn.astype(jnp.bfloat16), w1_ref[...],
                          preferred_element_type=jnp.float32) + b1_ref[...])
    y2 = jnp.tanh(jnp.dot(y1.astype(jnp.bfloat16), w2_ref[...],
                          preferred_element_type=jnp.float32) + b2_ref[...])
    o_ref[...] = jnp.dot(y2.astype(jnp.bfloat16), w3_ref[...],
                         preferred_element_type=jnp.float32) + b3_ref[...]


def ln_linproj(tokens, g, be, w1, b1, w2, b2, w3, b3):
    M, D = tokens.shape
    n1, n2, n3 = w1.shape[1], w2.shape[1], w3.shape[1]
    tm = _row_tile(M, MLP_ROW_TILE)
    flops = 2 * M * (D * n1 + n1 * n2 + n2 * n3)
    bytes_acc = 4 * (M * D + M * n3) + 2 * (D * n1 + n1 * n2 + n2 * n3)
    return pl.pallas_call(
        _ln_linproj_kernel,
        grid=(M // tm,),
        in_specs=[
            pl.BlockSpec((tm, D), lambda i: (i, 0)),
            pl.BlockSpec((1, D), lambda i: (0, 0)),
            pl.BlockSpec((1, D), lambda i: (0, 0)),
            pl.BlockSpec((D, n1), lambda i: (0, 0)),
            pl.BlockSpec((1, n1), lambda i: (0, 0)),
            pl.BlockSpec((n1, n2), lambda i: (0, 0)),
            pl.BlockSpec((1, n2), lambda i: (0, 0)),
            pl.BlockSpec((n2, n3), lambda i: (0, 0)),
            pl.BlockSpec((1, n3), lambda i: (0, 0)),
        ],
        out_specs=pl.BlockSpec((tm, n3), lambda i: (i, 0)),
        out_shape=jax.ShapeDtypeStruct((M, n3), jnp.float32),
        compiler_params=_cparams(1),
        cost_estimate=pl.CostEstimate(flops=flops, transcendentals=2 * M * n1,
                                      bytes_accessed=bytes_acc),
    )(tokens, g.reshape(1, D), be.reshape(1, D),
      w1, b1.reshape(1, n1), w2, b2.reshape(1, n2), w3, b3.reshape(1, n3))


# ----------------------------------------------------------------------------
# Model pieces (glue in JAX, compute in the kernels above)
# ----------------------------------------------------------------------------

def fourier_block(tokens, blk, BT, h, w, wf, D):
    x = tokens                                           # [BT*P, D] f32 residual
    y = layernorm(x, blk["n1_g"], blk["n1_b"])           # norm1 (Pallas, f32 stats)

    # GlobalFilter: FFT in JAX, spectral multiply in Pallas (weights NOT broadcast).
    # TODO(synk): rfft2 / irfft2 have no Pallas TPU equivalent; they stay in plain JAX.
    yf = jnp.fft.rfft2(y.reshape(BT, h, w, D), axes=(1, 2), norm="ortho")
    xr = jnp.real(yf).reshape(BT, h * wf, D).astype(jnp.float32)
    xi = jnp.imag(yf).reshape(BT, h * wf, D).astype(jnp.float32)
    wr = blk["cw"][..., 0].reshape(h * wf, D)
    wi = blk["cw"][..., 1].reshape(h * wf, D)
    yr, yi = complex_multiply(xr, xi, wr, wi)
    yf2 = jax.lax.complex(yr, yi).reshape(BT, h, wf, D)
    y_filt = jnp.fft.irfft2(yf2, s=(h, w), axes=(1, 2), norm="ortho")
    y_filt = y_filt.reshape(BT * h * w, D).astype(jnp.float32)

    # norm2 + MLP + residual fused in one Pallas kernel
    return mlp_block(y_filt, x, blk["n2_g"], blk["n2_b"],
                     blk["w1"], blk["b1"], blk["w2"], blk["b2"])


def fpg_forward(x, params, cfg):
    B, T, C, H, W = x.shape
    p, D, oc = cfg["patch"], cfg["embed"], cfg["out_c"]
    h, w = H // p, W // p
    P = h * w
    BT = B * T
    CPP = C * p * p

    # ---- one-time weight prep (constant-folded under jit) ----
    w_pe = params["patch_w"].reshape(D, CPP).T.astype(jnp.bfloat16)
    pos = params["pos_embed"].reshape(P, D)
    blocks = [dict(blk,
                   w1=blk["w1"].astype(jnp.bfloat16),
                   w2=blk["w2"].astype(jnp.bfloat16))
              for blk in params["blocks"]]

    # ConvTranspose2d (stride==kernel) weights as matmul mats; stages 2/3 are made
    # block-diagonal so the fused kernel avoids in-kernel reshapes; outputs are
    # lane-dense multiples of 128.
    C1, C2, C3 = oc * 16, oc * 4, oc
    lw1 = params["tc1_w"].transpose(0, 2, 3, 1).reshape(D, 4 * C1).astype(jnp.bfloat16)
    lw2 = jnp.kron(jnp.eye(4, dtype=jnp.float32),
                   params["tc2_w"].transpose(0, 2, 3, 1).reshape(C1, 4 * C2)
                   ).astype(jnp.bfloat16)
    lw3 = jnp.kron(jnp.eye(16, dtype=jnp.float32),
                   params["tc3_w"].transpose(0, 2, 3, 1).reshape(C2, 16 * C3)
                   ).astype(jnp.bfloat16)
    lb1 = jnp.tile(params["tc1_b"], 4)
    lb2 = jnp.tile(params["tc2_b"], 16)
    lb3 = jnp.tile(params["tc3_b"], 256)

    # ---- patch_embed (Conv2d k=p s=p as matmul) + bias + pos_embed, fused ----
    xb = x.reshape(BT, C, H, W)
    patches = (xb.reshape(BT, C, h, p, w, p)
                 .transpose(0, 2, 4, 1, 3, 5)
                 .reshape(BT, P, CPP)
                 .astype(jnp.bfloat16))
    tokens = patch_embed(patches, w_pe, params["patch_b"].reshape(1, D), pos)
    tokens = tokens.reshape(BT * P, D)
    # pos_drop is identity (drop_rate = 0)

    # ---- Fourier blocks ----
    wf = w // 2 + 1
    for blk in blocks:
        tokens = fourier_block(tokens, blk, BT, h, w, wf, D)

    # ---- final norm + final_dropout(identity) + linearprojection, fused ----
    y = ln_linproj(tokens, params["norm_g"], params["norm_b"],
                   lw1, lb1, lw2, lb2, lw3, lb3)         # [BT*P, 256*C3]

    # single pixel-unshuffle at the very end:
    # columns are laid out as (di1,dj1, di2,dj2, di3,dj3, cout)
    y = y.reshape(BT, h, w, 2, 2, 2, 2, 4, 4, C3)
    y = y.transpose(0, 9, 1, 3, 5, 7, 2, 4, 6, 8)        # [BT,C3,i,di1,di2,di3,j,dj1,dj2,dj3]
    y = y.reshape(BT, C3, h * 16, w * 16)
    return y.reshape(B, T, C3, h * 16, w * 16)


# ----------------------------------------------------------------------------
# Deterministic parameter initialization (synthetic; mirrors module shapes)
# ----------------------------------------------------------------------------

def init_params(key, cfg):
    C, p, D = cfg["in_c"], cfg["patch"], cfg["embed"]
    oc, depth = cfg["out_c"], cfg["depth"]
    h, w = cfg["h"], cfg["w"]
    wf = w // 2 + 1
    hidden = int(D * cfg["mlp_ratio"])
    keys = jax.random.split(key, 8 + depth)

    params = {
        "patch_w": jax.random.normal(keys[0], (D, C, p, p), jnp.float32) * 0.02,
        "patch_b": jnp.zeros((D,), jnp.float32),
        "pos_embed": jax.random.normal(keys[1], (1, h * w, D), jnp.float32) * 0.02,
        "norm_g": jnp.ones((D,), jnp.float32),
        "norm_b": jnp.zeros((D,), jnp.float32),
        "tc1_w": jax.random.normal(keys[2], (D, oc * 16, 2, 2), jnp.float32) * 0.02,
        "tc1_b": jnp.zeros((oc * 16,), jnp.float32),
        "tc2_w": jax.random.normal(keys[3], (oc * 16, oc * 4, 2, 2), jnp.float32) * 0.02,
        "tc2_b": jnp.zeros((oc * 4,), jnp.float32),
        "tc3_w": jax.random.normal(keys[4], (oc * 4, oc, 4, 4), jnp.float32) * 0.02,
        "tc3_b": jnp.zeros((oc,), jnp.float32),
    }
    blocks = []
    for i in range(depth):
        bk = jax.random.split(keys[5 + i], 4)
        blocks.append({
            "n1_g": jnp.ones((D,), jnp.float32), "n1_b": jnp.zeros((D,), jnp.float32),
            "cw": jax.random.normal(bk[0], (h, wf, D, 2), jnp.float32) * 0.02,
            "n2_g": jnp.ones((D,), jnp.float32), "n2_b": jnp.zeros((D,), jnp.float32),
            "w1": jax.random.normal(bk[1], (D, hidden), jnp.float32) * 0.02,
            "b1": jnp.zeros((hidden,), jnp.float32),
            "w2": jax.random.normal(bk[2], (hidden, D), jnp.float32) * 0.02,
            "b2": jnp.zeros((D,), jnp.float32),
        })
    params["blocks"] = blocks
    return params


# ----------------------------------------------------------------------------

if __name__ == "__main__":
    cfg = dict(img=32, patch=16, in_c=4, out_c=4, embed=128, depth=2, mlp_ratio=4.0)
    cfg["h"] = cfg["w"] = cfg["img"] // cfg["patch"]   # 2x2 patch grid

    key = jax.random.PRNGKey(0)
    kx, kp = jax.random.split(key)

    B, T = 2, 2
    x = jax.random.normal(kx, (B, T, cfg["in_c"], cfg["img"], cfg["img"]), jnp.float32)
    params = init_params(kp, cfg)

    fwd = jax.jit(functools.partial(fpg_forward, cfg=cfg))
    out = fwd(x, params)
    out = jax.block_until_ready(out)

    assert out.shape == x.shape, (out.shape, x.shape)
    assert bool(jnp.all(jnp.isfinite(out)))
    print("KERNEL_OK")
</pallas_src>

<mosaic_0001>
module attributes {stable_mosaic.version = 11 : i64} {
  func.func @_patch_embed_kernel(%arg0: i32, %arg1: memref<1x4x1024xbf16, #tpu.memory_space<vmem>>, %arg2: memref<1024x128xbf16, #tpu.memory_space<vmem>>, %arg3: memref<1x128xf32, #tpu.memory_space<vmem>>, %arg4: memref<4x128xf32, #tpu.memory_space<vmem>>, %arg5: memref<1x4x128xf32, #tpu.memory_space<vmem>>) attributes {dimension_semantics = [#tpu.dimension_semantics<parallel>], iteration_bounds = array<i64: 4>, scalar_prefetch = 0 : i64, scratch_operands = 0 : i64, tpu.core_type = #tpu.core_type<tc>, window_params = [{transform_indices = @transform_0, window_bounds = array<i64: 1, 4, 1024>}, {pipeline_mode = #tpu.pipeline_mode<synchronous>, transform_indices = @transform_1, window_bounds = array<i64: 1024, 128>}, {pipeline_mode = #tpu.pipeline_mode<synchronous>, transform_indices = @transform_2, window_bounds = array<i64: 1, 128>}, {pipeline_mode = #tpu.pipeline_mode<synchronous>, transform_indices = @transform_3, window_bounds = array<i64: 4, 128>}, {transform_indices = @transform_4, window_bounds = array<i64: 1, 4, 128>}]} {
    %c0 = arith.constant 0 : index
    %c0_0 = arith.constant 0 : index
    %c0_1 = arith.constant 0 : index
    %0 = vector.load %arg1[%c0, %c0_0, %c0_1] : memref<1x4x1024xbf16, #tpu.memory_space<vmem>>, vector<1x4x1024xbf16>
    %1 = vector.shape_cast %0 : vector<1x4x1024xbf16> to vector<4x1024xbf16>
    %c0_2 = arith.constant 0 : index
    %c0_3 = arith.constant 0 : index
    %2 = vector.load %arg2[%c0_2, %c0_3] : memref<1024x128xbf16, #tpu.memory_space<vmem>>, vector<1024x128xbf16>
    %cst = arith.constant dense<0.000000e+00> : vector<4x128xf32>
    %3 = tpu.matmul %1, %2, %cst {dimension_numbers = #tpu.dot_dimension_numbers<[1], [0], [0], [1], [0, 0, 1, 1], [], []>} : vector<4x1024xbf16>, vector<1024x128xbf16>, vector<4x128xf32> -> vector<4x128xf32>
    %c0_4 = arith.constant 0 : index
    %c0_5 = arith.constant 0 : index
    %4 = vector.load %arg3[%c0_4, %c0_5] : memref<1x128xf32, #tpu.memory_space<vmem>>, vector<1x128xf32>
    %5 = vector.broadcast %4 : vector<1x128xf32> to vector<4x128xf32>
    %6 = arith.addf %3, %5 : vector<4x128xf32>
    %c0_6 = arith.constant 0 : index
    %c0_7 = arith.constant 0 : index
    %7 = vector.load %arg4[%c0_6, %c0_7] : memref<4x128xf32, #tpu.memory_space<vmem>>, vector<4x128xf32>
    %8 = arith.addf %6, %7 : vector<4x128xf32>
    %c0_8 = arith.constant 0 : index
    %c0_9 = arith.constant 0 : index
    %c0_10 = arith.constant 0 : index
    %9 = vector.load %arg5[%c0_8, %c0_9, %c0_10] : memref<1x4x128xf32, #tpu.memory_space<vmem>>, vector<1x4x128xf32>
    %10 = vector.shape_cast %9 : vector<1x4x128xf32> to vector<4x128xf32>
    %11 = vector.shape_cast %8 : vector<4x128xf32> to vector<1x4x128xf32>
    tpu.vector_store %arg5[%c0_8, %c0_9, %c0_10], %11 {strides = array<i32>} : memref<1x4x128xf32, #tpu.memory_space<vmem>>, vector<1x4x128xf32>,
    return
  }
  func.func @transform_0(%arg0: i32) -> (i32, i32, i32) {
    %c0_i32 = arith.constant 0 : i32
    %c0_i32_0 = arith.constant 0 : i32
    %c0_i32_1 = arith.constant 0 : i32
    return %arg0, %c0_i32, %c0_i32_0 : i32, i32, i32
  }
  func.func @transform_1(%arg0: i32) -> (i32, i32) {
    %c0_i32 = arith.constant 0 : i32
    %c0_i32_0 = arith.constant 0 : i32
    %c0_i32_1 = arith.constant 0 : i32
    return %c0_i32, %c0_i32_0 : i32, i32
  }
  func.func @transform_2(%arg0: i32) -> (i32, i32) {
    %c0_i32 = arith.constant 0 : i32
    %c0_i32_0 = arith.constant 0 : i32
    %c0_i32_1 = arith.constant 0 : i32
    return %c0_i32, %c0_i32_0 : i32, i32
  }
  func.func @transform_3(%arg0: i32) -> (i32, i32) {
    %c0_i32 = arith.constant 0 : i32
    %c0_i32_0 = arith.constant 0 : i32
    %c0_i32_1 = arith.constant 0 : i32
    return %c0_i32, %c0_i32_0 : i32, i32
  }
  func.func @transform_4(%arg0: i32) -> (i32, i32, i32) {
    %c0_i32 = arith.constant 0 : i32
    %c0_i32_0 = arith.constant 0 : i32
    %c0_i32_1 = arith.constant 0 : i32
    return %arg0, %c0_i32, %c0_i32_0 : i32, i32, i32
  }
}

module attributes {stable_mosaic.version = 11 : i64} {
  func.func @_layernorm_kernel(%arg0: i32, %arg1: memref<16x128xf32, #tpu.memory_space<vmem>>, %arg2: memref<1x128xf32, #tpu.memory_space<vmem>>, %arg3: memref<1x128xf32, #tpu.memory_space<vmem>>, %arg4: memref<16x128xf32, #tpu.memory_space<vmem>>) attributes {dimension_semantics = [#tpu.dimension_semantics<parallel>], iteration_bounds = array<i64: 1>, scalar_prefetch = 0 : i64, scratch_operands = 0 : i64, tpu.core_type = #tpu.core_type<tc>, window_params = [{transform_indices = @transform_0, window_bounds = array<i64: 16, 128>}, {pipeline_mode = #tpu.pipeline_mode<synchronous>, transform_indices = @transform_1, window_bounds = array<i64: 1, 128>}, {pipeline_mode = #tpu.pipeline_mode<synchronous>, transform_indices = @transform_2, window_bounds = array<i64: 1, 128>}, {transform_indices = @transform_3, window_bounds = array<i64: 16, 128>}]} {
    %c0 = arith.constant 0 : index
    %c0_0 = arith.constant 0 : index
    %0 = vector.load %arg1[%c0, %c0_0] : memref<16x128xf32, #tpu.memory_space<vmem>>, vector<16x128xf32>
    %cst = arith.constant dense<0.000000e+00> : vector<16xf32>
    %1 = vector.multi_reduction <add>, %0, %cst [1] : vector<16x128xf32> to vector<16xf32>
    %2 = vector.shape_cast %1 : vector<16xf32> to vector<16x1xf32>
    %cst_1 = arith.constant 1.280000e+02 : f32
    %3 = vector.broadcast %cst_1 : f32 to vector<16x1xf32>
    %4 = arith.divf %2, %3 : vector<16x1xf32>
    %5 = vector.broadcast %4 : vector<16x1xf32> to vector<16x128xf32>
    %6 = arith.subf %0, %5 : vector<16x128xf32>
    %7 = arith.mulf %6, %6 : vector<16x128xf32>
    %cst_2 = arith.constant dense<0.000000e+00> : vector<16xf32>
    %8 = vector.multi_reduction <add>, %7, %cst_2 [1] : vector<16x128xf32> to vector<16xf32>
    %9 = vector.shape_cast %8 : vector<16xf32> to vector<16x1xf32>
    %cst_3 = arith.constant 1.280000e+02 : f32
    %10 = vector.broadcast %cst_3 : f32 to vector<16x1xf32>
    %11 = arith.divf %9, %10 : vector<16x1xf32>
    %12 = vector.broadcast %4 : vector<16x1xf32> to vector<16x128xf32>
    %13 = arith.subf %0, %12 : vector<16x128xf32>
    %cst_4 = arith.constant 9.99999997E-7 : f32
    %14 = vector.broadcast %cst_4 : f32 to vector<16x1xf32>
    %15 = arith.addf %11, %14 : vector<16x1xf32>
    %16 = math.rsqrt %15 : vector<16x1xf32>
    %17 = vector.broadcast %16 : vector<16x1xf32> to vector<16x128xf32>
    %18 = arith.mulf %13, %17 : vector<16x128xf32>
    %c0_5 = arith.constant 0 : index
    %c0_6 = arith.constant 0 : index
    %19 = vector.load %arg2[%c0_5, %c0_6] : memref<1x128xf32, #tpu.memory_space<vmem>>, vector<1x128xf32>
    %20 = vector.broadcast %19 : vector<1x128xf32> to vector<16x128xf32>
    %21 = arith.mulf %18, %20 : vector<16x128xf32>
    %c0_7 = arith.constant 0 : index
    %c0_8 = arith.constant 0 : index
    %22 = vector.load %arg3[%c0_7, %c0_8] : memref<1x128xf32, #tpu.memory_space<vmem>>, vector<1x128xf32>
    %23 = vector.broadcast %22 : vector<1x128xf32> to vector<16x128xf32>
    %24 = arith.addf %21, %23 : vector<16x128xf32>
    %c0_9 = arith.constant 0 : index
    %c0_10 = arith.constant 0 : index
    %25 = vector.load %arg4[%c0_9, %c0_10] : memref<16x128xf32, #tpu.memory_space<vmem>>, vector<16x128xf32>
    tpu.vector_store %arg4[%c0_9, %c0_10], %24 {strides = array<i32>} : memref<16x128xf32, #tpu.memory_space<vmem>>, vector<16x128xf32>,
    return
  }
  func.func @transform_0(%arg0: i32) -> (i32, i32) {
    %c0_i32 = arith.constant 0 : i32
    %c0_i32_0 = arith.constant 0 : i32
    return %arg0, %c0_i32 : i32, i32
  }
  func.func @transform_1(%arg0: i32) -> (i32, i32) {
    %c0_i32 = arith.constant 0 : i32
    %c0_i32_0 = arith.constant 0 : i32
    %c0_i32_1 = arith.constant 0 : i32
    return %c0_i32, %c0_i32_0 : i32, i32
  }
  func.func @transform_2(%arg0: i32) -> (i32, i32) {
    %c0_i32 = arith.constant 0 : i32
    %c0_i32_0 = arith.constant 0 : i32
    %c0_i32_1 = arith.constant 0 : i32
    return %c0_i32, %c0_i32_0 : i32, i32
  }
  func.func @transform_3(%arg0: i32) -> (i32, i32) {
    %c0_i32 = arith.constant 0 : i32
    %c0_i32_0 = arith.constant 0 : i32
    return %arg0, %c0_i32 : i32, i32
  }
}

module attributes {stable_mosaic.version = 11 : i64} {
  func.func @_cmul_kernel(%arg0: i32, %arg1: memref<1x4x128xf32, #tpu.memory_space<vmem>>, %arg2: memref<1x4x128xf32, #tpu.memory_space<vmem>>, %arg3: memref<4x128xf32, #tpu.memory_space<vmem>>, %arg4: memref<4x128xf32, #tpu.memory_space<vmem>>, %arg5: memref<1x4x128xf32, #tpu.memory_space<vmem>>, %arg6: memref<1x4x128xf32, #tpu.memory_space<vmem>>) attributes {dimension_semantics = [#tpu.dimension_semantics<parallel>], iteration_bounds = array<i64: 4>, scalar_prefetch = 0 : i64, scratch_operands = 0 : i64, tpu.core_type = #tpu.core_type<tc>, window_params = [{transform_indices = @transform_0, window_bounds = array<i64: 1, 4, 128>}, {transform_indices = @transform_1, window_bounds = array<i64: 1, 4, 128>}, {pipeline_mode = #tpu.pipeline_mode<synchronous>, transform_indices = @transform_2, window_bounds = array<i64: 4, 128>}, {pipeline_mode = #tpu.pipeline_mode<synchronous>, transform_indices = @transform_3, window_bounds = array<i64: 4, 128>}, {transform_indices = @transform_4, window_bounds = array<i64: 1, 4, 128>}, {transform_indices = @transform_5, window_bounds = array<i64: 1, 4, 128>}]} {
    %c0 = arith.constant 0 : index
    %c0_0 = arith.constant 0 : index
    %c0_1 = arith.constant 0 : index
    %0 = vector.load %arg1[%c0, %c0_0, %c0_1] : memref<1x4x128xf32, #tpu.memory_space<vmem>>, vector<1x4x128xf32>
    %1 = vector.shape_cast %0 : vector<1x4x128xf32> to vector<4x128xf32>
    %c0_2 = arith.constant 0 : index
    %c0_3 = arith.constant 0 : index
    %c0_4 = arith.constant 0 : index
    %2 = vector.load %arg2[%c0_2, %c0_3, %c0_4] : memref<1x4x128xf32, #tpu.memory_space<vmem>>, vector<1x4x128xf32>
    %3 = vector.shape_cast %2 : vector<1x4x128xf32> to vector<4x128xf32>
    %c0_5 = arith.constant 0 : index
    %c0_6 = arith.constant 0 : index
    %4 = vector.load %arg3[%c0_5, %c0_6] : memref<4x128xf32, #tpu.memory_space<vmem>>, vector<4x128xf32>
    %c0_7 = arith.constant 0 : index
    %c0_8 = arith.constant 0 : index
    %5 = vector.load %arg4[%c0_7, %c0_8] : memref<4x128xf32, #tpu.memory_space<vmem>>, vector<4x128xf32>
    %6 = arith.mulf %1, %4 : vector<4x128xf32>
    %7 = arith.mulf %3, %5 : vector<4x128xf32>
    %8 = arith.subf %6, %7 : vector<4x128xf32>
    %c0_9 = arith.constant 0 : index
    %c0_10 = arith.constant 0 : index
    %c0_11 = arith.constant 0 : index
    %9 = vector.load %arg5[%c0_9, %c0_10, %c0_11] : memref<1x4x128xf32, #tpu.memory_space<vmem>>, vector<1x4x128xf32>
    %10 = vector.shape_cast %9 : vector<1x4x128xf32> to vector<4x128xf32>
    %11 = vector.shape_cast %8 : vector<4x128xf32> to vector<1x4x128xf32>
    tpu.vector_store %arg5[%c0_9, %c0_10, %c0_11], %11 {strides = array<i32>} : memref<1x4x128xf32, #tpu.memory_space<vmem>>, vector<1x4x128xf32>,
    %12 = arith.mulf %1, %5 : vector<4x128xf32>
    %13 = arith.mulf %3, %4 : vector<4x128xf32>
    %14 = arith.addf %12, %13 : vector<4x128xf32>
    %c0_12 = arith.constant 0 : index
    %c0_13 = arith.constant 0 : index
    %c0_14 = arith.constant 0 : index
    %15 = vector.load %arg6[%c0_12, %c0_13, %c0_14] : memref<1x4x128xf32, #tpu.memory_space<vmem>>, vector<1x4x128xf32>
    %16 = vector.shape_cast %15 : vector<1x4x128xf32> to vector<4x128xf32>
    %17 = vector.shape_cast %14 : vector<4x128xf32> to vector<1x4x128xf32>
    tpu.vector_store %arg6[%c0_12, %c0_13, %c0_14], %17 {strides = array<i32>} : memref<1x4x128xf32, #tpu.memory_space<vmem>>, vector<1x4x128xf32>,
    return
  }
  func.func @transform_0(%arg0: i32) -> (i32, i32, i32) {
    %c0_i32 = arith.constant 0 : i32
    %c0_i32_0 = arith.constant 0 : i32
    %c0_i32_1 = arith.constant 0 : i32
    return %arg0, %c0_i32, %c0_i32_0 : i32, i32, i32
  }
  func.func @transform_1(%arg0: i32) -> (i32, i32, i32) {
    %c0_i32 = arith.constant 0 : i32
    %c0_i32_0 = arith.constant 0 : i32
    %c0_i32_1 = arith.constant 0 : i32
    return %arg0, %c0_i32, %c0_i32_0 : i32, i32, i32
  }
  func.func @transform_2(%arg0: i32) -> (i32, i32) {
    %c0_i32 = arith.constant 0 : i32
    %c0_i32_0 = arith.constant 0 : i32
    %c0_i32_1 = arith.constant 0 : i32
    return %c0_i32, %c0_i32_0 : i32, i32
  }
  func.func @transform_3(%arg0: i32) -> (i32, i32) {
    %c0_i32 = arith.constant 0 : i32
    %c0_i32_0 = arith.constant 0 : i32
    %c0_i32_1 = arith.constant 0 : i32
    return %c0_i32, %c0_i32_0 : i32, i32
  }
  func.func @transform_4(%arg0: i32) -> (i32, i32, i32) {
    %c0_i32 = arith.constant 0 : i32
    %c0_i32_0 = arith.constant 0 : i32
    %c0_i32_1 = arith.constant 0 : i32
    return %arg0, %c0_i32, %c0_i32_0 : i32, i32, i32
  }
  func.func @transform_5(%arg0: i32) -> (i32, i32, i32) {
    %c0_i32 = arith.constant 0 : i32
    %c0_i32_0 = arith.constant 0 : i32
    %c0_i32_1 = arith.constant 0 : i32
    return %arg0, %c0_i32, %c0_i32_0 : i32, i32, i32
  }
}

module attributes {stable_mosaic.version = 11 : i64} {
  func.func @_mlp_block_kernel(%arg0: i32, %arg1: memref<16x128xf32, #tpu.memory_space<vmem>>, %arg2: memref<16x128xf32, #tpu.memory_space<vmem>>, %arg3: memref<1x128xf32, #tpu.memory_space<vmem>>, %arg4: memref<1x128xf32, #tpu.memory_space<vmem>>, %arg5: memref<128x512xbf16, #tpu.memory_space<vmem>>, %arg6: memref<1x512xf32, #tpu.memory_space<vmem>>, %arg7: memref<512x128xbf16, #tpu.memory_space<vmem>>, %arg8: memref<1x128xf32, #tpu.memory_space<vmem>>, %arg9: memref<16x128xf32, #tpu.memory_space<vmem>>) attributes {dimension_semantics = [#tpu.dimension_semantics<parallel>], iteration_bounds = array<i64: 1>, scalar_prefetch = 0 : i64, scratch_operands = 0 : i64, tpu.core_type = #tpu.core_type<tc>, window_params = [{transform_indices = @transform_0, window_bounds = array<i64: 16, 128>}, {transform_indices = @transform_1, window_bounds = array<i64: 16, 128>}, {pipeline_mode = #tpu.pipeline_mode<synchronous>, transform_indices = @transform_2, window_bounds = array<i64: 1, 128>}, {pipeline_mode = #tpu.pipeline_mode<synchronous>, transform_indices = @transform_3, window_bounds = array<i64: 1, 128>}, {pipeline_mode = #tpu.pipeline_mode<synchronous>, transform_indices = @transform_4, window_bounds = array<i64: 128, 512>}, {pipeline_mode = #tpu.pipeline_mode<synchronous>, transform_indices = @transform_5, window_bounds = array<i64: 1, 512>}, {pipeline_mode = #tpu.pipeline_mode<synchronous>, transform_indices = @transform_6, window_bounds = array<i64: 512, 128>}, {pipeline_mode = #tpu.pipeline_mode<synchronous>, transform_indices = @transform_7, window_bounds = array<i64: 1, 128>}, {transform_indices = @transform_8, window_bounds = array<i64: 16, 128>}]} {
    %c0 = arith.constant 0 : index
    %c0_0 = arith.constant 0 : index
    %0 = vector.load %arg1[%c0, %c0_0] : memref<16x128xf32, #tpu.memory_space<vmem>>, vector<16x128xf32>
    %cst = arith.constant dense<0.000000e+00> : vector<16xf32>
    %1 = vector.multi_reduction <add>, %0, %cst [1] : vector<16x128xf32> to vector<16xf32>
    %2 = vector.shape_cast %1 : vector<16xf32> to vector<16x1xf32>
    %cst_1 = arith.constant 1.280000e+02 : f32
    %3 = vector.broadcast %cst_1 : f32 to vector<16x1xf32>
    %4 = arith.divf %2, %3 : vector<16x1xf32>
    %5 = vector.broadcast %4 : vector<16x1xf32> to vector<16x128xf32>
    %6 = arith.subf %0, %5 : vector<16x128xf32>
    %7 = arith.mulf %6, %6 : vector<16x128xf32>
    %cst_2 = arith.constant dense<0.000000e+00> : vector<16xf32>
    %8 = vector.multi_reduction <add>, %7, %cst_2 [1] : vector<16x128xf32> to vector<16xf32>
    %9 = vector.shape_cast %8 : vector<16xf32> to vector<16x1xf32>
    %cst_3 = arith.constant 1.280000e+02 : f32
    %10 = vector.broadcast %cst_3 : f32 to vector<16x1xf32>
    %11 = arith.divf %9, %10 : vector<16x1xf32>
    %12 = vector.broadcast %4 : vector<16x1xf32> to vector<16x128xf32>
    %13 = arith.subf %0, %12 : vector<16x128xf32>
    %cst_4 = arith.constant 9.99999997E-7 : f32
    %14 = vector.broadcast %cst_4 : f32 to vector<16x1xf32>
    %15 = arith.addf %11, %14 : vector<16x1xf32>
    %16 = math.rsqrt %15 : vector<16x1xf32>
    %17 = vector.broadcast %16 : vector<16x1xf32> to vector<16x128xf32>
    %18 = arith.mulf %13, %17 : vector<16x128xf32>
    %c0_5 = arith.constant 0 : index
    %c0_6 = arith.constant 0 : index
    %19 = vector.load %arg3[%c0_5, %c0_6] : memref<1x128xf32, #tpu.memory_space<vmem>>, vector<1x128xf32>
    %20 = vector.broadcast %19 : vector<1x128xf32> to vector<16x128xf32>
    %21 = arith.mulf %18, %20 : vector<16x128xf32>
    %c0_7 = arith.constant 0 : index
    %c0_8 = arith.constant 0 : index
    %22 = vector.load %arg4[%c0_7, %c0_8] : memref<1x128xf32, #tpu.memory_space<vmem>>, vector<1x128xf32>
    %23 = vector.broadcast %22 : vector<1x128xf32> to vector<16x128xf32>
    %24 = arith.addf %21, %23 : vector<16x128xf32>
    %25 = arith.truncf %24 : vector<16x128xf32> to vector<16x128xbf16>
    %c0_9 = arith.constant 0 : index
    %c0_10 = arith.constant 0 : index
    %26 = vector.load %arg5[%c0_9, %c0_10] : memref<128x512xbf16, #tpu.memory_space<vmem>>, vector<128x512xbf16>
    %cst_11 = arith.constant dense<0.000000e+00> : vector<16x512xf32>
    %27 = tpu.matmul %25, %26, %cst_11 {dimension_numbers = #tpu.dot_dimension_numbers<[1], [0], [0], [1], [0, 0, 1, 1], [], []>} : vector<16x128xbf16>, vector<128x512xbf16>, vector<16x512xf32> -> vector<16x512xf32>
    %c0_12 = arith.constant 0 : index
    %c0_13 = arith.constant 0 : index
    %28 = vector.load %arg6[%c0_12, %c0_13] : memref<1x512xf32, #tpu.memory_space<vmem>>, vector<1x512xf32>
    %29 = vector.broadcast %28 : vector<1x512xf32> to vector<16x512xf32>
    %30 = arith.addf %27, %29 : vector<16x512xf32>
    %31 = arith.mulf %30, %30 : vector<16x512xf32>
    %32 = arith.mulf %30, %31 : vector<16x512xf32>
    %cst_14 = arith.constant 4.471500e-02 : f32
    %33 = vector.broadcast %cst_14 : f32 to vector<16x512xf32>
    %34 = arith.mulf %33, %32 : vector<16x512xf32>
    %35 = arith.addf %30, %34 : vector<16x512xf32>
    %cst_15 = arith.constant 0.797884583 : f32
    %36 = vector.broadcast %cst_15 : f32 to vector<16x512xf32>
    %37 = arith.mulf %36, %35 : vector<16x512xf32>
    %38 = math.tanh %37 : vector<16x512xf32>
    %cst_16 = arith.constant 1.000000e+00 : f32
    %39 = vector.broadcast %cst_16 : f32 to vector<16x512xf32>
    %40 = arith.addf %39, %38 : vector<16x512xf32>
    %cst_17 = arith.constant 5.000000e-01 : f32
    %41 = vector.broadcast %cst_17 : f32 to vector<16x512xf32>
    %42 = arith.mulf %41, %40 : vector<16x512xf32>
    %43 = arith.mulf %30, %42 : vector<16x512xf32>
    %44 = arith.truncf %43 : vector<16x512xf32> to vector<16x512xbf16>
    %c0_18 = arith.constant 0 : index
    %c0_19 = arith.constant 0 : index
    %45 = vector.load %arg7[%c0_18, %c0_19] : memref<512x128xbf16, #tpu.memory_space<vmem>>, vector<512x128xbf16>
    %cst_20 = arith.constant dense<0.000000e+00> : vector<16x128xf32>
    %46 = tpu.matmul %44, %45, %cst_20 {dimension_numbers = #tpu.dot_dimension_numbers<[1], [0], [0], [1], [0, 0, 1, 1], [], []>} : vector<16x512xbf16>, vector<512x128xbf16>, vector<16x128xf32> -> vector<16x128xf32>
    %c0_21 = arith.constant 0 : index
    %c0_22 = arith.constant 0 : index
    %47 = vector.load %arg8[%c0_21, %c0_22] : memref<1x128xf32, #tpu.memory_space<vmem>>, vector<1x128xf32>
    %48 = vector.broadcast %47 : vector<1x128xf32> to vector<16x128xf32>
    %49 = arith.addf %46, %48 : vector<16x128xf32>
    %c0_23 = arith.constant 0 : index
    %c0_24 = arith.constant 0 : index
    %50 = vector.load %arg2[%c0_23, %c0_24] : memref<16x128xf32, #tpu.memory_space<vmem>>, vector<16x128xf32>
    %51 = arith.addf %50, %49 : vector<16x128xf32>
    %c0_25 = arith.constant 0 : index
    %c0_26 = arith.constant 0 : index
    %52 = vector.load %arg9[%c0_25, %c0_26] : memref<16x128xf32, #tpu.memory_space<vmem>>, vector<16x128xf32>
    tpu.vector_store %arg9[%c0_25, %c0_26], %51 {strides = array<i32>} : memref<16x128xf32, #tpu.memory_space<vmem>>, vector<16x128xf32>,
    return
  }
  func.func @transform_0(%arg0: i32) -> (i32, i32) {
    %c0_i32 = arith.constant 0 : i32
    %c0_i32_0 = arith.constant 0 : i32
    return %arg0, %c0_i32 : i32, i32
  }
  func.func @transform_1(%arg0: i32) -> (i32, i32) {
    %c0_i32 = arith.constant 0 : i32
    %c0_i32_0 = arith.constant 0 : i32
    return %arg0, %c0_i32 : i32, i32
  }
  func.func @transform_2(%arg0: i32) -> (i32, i32) {
    %c0_i32 = arith.constant 0 : i32
    %c0_i32_0 = arith.constant 0 : i32
    %c0_i32_1 = arith.constant 0 : i32
    return %c0_i32, %c0_i32_0 : i32, i32
  }
  func.func @transform_3(%arg0: i32) -> (i32, i32) {
    %c0_i32 = arith.constant 0 : i32
    %c0_i32_0 = arith.constant 0 : i32
    %c0_i32_1 = arith.constant 0 : i32
    return %c0_i32, %c0_i32_0 : i32, i32
  }
  func.func @transform_4(%arg0: i32) -> (i32, i32) {
    %c0_i32 = arith.constant 0 : i32
    %c0_i32_0 = arith.constant 0 : i32
    %c0_i32_1 = arith.constant 0 : i32
    return %c0_i32, %c0_i32_0 : i32, i32
  }
  func.func @transform_5(%arg0: i32) -> (i32, i32) {
    %c0_i32 = arith.constant 0 : i32
    %c0_i32_0 = arith.constant 0 : i32
    %c0_i32_1 = arith.constant 0 : i32
    return %c0_i32, %c0_i32_0 : i32, i32
  }
  func.func @transform_6(%arg0: i32) -> (i32, i32) {
    %c0_i32 = arith.constant 0 : i32
    %c0_i32_0 = arith.constant 0 : i32
    %c0_i32_1 = arith.constant 0 : i32
    return %c0_i32, %c0_i32_0 : i32, i32
  }
  func.func @transform_7(%arg0: i32) -> (i32, i32) {
    %c0_i32 = arith.constant 0 : i32
    %c0_i32_0 = arith.constant 0 : i32
    %c0_i32_1 = arith.constant 0 : i32
    return %c0_i32, %c0_i32_0 : i32, i32
  }
  func.func @transform_8(%arg0: i32) -> (i32, i32) {
    %c0_i32 = arith.constant 0 : i32
    %c0_i32_0 = arith.constant 0 : i32
    return %arg0, %c0_i32 : i32, i32
  }
}

module attributes {stable_mosaic.version = 11 : i64} {
  func.func @_ln_linproj_kernel(%arg0: i32, %arg1: memref<16x128xf32, #tpu.memory_space<vmem>>, %arg2: memref<1x128xf32, #tpu.memory_space<vmem>>, %arg3: memref<1x128xf32, #tpu.memory_space<vmem>>, %arg4: memref<128x256xbf16, #tpu.memory_space<vmem>>, %arg5: memref<1x256xf32, #tpu.memory_space<vmem>>, %arg6: memref<256x256xbf16, #tpu.memory_space<vmem>>, %arg7: memref<1x256xf32, #tpu.memory_space<vmem>>, %arg8: memref<256x1024xbf16, #tpu.memory_space<vmem>>, %arg9: memref<1x1024xf32, #tpu.memory_space<vmem>>, %arg10: memref<16x1024xf32, #tpu.memory_space<vmem>>) attributes {dimension_semantics = [#tpu.dimension_semantics<parallel>], iteration_bounds = array<i64: 1>, scalar_prefetch = 0 : i64, scratch_operands = 0 : i64, tpu.core_type = #tpu.core_type<tc>, window_params = [{transform_indices = @transform_0, window_bounds = array<i64: 16, 128>}, {pipeline_mode = #tpu.pipeline_mode<synchronous>, transform_indices = @transform_1, window_bounds = array<i64: 1, 128>}, {pipeline_mode = #tpu.pipeline_mode<synchronous>, transform_indices = @transform_2, window_bounds = array<i64: 1, 128>}, {pipeline_mode = #tpu.pipeline_mode<synchronous>, transform_indices = @transform_3, window_bounds = array<i64: 128, 256>}, {pipeline_mode = #tpu.pipeline_mode<synchronous>, transform_indices = @transform_4, window_bounds = array<i64: 1, 256>}, {pipeline_mode = #tpu.pipeline_mode<synchronous>, transform_indices = @transform_5, window_bounds = array<i64: 256, 256>}, {pipeline_mode = #tpu.pipeline_mode<synchronous>, transform_indices = @transform_6, window_bounds = array<i64: 1, 256>}, {pipeline_mode = #tpu.pipeline_mode<synchronous>, transform_indices = @transform_7, window_bounds = array<i64: 256, 1024>}, {pipeline_mode = #tpu.pipeline_mode<synchronous>, transform_indices = @transform_8, window_bounds = array<i64: 1, 1024>}, {transform_indices = @transform_9, window_bounds = array<i64: 16, 1024>}]} {
    %c0 = arith.constant 0 : index
    %c0_0 = arith.constant 0 : index
    %0 = vector.load %arg1[%c0, %c0_0] : memref<16x128xf32, #tpu.memory_space<vmem>>, vector<16x128xf32>
    %cst = arith.constant dense<0.000000e+00> : vector<16xf32>
    %1 = vector.multi_reduction <add>, %0, %cst [1] : vector<16x128xf32> to vector<16xf32>
    %2 = vector.shape_cast %1 : vector<16xf32> to vector<16x1xf32>
    %cst_1 = arith.constant 1.280000e+02 : f32
    %3 = vector.broadcast %cst_1 : f32 to vector<16x1xf32>
    %4 = arith.divf %2, %3 : vector<16x1xf32>
    %5 = vector.broadcast %4 : vector<16x1xf32> to vector<16x128xf32>
    %6 = arith.subf %0, %5 : vector<16x128xf32>
    %7 = arith.mulf %6, %6 : vector<16x128xf32>
    %cst_2 = arith.constant dense<0.000000e+00> : vector<16xf32>
    %8 = vector.multi_reduction <add>, %7, %cst_2 [1] : vector<16x128xf32> to vector<16xf32>
    %9 = vector.shape_cast %8 : vector<16xf32> to vector<16x1xf32>
    %cst_3 = arith.constant 1.280000e+02 : f32
    %10 = vector.broadcast %cst_3 : f32 to vector<16x1xf32>
    %11 = arith.divf %9, %10 : vector<16x1xf32>
    %12 = vector.broadcast %4 : vector<16x1xf32> to vector<16x128xf32>
    %13 = arith.subf %0, %12 : vector<16x128xf32>
    %cst_4 = arith.constant 9.99999997E-7 : f32
    %14 = vector.broadcast %cst_4 : f32 to vector<16x1xf32>
    %15 = arith.addf %11, %14 : vector<16x1xf32>
    %16 = math.rsqrt %15 : vector<16x1xf32>
    %17 = vector.broadcast %16 : vector<16x1xf32> to vector<16x128xf32>
    %18 = arith.mulf %13, %17 : vector<16x128xf32>
    %c0_5 = arith.constant 0 : index
    %c0_6 = arith.constant 0 : index
    %19 = vector.load %arg2[%c0_5, %c0_6] : memref<1x128xf32, #tpu.memory_space<vmem>>, vector<1x128xf32>
    %20 = vector.broadcast %19 : vector<1x128xf32> to vector<16x128xf32>
    %21 = arith.mulf %18, %20 : vector<16x128xf32>
    %c0_7 = arith.constant 0 : index
    %c0_8 = arith.constant 0 : index
    %22 = vector.load %arg3[%c0_7, %c0_8] : memref<1x128xf32, #tpu.memory_space<vmem>>, vector<1x128xf32>
    %23 = vector.broadcast %22 : vector<1x128xf32> to vector<16x128xf32>
    %24 = arith.addf %21, %23 : vector<16x128xf32>
    %25 = arith.truncf %24 : vector<16x128xf32> to vector<16x128xbf16>
    %c0_9 = arith.constant 0 : index
    %c0_10 = arith.constant 0 : index
    %26 = vector.load %arg4[%c0_9, %c0_10] : memref<128x256xbf16, #tpu.memory_space<vmem>>, vector<128x256xbf16>
    %cst_11 = arith.constant dense<0.000000e+00> : vector<16x256xf32>
    %27 = tpu.matmul %25, %26, %cst_11 {dimension_numbers = #tpu.dot_dimension_numbers<[1], [0], [0], [1], [0, 0, 1, 1], [], []>} : vector<16x128xbf16>, vector<128x256xbf16>, vector<16x256xf32> -> vector<16x256xf32>
    %c0_12 = arith.constant 0 : index
    %c0_13 = arith.constant 0 : index
    %28 = vector.load %arg5[%c0_12, %c0_13] : memref<1x256xf32, #tpu.memory_space<vmem>>, vector<1x256xf32>
    %29 = vector.broadcast %28 : vector<1x256xf32> to vector<16x256xf32>
    %30 = arith.addf %27, %29 : vector<16x256xf32>
    %31 = math.tanh %30 : vector<16x256xf32>
    %32 = arith.truncf %31 : vector<16x256xf32> to vector<16x256xbf16>
    %c0_14 = arith.constant 0 : index
    %c0_15 = arith.constant 0 : index
    %33 = vector.load %arg6[%c0_14, %c0_15] : memref<256x256xbf16, #tpu.memory_space<vmem>>, vector<256x256xbf16>
    %cst_16 = arith.constant dense<0.000000e+00> : vector<16x256xf32>
    %34 = tpu.matmul %32, %33, %cst_16 {dimension_numbers = #tpu.dot_dimension_numbers<[1], [0], [0], [1], [0, 0, 1, 1], [], []>} : vector<16x256xbf16>, vector<256x256xbf16>, vector<16x256xf32> -> vector<16x256xf32>
    %c0_17 = arith.constant 0 : index
    %c0_18 = arith.constant 0 : index
    %35 = vector.load %arg7[%c0_17, %c0_18] : memref<1x256xf32, #tpu.memory_space<vmem>>, vector<1x256xf32>
    %36 = vector.broadcast %35 : vector<1x256xf32> to vector<16x256xf32>
    %37 = arith.addf %34, %36 : vector<16x256xf32>
    %38 = math.tanh %37 : vector<16x256xf32>
    %39 = arith.truncf %38 : vector<16x256xf32> to vector<16x256xbf16>
    %c0_19 = arith.constant 0 : index
    %c0_20 = arith.constant 0 : index
    %40 = vector.load %arg8[%c0_19, %c0_20] : memref<256x1024xbf16, #tpu.memory_space<vmem>>, vector<256x1024xbf16>
    %cst_21 = arith.constant dense<0.000000e+00> : vector<16x1024xf32>
    %41 = tpu.matmul %39, %40, %cst_21 {dimension_numbers = #tpu.dot_dimension_numbers<[1], [0], [0], [1], [0, 0, 1, 1], [], []>} : vector<16x256xbf16>, vector<256x1024xbf16>, vector<16x1024xf32> -> vector<16x1024xf32>
    %c0_22 = arith.constant 0 : index
    %c0_23 = arith.constant 0 : index
    %42 = vector.load %arg9[%c0_22, %c0_23] : memref<1x1024xf32, #tpu.memory_space<vmem>>, vector<1x1024xf32>
    %43 = vector.broadcast %42 : vector<1x1024xf32> to vector<16x1024xf32>
    %44 = arith.addf %41, %43 : vector<16x1024xf32>
    %c0_24 = arith.constant 0 : index
    %c0_25 = arith.constant 0 : index
    %45 = vector.load %arg10[%c0_24, %c0_25] : memref<16x1024xf32, #tpu.memory_space<vmem>>, vector<16x1024xf32>
    tpu.vector_store %arg10[%c0_24, %c0_25], %44 {strides = array<i32>} : memref<16x1024xf32, #tpu.memory_space<vmem>>, vector<16x1024xf32>,
    return
  }
  func.func @transform_0(%arg0: i32) -> (i32, i32) {
    %c0_i32 = arith.constant 0 : i32
    %c0_i32_0 = arith.constant 0 : i32
    return %arg0, %c0_i32 : i32, i32
  }
  func.func @transform_1(%arg0: i32) -> (i32, i32) {
    %c0_i32 = arith.constant 0 : i32
    %c0_i32_0 = arith.constant 0 : i32
    %c0_i32_1 = arith.constant 0 : i32
    return %c0_i32, %c0_i32_0 : i32, i32
  }
  func.func @transform_2(%arg0: i32) -> (i32, i32) {
    %c0_i32 = arith.constant 0 : i32
    %c0_i32_0 = arith.constant 0 : i32
    %c0_i32_1 = arith.constant 0 : i32
    return %c0_i32, %c0_i32_0 : i32, i32
  }
  func.func @transform_3(%arg0: i32) -> (i32, i32) {
    %c0_i32 = arith.constant 0 : i32
    %c0_i32_0 = arith.constant 0 : i32
    %c0_i32_1 = arith.constant 0 : i32
    return %c0_i32, %c0_i32_0 : i32, i32
  }
  func.func @transform_4(%arg0: i32) -> (i32, i32) {
    %c0_i32 = arith.constant 0 : i32
    %c0_i32_0 = arith.constant 0 : i32
    %c0_i32_1 = arith.constant 0 : i32
    return %c0_i32, %c0_i32_0 : i32, i32
  }
  func.func @transform_5(%arg0: i32) -> (i32, i32) {
    %c0_i32 = arith.constant 0 : i32
    %c0_i32_0 = arith.constant 0 : i32
    %c0_i32_1 = arith.constant 0 : i32
    return %c0_i32, %c0_i32_0 : i32, i32
  }
  func.func @transform_6(%arg0: i32) -> (i32, i32) {
    %c0_i32 = arith.constant 0 : i32
    %c0_i32_0 = arith.constant 0 : i32
    %c0_i32_1 = arith.constant 0 : i32
    return %c0_i32, %c0_i32_0 : i32, i32
  }
  func.func @transform_7(%arg0: i32) -> (i32, i32) {
    %c0_i32 = arith.constant 0 : i32
    %c0_i32_0 = arith.constant 0 : i32
    %c0_i32_1 = arith.constant 0 : i32
    return %c0_i32, %c0_i32_0 : i32, i32
  }
  func.func @transform_8(%arg0: i32) -> (i32, i32) {
    %c0_i32 = arith.constant 0 : i32
    %c0_i32_0 = arith.constant 0 : i32
    %c0_i32_1 = arith.constant 0 : i32
    return %c0_i32, %c0_i32_0 : i32, i32
  }
  func.func @transform_9(%arg0: i32) -> (i32, i32) {
    %c0_i32 = arith.constant 0 : i32
    %c0_i32_0 = arith.constant 0 : i32
    return %arg0, %c0_i32 : i32, i32
  }
}

</mosaic_0001>

<bundles_post_ra>
// kernel: tile.27
= control target key start
LH: loop header
LB: loop body
LE: loop exit
PB: predicated region body
PF: predicated region fallthrough
CT: control target
= control target key end

     0   :  { %s7_s8 = smov 3  ;;  %vm9_vm0 = vcmask 523264   ;;  %s34_s9 = smov 64   ;;  %vm16_vm1 = vcmask 1048064   ;;  %s54_s0 = inlined_call_operand.vmem [shape: f32[4,64], index: 0, kind: input, shape index: {}]   ;;  %s55_s1 = inlined_call_operand.vmem [shape: f32[1,256], index: 1, kind: output, shape index: {}]  }
   0x1   :  { %v5_v0 = vld [vmem:[%s54_s0] sm:$0xf]  ;;  %s12_s0 = smov 3 }
   0x2   :  { %6 = vst [vmem:[#allocation1] sm:$0xf] %v5_v0 }
   0x9   :  { %v13_v1 = vld [vmem:[#allocation1 + $0x1] ss:$2 sm:%s12_s0]   ;;  %v8_v2 = vld [vmem:[#allocation1] ss:$2 sm:%s7_s8]  }
   0xa   :  { %14 = vrot.lane.b32.xlu0 %v13_v1, %s34_s9  ;;  %10 = vst.msk [vmem:[#allocation0] ss:$8 sm:$0x3] %vm9_vm0, %v8_v2  }
  0x7c   :  { %v15_v3 = vpop.permute.xlu0 %14  }
  0x7d   :  { %17 = vst.msk [vmem:[#allocation0] ss:$8 sm:$0x3] %vm16_vm1, %v15_v3  }
  0x84   :  { %v22_v4 = vld [vmem:[#allocation0] sm:$0x1]  ;;  %v27_v5 = vld [vmem:[#allocation0 + $0x8] sm:$0x1] }
  0x85   :  { %25 = vst [vmem:[%s55_s1] sm:$0x1] %v22_v4  ;;  %32 = vst [vmem:[%s55_s1 + $0x1] sm:$0x1] %v27_v5 }

// kernel: tile.18
= control target key start
LH: loop header
LB: loop body
LE: loop exit
PB: predicated region body
PF: predicated region fallthrough
CT: control target
= control target key end

     0   :  { %2 = vsyncpa [#allocation1], 0  ;;  %s42_s6 = smov [#allocation0]   ;;  %s59_s0 = inlined_call_operand.hbm [shape: f32[64], index: 0, kind: input, shape index: {}]   ;;  %s60_s1 = inlined_call_operand.vmem [shape: f32[4,64], index: 1, kind: output, shape index: {}]  }
   0x1   :  { %s9_s7 = sshll.u32 %s42_s6, 4  ;;  %s10_s7 = int_to_ptr.vmem [resolvable:$true] %s9_s7 }
   0x2   :  { %s28_s8 = scalar_lea.vmem %s10_s7, 16  ;;  %s32_s9 = scalar_lea.vmem %s10_s7, 32 }
   0x3   :  { %p29_p0 = scmp.ne.s32.totalorder %s10_s7, %s28_s8  ;;  %p33_p1 = scmp.lt.s32.totalorder %s10_s7, %s10_s7 }
   0x4   :  { %p34_p2 = scmp.lt.s32.totalorder %s32_s9, %s28_s8 }
   0x6   :  { %p35_p3 = por %p34_p2, %p33_p1 }
   0x8   :  { %p36_p4 = pnand %p35_p3, %p29_p0 }
   0xa   :  { %39 = shalt.err (!%p36_p4)
}
   0xb   :  { %12 = dma.hbm_to_vmem [thread:$0]  %s59_s0, 16, %s10_s7, [#allocation1]  }
   0xc   :  { %40 = dma.done.wait [#allocation1], 16  }
   0xd   :  { %41 = vsyncadd [#allocation1], 4294967280  ;;  %v16_v0 = vld [vmem:[#allocation0] ss:$0 sm:$0xff] }
   0xe   :  { %17 = vst [vmem:[%s60_s1] sm:$0xf] %v16_v0 }
   0xf   :  { %18 = vsyncpa [#allocation1], 1 }

// kernel: tile.22
= control target key start
LH: loop header
LB: loop body
LE: loop exit
PB: predicated region body
PF: predicated region fallthrough
CT: control target
= control target key end

     0   :  { %2 = vsyncpa [#allocation1], 0  ;;  %s45_s6 = smov [#allocation0]   ;;  %s65_s0 = inlined_call_operand.hbm [shape: f32[16], index: 0, kind: input, shape index: {}]   ;;  %s66_s1 = inlined_call_operand.vmem [shape: f32[16,16], index: 1, kind: output, shape index: {}]  }
   0x1   :  { %s9_s7 = sshll.u32 %s45_s6, 4  ;;  %s10_s7 = int_to_ptr.vmem [resolvable:$true] %s9_s7 }
   0x2   :  { %s31_s8 = scalar_lea.vmem %s10_s7, 16  ;;  %s35_s9 = scalar_lea.vmem %s10_s7, 32 }
   0x3   :  { %p32_p0 = scmp.ne.s32.totalorder %s10_s7, %s31_s8  ;;  %p36_p1 = scmp.lt.s32.totalorder %s10_s7, %s10_s7 }
   0x4   :  { %p37_p2 = scmp.lt.s32.totalorder %s35_s9, %s31_s8 }
   0x6   :  { %p38_p3 = por %p37_p2, %p36_p1 }
   0x8   :  { %p39_p4 = pnand %p38_p3, %p32_p0 }
   0xa   :  { %42 = shalt.err (!%p39_p4)
}
   0xb   :  { %12 = dma.hbm_to_vmem [thread:$0]  %s65_s0, 16, %s10_s7, [#allocation1]  }
   0xc   :  { %43 = dma.done.wait [#allocation1], 16  }
   0xd   :  { %44 = vsyncadd [#allocation1], 4294967280  ;;  %v16_v0 = vld [vmem:[#allocation0] ss:$0 sm:$0xff] }
   0xe   :  { %17 = vst [vmem:[%s66_s1] sm:$0xff] %v16_v0  ;;  %21 = vst [vmem:[%s66_s1 + $0x8] sm:$0xff] %v16_v0 }
   0xf   :  { %20 = vsyncpa [#allocation1], 1 }

// kernel: tile.28
= control target key start
LH: loop header
LB: loop body
LE: loop exit
PB: predicated region body
PF: predicated region fallthrough
CT: control target
= control target key end

     0   :  { %s7_s6 = smov 3  ;;  %s21_s9 = smov 3  ;;  %vm4_vm0 = vcmask 130048   ;;  %vm11_vm1 = vcmask 1048448   ;;  %vm18_vm2 = vcmask 917248   ;;  %vm25_vm3 = vcmask 786048   ;;  %s131_s0 = inlined_call_operand.vmem [shape: f32[16,16], index: 0, kind: input, shape index: {}]   ;;  %s132_s1 = inlined_call_operand.vmem [shape: f32[1,256], index: 1, kind: output, shape index: {}]  }
   0x1   :  { %v69_v0 = vld [vmem:[%s131_s0 + $0x7] ss:$8 sm:%s7_s6]   ;;  %s84_s10 = smov 112   ;;  %v71_v1 = vld [vmem:[%s131_s0 + $0x5] ss:$8 sm:%s21_s9]   ;;  %s14_s13 = smov 3 }
   0x2   :  { %9 = vrot.lane.b32.xlu0 %v69_v0, %s84_s10  ;;  %s85_s14 = smov 80   ;;  %v70_v2 = vld [vmem:[%s131_s0 + $0x6] ss:$8 sm:%s14_s13]   ;;  %s28_s17 = smov 3  ;;  %vm32_vm4 = vcmask 654848   ;;  %vm39_vm5 = vcmask 523648  }
   0x3   :  { %23 = vrot.lane.b32.xlu1 %v71_v1, %s85_s14  ;;  %v72_v3 = vld [vmem:[%s131_s0 + $0x4] ss:$8 sm:%s28_s17]   ;;  %s35_s20 = smov 3  ;;  %s42_s21 = smov 3  ;;  %vm46_vm6 = vcmask 392448   ;;  %vm53_vm7 = vcmask 261248  }
   0x4   :  { %s86_s22 = smov 96   ;;  %s87_s23 = smov 64   ;;  %v73_v4 = vld [vmem:[%s131_s0 + $0x3] ss:$8 sm:%s35_s20]   ;;  %v74_v5 = vld [vmem:[%s131_s0 + $0x2] ss:$8 sm:%s42_s21]  }
   0x5   :  { %s2_s26 = smov 3  ;;  %s49_s29 = smov 3 }
   0x6   :  { %16 = vrot.lane.b32.xlu0 %v70_v2, %s86_s22  ;;  %v3_v6 = vld [vmem:[%s131_s0] ss:$8 sm:%s2_s26]   ;;  %s88_s3 = smov 48   ;;  %s89_s4 = smov 32  }
   0x7   :  { %30 = vrot.lane.b32.xlu1 %v72_v3, %s87_s23  ;;  %5 = vst.msk [vmem:[#allocation0] ss:$8 sm:$0x3] %vm4_vm0, %v3_v6   ;;  %v75_v7 = vld [vmem:[%s131_s0 + $0x1] ss:$8 sm:%s49_s29]   ;;  %s90_s0 = smov 16  }
   0xa   :  { %37 = vrot.lane.b32.xlu0 %v73_v4, %s88_s3 }
   0xb   :  { %44 = vrot.lane.b32.xlu1 %v74_v5, %s89_s4 }
   0xe   :  { %51 = vrot.lane.b32.xlu0 %v75_v7, %s90_s0 }
  0x74   :  { %v10_v8 = vpop.permute.xlu0 %9  }
  0x75   :  { %12 = vst.msk [vmem:[#allocation0] ss:$8 sm:$0x3] %vm11_vm1, %v10_v8   ;;  %v24_v9 = vpop.permute.xlu1 %23  }
  0x78   :  { %v17_v10 = vpop.permute.xlu0 %16  }
  0x79   :  { %19 = vst.msk [vmem:[#allocation0] ss:$8 sm:$0x3] %vm18_vm2, %v17_v10   ;;  %v31_v11 = vpop.permute.xlu1 %30  }
  0x7a   :  { %26 = vst.msk [vmem:[#allocation0] ss:$8 sm:$0x3] %vm25_vm3, %v24_v9  }
  0x7b   :  { %33 = vst.msk [vmem:[#allocation0] ss:$8 sm:$0x3] %vm32_vm4, %v31_v11  }
  0x7c   :  { %v38_v12 = vpop.permute.xlu0 %37  }
  0x7d   :  { %40 = vst.msk [vmem:[#allocation0] ss:$8 sm:$0x3] %vm39_vm5, %v38_v12   ;;  %v45_v13 = vpop.permute.xlu1 %44  }
  0x7e   :  { %47 = vst.msk [vmem:[#allocation0] ss:$8 sm:$0x3] %vm46_vm6, %v45_v13  }
  0x80   :  { %v52_v14 = vpop.permute.xlu0 %51  }
  0x81   :  { %54 = vst.msk [vmem:[#allocation0] ss:$8 sm:$0x3] %vm53_vm7, %v52_v14  }
  0x88   :  { %v59_v15 = vld [vmem:[#allocation0] sm:$0x1]  ;;  %v64_v16 = vld [vmem:[#allocation0 + $0x8] sm:$0x1] }
  0x89   :  { %62 = vst [vmem:[%s132_s1] sm:$0x1] %v59_v15  ;;  %76 = vst [vmem:[%s132_s1 + $0x1] sm:$0x1] %v64_v16 }

// kernel: tile.26
= control target key start
LH: loop header
LB: loop body
LE: loop exit
PB: predicated region body
PF: predicated region fallthrough
CT: control target
= control target key end

     0   :  { %s208_s0 = inlined_call_operand.vmem [shape: f32[4], index: 0, kind: input, shape index: {}]   ;;  %s209_s1 = inlined_call_operand.vmem [shape: f32[256,4], index: 1, kind: output, shape index: {}]  }
   0x1   :  { %v4_v0 = vld [vmem:[%s208_s0] ss:$0 sm:$0xff] }
   0x2   :  { %5 = vst [vmem:[%s209_s1] sm:$0xff] %v4_v0  ;;  %68 = vst [vmem:[%s209_s1 + $0x8] sm:$0xff] %v4_v0 }
   0x3   :  { %69 = vst [vmem:[%s209_s1 + $0x10] sm:$0xff] %v4_v0  ;;  %70 = vst [vmem:[%s209_s1 + $0x18] sm:$0xff] %v4_v0 }
   0x4   :  { %71 = vst [vmem:[%s209_s1 + $0x20] sm:$0xff] %v4_v0  ;;  %72 = vst [vmem:[%s209_s1 + $0x28] sm:$0xff] %v4_v0 }
   0x5   :  { %73 = vst [vmem:[%s209_s1 + $0x30] sm:$0xff] %v4_v0  ;;  %74 = vst [vmem:[%s209_s1 + $0x38] sm:$0xff] %v4_v0 }
   0x6   :  { %75 = vst [vmem:[%s209_s1 + $0x40] sm:$0xff] %v4_v0  ;;  %76 = vst [vmem:[%s209_s1 + $0x48] sm:$0xff] %v4_v0 }
   0x7   :  { %77 = vst [vmem:[%s209_s1 + $0x50] sm:$0xff] %v4_v0  ;;  %78 = vst [vmem:[%s209_s1 + $0x58] sm:$0xff] %v4_v0 }
   0x8   :  { %79 = vst [vmem:[%s209_s1 + $0x60] sm:$0xff] %v4_v0  ;;  %80 = vst [vmem:[%s209_s1 + $0x68] sm:$0xff] %v4_v0 }
   0x9   :  { %81 = vst [vmem:[%s209_s1 + $0x70] sm:$0xff] %v4_v0  ;;  %82 = vst [vmem:[%s209_s1 + $0x78] sm:$0xff] %v4_v0 }
   0xa   :  { %83 = vst [vmem:[%s209_s1 + $0x80] sm:$0xff] %v4_v0  ;;  %84 = vst [vmem:[%s209_s1 + $0x88] sm:$0xff] %v4_v0 }
   0xb   :  { %85 = vst [vmem:[%s209_s1 + $0x90] sm:$0xff] %v4_v0  ;;  %86 = vst [vmem:[%s209_s1 + $0x98] sm:$0xff] %v4_v0 }
   0xc   :  { %87 = vst [vmem:[%s209_s1 + $0xa0] sm:$0xff] %v4_v0  ;;  %88 = vst [vmem:[%s209_s1 + $0xa8] sm:$0xff] %v4_v0 }
   0xd   :  { %89 = vst [vmem:[%s209_s1 + $0xb0] sm:$0xff] %v4_v0  ;;  %90 = vst [vmem:[%s209_s1 + $0xb8] sm:$0xff] %v4_v0 }
   0xe   :  { %91 = vst [vmem:[%s209_s1 + $0xc0] sm:$0xff] %v4_v0  ;;  %92 = vst [vmem:[%s209_s1 + $0xc8] sm:$0xff] %v4_v0 }
   0xf   :  { %93 = vst [vmem:[%s209_s1 + $0xd0] sm:$0xff] %v4_v0  ;;  %94 = vst [vmem:[%s209_s1 + $0xd8] sm:$0xff] %v4_v0 }
  0x10   :  { %95 = vst [vmem:[%s209_s1 + $0xe0] sm:$0xff] %v4_v0  ;;  %96 = vst [vmem:[%s209_s1 + $0xe8] sm:$0xff] %v4_v0 }
  0x11   :  { %97 = vst [vmem:[%s209_s1 + $0xf0] sm:$0xff] %v4_v0  ;;  %98 = vst [vmem:[%s209_s1 + $0xf8] sm:$0xff] %v4_v0 }

// kernel: tile.29
= control target key start
LH: loop header
LB: loop body
LE: loop exit
PB: predicated region body
PF: predicated region fallthrough
CT: control target
= control target key end

     0   :  { %vm5_vm0 = vcmask 1041409   ;;  %vm9_vm1 = vcmask 1042434   ;;  %vm13_vm2 = vcmask 1043459   ;;  %vm17_vm3 = vcmask 1044484   ;;  %s1474_s19 = smov 124   ;;  %s1475_s9 = smov 116   ;;  %s2531_s0 = inlined_call_operand.vmem [shape: f32[256,4], index: 0, kind: input, shape index: {}]   ;;  %s2532_s1 = inlined_call_operand.vmem [shape: f32[1,1024], index: 1, kind: output, shape index: {}]  }
   0x1   :  { %v1188_v0 = vld [vmem:[%s2531_s0 + $0x1f] sm:$0x1]   ;;  %vm21_vm4 = vcmask 1045509   ;;  %vm25_vm5 = vcmask 1046534   ;;  %vm29_vm6 = vcmask 1047559   ;;  %s1476_s26 = smov 120  }
   0x2   :  { %v1189_v1 = vld [vmem:[%s2531_s0 + $0x3e] sm:$0x2]   ;;  %v1204_v10 = vld [vmem:[%s2531_s0 + $0x1d] sm:$0x1]   ;;  %v1196_v25 = vld [vmem:[%s2531_s0 + $0x1e] sm:$0x1]  }
   0x3   :  { %v39_v2 = vsel %vm5_vm0, %v1189_v1, %v1188_v0  ;;  %v1190_v3 = vld [vmem:[%s2531_s0 + $0x5d] sm:$0x4]   ;;  %v1205_v11 = vld [vmem:[%s2531_s0 + $0x3c] sm:$0x2]   ;;  %v1197_v26 = vld [vmem:[%s2531_s0 + $0x3d] sm:$0x2]  }
   0x4   :  { %v1191_v4 = vld [vmem:[%s2531_s0 + $0x7c] sm:$0x8]   ;;  %v43_v6 = vsel %vm9_vm1, %v1190_v3, %v39_v2  ;;  %v1206_v12 = vld [vmem:[%s2531_s0 + $0x5b] sm:$0x4]   ;;  %v109_v15 = vsel %vm5_vm0, %v1205_v11, %v1204_v10  ;;  %v1198_v27 = vld [vmem:[%s2531_s0 + $0x5c] sm:$0x4]   ;;  %v74_v30 = vsel %vm5_vm0, %v1197_v26, %v1196_v25 }
   0x5   :  { %v1192_v5 = vld [vmem:[%s2531_s0 + $0x9b] sm:$0x10]   ;;  %v47_v9 = vsel %vm13_vm2, %v1191_v4, %v43_v6  ;;  %v1207_v16 = vld [vmem:[%s2531_s0 + $0x7a] sm:$0x8]   ;;  %v113_v19 = vsel %vm9_vm1, %v1206_v12, %v109_v15  ;;  %v1199_v31 = vld [vmem:[%s2531_s0 + $0x7b] sm:$0x8]   ;;  %v78_v34 = vsel %vm9_vm1, %v1198_v27, %v74_v30 }
   0x6   :  { %v1193_v7 = vld [vmem:[%s2531_s0 + $0xba] sm:$0x20]   ;;  %v51_v13 = vsel %vm17_vm3, %v1192_v5, %v47_v9  ;;  %v1208_v17 = vld [vmem:[%s2531_s0 + $0x99] sm:$0x10]   ;;  %v117_v24 = vsel %vm13_vm2, %v1207_v16, %v113_v19  ;;  %v1200_v32 = vld [vmem:[%s2531_s0 + $0x9a] sm:$0x10]   ;;  %v82_v39 = vsel %vm13_vm2, %v1199_v31, %v78_v34 }
   0x7   :  { %v1194_v8 = vld [vmem:[%s2531_s0 + $0xd9] sm:$0x40]   ;;  %v55_v18 = vsel %vm21_vm4, %v1193_v7, %v51_v13  ;;  %v1209_v20 = vld [vmem:[%s2531_s0 + $0xb8] sm:$0x20]   ;;  %v121_v29 = vsel %vm17_vm3, %v1208_v17, %v117_v24  ;;  %v1201_v35 = vld [vmem:[%s2531_s0 + $0xb9] sm:$0x20]   ;;  %v86_v44 = vsel %vm17_vm3, %v1200_v32, %v82_v39 }
   0x8   :  { %v1195_v14 = vld [vmem:[%s2531_s0 + $0xf8] sm:$0x80]   ;;  %v1210_v21 = vld [vmem:[%s2531_s0 + $0xd7] sm:$0x40]   ;;  %v59_v23 = vsel %vm25_vm5, %v1194_v8, %v55_v18  ;;  %v125_v33 = vsel %vm21_vm4, %v1209_v20, %v121_v29  ;;  %v1202_v36 = vld [vmem:[%s2531_s0 + $0xd8] sm:$0x40]   ;;  %v90_v49 = vsel %vm21_vm4, %v1201_v35, %v86_v44 }
   0x9   :  { %v1211_v22 = vld [vmem:[%s2531_s0 + $0xf6] sm:$0x80]   ;;  %v63_v28 = vsel %vm29_vm6, %v1195_v14, %v59_v23  ;;  %v1212_v37 = vld [vmem:[%s2531_s0 + $0x1c] sm:$0x1]   ;;  %v129_v38 = vsel %vm25_vm5, %v1210_v21, %v125_v33  ;;  %v1203_v45 = vld [vmem:[%s2531_s0 + $0xf7] sm:$0x80]   ;;  %v94_v54 = vsel %vm25_vm5, %v1202_v36, %v90_v49 }
   0xa   :  { %64 = vrot.lane.b32.xlu0 %v63_v28, %s1474_s19  ;;  %v1213_v40 = vld [vmem:[%s2531_s0 + $0x3b] sm:$0x2]   ;;  %v133_v43 = vsel %vm29_vm6, %v1211_v22, %v129_v38  ;;  %v1220_v53 = vld [vmem:[%s2531_s0 + $0x1b] sm:$0x1]   ;;  %v98_v59 = vsel %vm29_vm6, %v1203_v45, %v94_v54  ;;  %v1228_v3 = vld [vmem:[%s2531_s0 + $0x1a] sm:$0x1]  }
   0xb   :  { %v1214_v41 = vld [vmem:[%s2531_s0 + $0x5a] sm:$0x4]   ;;  %v144_v46 = vsel %vm5_vm0, %v1213_v40, %v1212_v37  ;;  %134 = vrot.lane.b32.xlu1 %v133_v43, %s1475_s9  ;;  %v1221_v56 = vld [vmem:[%s2531_s0 + $0x3a] sm:$0x2]   ;;  %v1229_v4 = vld [vmem:[%s2531_s0 + $0x39] sm:$0x2]  }
   0xc   :  { %v1215_v42 = vld [vmem:[%s2531_s0 + $0x79] sm:$0x8]   ;;  %v148_v50 = vsel %vm9_vm1, %v1214_v41, %v144_v46  ;;  %v1222_v57 = vld [vmem:[%s2531_s0 + $0x59] sm:$0x4]   ;;  %v179_v61 = vsel %vm5_vm0, %v1221_v56, %v1220_v53  ;;  %v214_v7 = vsel %vm5_vm0, %v1229_v4, %v1228_v3  ;;  %v1230_v8 = vld [vmem:[%s2531_s0 + $0x58] sm:$0x4]  }
   0xd   :  { %v1216_v47 = vld [vmem:[%s2531_s0 + $0x98] sm:$0x10]   ;;  %v152_v55 = vsel %vm13_vm2, %v1215_v42, %v148_v50  ;;  %v1223_v58 = vld [vmem:[%s2531_s0 + $0x78] sm:$0x8]   ;;  %v183_v1 = vsel %vm9_vm1, %v1222_v57, %v179_v61  ;;  %v1231_v9 = vld [vmem:[%s2531_s0 + $0x77] sm:$0x8]   ;;  %v218_v14 = vsel %vm9_vm1, %v1230_v8, %v214_v7 }
   0xe   :  { %v1217_v48 = vld [vmem:[%s2531_s0 + $0xb7] sm:$0x20]   ;;  %v156_v60 = vsel %vm17_vm3, %v1216_v47, %v152_v55  ;;  %v1224_v62 = vld [vmem:[%s2531_s0 + $0x97] sm:$0x10]   ;;  %99 = vrot.lane.b32.xlu0 %v98_v59, %s1476_s26  ;;  %v187_v6 = vsel %vm13_vm2, %v1223_v58, %v183_v1  ;;  %v1232_v10 = vld [vmem:[%s2531_s0 + $0x96] sm:$0x10]   ;;  %v222_v18 = vsel %vm13_vm2, %v1231_v9, %v218_v14 }
   0xf   :  { %v1218_v51 = vld [vmem:[%s2531_s0 + $0xd6] sm:$0x40]   ;;  %v1225_v63 = vld [vmem:[%s2531_s0 + $0xb6] sm:$0x20]   ;;  %v160_v0 = vsel %vm21_vm4, %v1217_v48, %v156_v60  ;;  %v191_v12 = vsel %vm17_vm3, %v1224_v62, %v187_v6  ;;  %v1233_v15 = vld [vmem:[%s2531_s0 + $0xb5] sm:$0x20]   ;;  %v226_v23 = vsel %vm17_vm3, %v1232_v10, %v222_v18 }
  0x10   :  { %v1219_v52 = vld [vmem:[%s2531_s0 + $0xf5] sm:$0x80]   ;;  %v1226_v2 = vld [vmem:[%s2531_s0 + $0xd5] sm:$0x40]   ;;  %v164_v5 = vsel %vm25_vm5, %v1218_v51, %v160_v0  ;;  %v1234_v16 = vld [vmem:[%s2531_s0 + $0xd4] sm:$0x40]   ;;  %v195_v17 = vsel %vm21_vm4, %v1225_v63, %v191_v12  ;;  %v230_v29 = vsel %vm21_vm4, %v1233_v15, %v226_v23 }
  0x11   :  { %v168_v11 = vsel %vm29_vm6, %v1219_v52, %v164_v5  ;;  %v1227_v13 = vld [vmem:[%s2531_s0 + $0xf4] sm:$0x80]   ;;  %s1477_s16 = smov 112   ;;  %v1235_v19 = vld [vmem:[%s2531_s0 + $0xf3] sm:$0x80]   ;;  %v199_v22 = vsel %vm25_vm5, %v1226_v2, %v195_v17  ;;  %s1478_s4 = smov 108   ;;  %v234_v33 = vsel %vm25_vm5, %v1234_v16, %v230_v29 }
  0x12   :  { %169 = vrot.lane.b32.xlu1 %v168_v11, %s1477_s16  ;;  %v1236_v20 = vld [vmem:[%s2531_s0 + $0x19] sm:$0x1]   ;;  %v203_v28 = vsel %vm29_vm6, %v1227_v13, %v199_v22  ;;  %v1244_v35 = vld [vmem:[%s2531_s0 + $0x18] sm:$0x1]   ;;  %v238_v38 = vsel %vm29_vm6, %v1235_v19, %v234_v33  ;;  %s1479_s17 = smov 104   ;;  %s1480_s5 = smov 100  }
  0x13   :  { %v1237_v21 = vld [vmem:[%s2531_s0 + $0x38] sm:$0x2]   ;;  %204 = vrot.lane.b32.xlu0 %v203_v28, %s1478_s4  ;;  %v1245_v36 = vld [vmem:[%s2531_s0 + $0x37] sm:$0x2]   ;;  %v1252_v51 = vld [vmem:[%s2531_s0 + $0x17] sm:$0x1]  }
  0x14   :  { %v249_v24 = vsel %vm5_vm0, %v1237_v21, %v1236_v20  ;;  %v1238_v25 = vld [vmem:[%s2531_s0 + $0x57] sm:$0x4]   ;;  %v1246_v37 = vld [vmem:[%s2531_s0 + $0x56] sm:$0x4]   ;;  %v284_v41 = vsel %vm5_vm0, %v1245_v36, %v1244_v35  ;;  %v1253_v52 = vld [vmem:[%s2531_s0 + $0x36] sm:$0x2]  }
  0x15   :  { %v1239_v26 = vld [vmem:[%s2531_s0 + $0x76] sm:$0x8]   ;;  %v253_v30 = vsel %vm9_vm1, %v1238_v25, %v249_v24  ;;  %v1247_v42 = vld [vmem:[%s2531_s0 + $0x75] sm:$0x8]   ;;  %v288_v45 = vsel %vm9_vm1, %v1246_v37, %v284_v41  ;;  %v1254_v53 = vld [vmem:[%s2531_s0 + $0x55] sm:$0x4]   ;;  %v319_v56 = vsel %vm5_vm0, %v1253_v52, %v1252_v51 }
  0x16   :  { %v1240_v27 = vld [vmem:[%s2531_s0 + $0x95] sm:$0x10]   ;;  %v257_v34 = vsel %vm13_vm2, %v1239_v26, %v253_v30  ;;  %v1248_v43 = vld [vmem:[%s2531_s0 + $0x94] sm:$0x10]   ;;  %239 = vrot.lane.b32.xlu1 %v238_v38, %s1479_s17  ;;  %v292_v50 = vsel %vm13_vm2, %v1247_v42, %v288_v45  ;;  %v1255_v57 = vld [vmem:[%s2531_s0 + $0x74] sm:$0x8]   ;;  %v323_v60 = vsel %vm9_vm1, %v1254_v53, %v319_v56 }
  0x17   :  { %v1241_v31 = vld [vmem:[%s2531_s0 + $0xb4] sm:$0x20]   ;;  %v261_v39 = vsel %vm17_vm3, %v1240_v27, %v257_v34  ;;  %v1249_v46 = vld [vmem:[%s2531_s0 + $0xb3] sm:$0x20]   ;;  %v296_v55 = vsel %vm17_vm3, %v1248_v43, %v292_v50  ;;  %v1256_v58 = vld [vmem:[%s2531_s0 + $0x93] sm:$0x10]   ;;  %v327_v1 = vsel %vm13_vm2, %v1255_v57, %v323_v60 }
  0x18   :  { %v1242_v32 = vld [vmem:[%s2531_s0 + $0xd3] sm:$0x40]   ;;  %v265_v44 = vsel %vm21_vm4, %v1241_v31, %v261_v39  ;;  %v1250_v47 = vld [vmem:[%s2531_s0 + $0xd2] sm:$0x40]   ;;  %v300_v59 = vsel %vm21_vm4, %v1249_v46, %v296_v55  ;;  %v1257_v61 = vld [vmem:[%s2531_s0 + $0xb2] sm:$0x20]   ;;  %v331_v6 = vsel %vm17_vm3, %v1256_v58, %v327_v1 }
  0x19   :  { %v1243_v40 = vld [vmem:[%s2531_s0 + $0xf2] sm:$0x80]   ;;  %v1251_v48 = vld [vmem:[%s2531_s0 + $0xf1] sm:$0x80]   ;;  %v269_v49 = vsel %vm25_vm5, %v1242_v32, %v265_v44  ;;  %v1258_v62 = vld [vmem:[%s2531_s0 + $0xd1] sm:$0x40]   ;;  %v304_v0 = vsel %vm25_vm5, %v1250_v47, %v300_v59  ;;  %v335_v11 = vsel %vm21_vm4, %v1257_v61, %v331_v6 }
  0x1a   :  { %v273_v54 = vsel %vm29_vm6, %v1243_v40, %v269_v49  ;;  %v1260_v63 = vld [vmem:[%s2531_s0 + $0x16] sm:$0x1]   ;;  %v308_v5 = vsel %vm29_vm6, %v1251_v48, %v304_v0  ;;  %v1259_v7 = vld [vmem:[%s2531_s0 + $0xf0] sm:$0x80]   ;;  %s1481_s24 = smov 96   ;;  %v339_v16 = vsel %vm25_vm5, %v1258_v62, %v335_v11  ;;  %s1482_s12 = smov 92  }
  0x1b   :  { %274 = vrot.lane.b32.xlu0 %v273_v54, %s1480_s5  ;;  %v1261_v2 = vld [vmem:[%s2531_s0 + $0x35] sm:$0x2]   ;;  %309 = vrot.lane.b32.xlu1 %v308_v5, %s1481_s24  ;;  %v1268_v15 = vld [vmem:[%s2531_s0 + $0x15] sm:$0x1]   ;;  %v343_v21 = vsel %vm29_vm6, %v1259_v7, %v339_v16  ;;  %s1483_s2 = smov 88   ;;  %s1484_s19 = smov 84  }
  0x1c   :  { %v1262_v3 = vld [vmem:[%s2531_s0 + $0x54] sm:$0x4]   ;;  %v354_v8 = vsel %vm5_vm0, %v1261_v2, %v1260_v63  ;;  %v1269_v18 = vld [vmem:[%s2531_s0 + $0x34] sm:$0x2]   ;;  %v1276_v29 = vld [vmem:[%s2531_s0 + $0x14] sm:$0x1]  }
  0x1d   :  { %v1263_v4 = vld [vmem:[%s2531_s0 + $0x73] sm:$0x8]   ;;  %v358_v12 = vsel %vm9_vm1, %v1262_v3, %v354_v8  ;;  %v1270_v19 = vld [vmem:[%s2531_s0 + $0x53] sm:$0x4]   ;;  %v389_v23 = vsel %vm5_vm0, %v1269_v18, %v1268_v15  ;;  %v1277_v30 = vld [vmem:[%s2531_s0 + $0x33] sm:$0x2]  }
  0x1e   :  { %v1264_v9 = vld [vmem:[%s2531_s0 + $0x92] sm:$0x10]   ;;  %v362_v17 = vsel %vm13_vm2, %v1263_v4, %v358_v12  ;;  %v1271_v20 = vld [vmem:[%s2531_s0 + $0x72] sm:$0x8]   ;;  %v393_v27 = vsel %vm9_vm1, %v1270_v19, %v389_v23  ;;  %v424_v33 = vsel %vm5_vm0, %v1277_v30, %v1276_v29  ;;  %v1278_v34 = vld [vmem:[%s2531_s0 + $0x52] sm:$0x4]  }
  0x1f   :  { %v1265_v10 = vld [vmem:[%s2531_s0 + $0xb1] sm:$0x20]   ;;  %v366_v22 = vsel %vm17_vm3, %v1264_v9, %v362_v17  ;;  %v1272_v24 = vld [vmem:[%s2531_s0 + $0x91] sm:$0x10]   ;;  %344 = vrot.lane.b32.xlu0 %v343_v21, %s1482_s12  ;;  %v397_v32 = vsel %vm13_vm2, %v1271_v20, %v393_v27  ;;  %v1279_v35 = vld [vmem:[%s2531_s0 + $0x71] sm:$0x8]   ;;  %v428_v40 = vsel %vm9_vm1, %v1278_v34, %v424_v33 }
  0x20   :  { %v1266_v13 = vld [vmem:[%s2531_s0 + $0xd0] sm:$0x40]   ;;  %v1273_v25 = vld [vmem:[%s2531_s0 + $0xb0] sm:$0x20]   ;;  %v370_v26 = vsel %vm21_vm4, %v1265_v10, %v366_v22  ;;  %v1280_v36 = vld [vmem:[%s2531_s0 + $0x90] sm:$0x10]   ;;  %v401_v38 = vsel %vm17_vm3, %v1272_v24, %v397_v32  ;;  %v432_v44 = vsel %vm13_vm2, %v1279_v35, %v428_v40 }
  0x21   :  { %v1267_v14 = vld [vmem:[%s2531_s0 + $0xef] sm:$0x80]   ;;  %v1274_v28 = vld [vmem:[%s2531_s0 + $0xcf] sm:$0x40]   ;;  %v374_v31 = vsel %vm25_vm5, %v1266_v13, %v370_v26  ;;  %v1281_v41 = vld [vmem:[%s2531_s0 + $0xaf] sm:$0x20]   ;;  %v405_v43 = vsel %vm21_vm4, %v1273_v25, %v401_v38  ;;  %v436_v49 = vsel %vm17_vm3, %v1280_v36, %v432_v44 }
  0x22   :  { %v378_v37 = vsel %vm29_vm6, %v1267_v14, %v374_v31  ;;  %v1275_v39 = vld [vmem:[%s2531_s0 + $0xee] sm:$0x80]   ;;  %v1282_v42 = vld [vmem:[%s2531_s0 + $0xce] sm:$0x40]   ;;  %v1284_v46 = vld [vmem:[%s2531_s0 + $0x13] sm:$0x1]   ;;  %v409_v48 = vsel %vm25_vm5, %v1274_v28, %v405_v43  ;;  %v440_v55 = vsel %vm21_vm4, %v1281_v41, %v436_v49 }
  0x23   :  { %379 = vrot.lane.b32.xlu1 %v378_v37, %s1483_s2  ;;  %v1283_v45 = vld [vmem:[%s2531_s0 + $0xed] sm:$0x80]   ;;  %v1285_v47 = vld [vmem:[%s2531_s0 + $0x32] sm:$0x2]   ;;  %v413_v54 = vsel %vm29_vm6, %v1275_v39, %v409_v48  ;;  %v444_v59 = vsel %vm25_vm5, %v1282_v42, %v440_v55  ;;  %v1292_v61 = vld [vmem:[%s2531_s0 + $0x12] sm:$0x1]  }
  0x24   :  { %v459_v50 = vsel %vm5_vm0, %v1285_v47, %v1284_v46  ;;  %v1286_v51 = vld [vmem:[%s2531_s0 + $0x51] sm:$0x4]   ;;  %414 = vrot.lane.b32.xlu0 %v413_v54, %s1484_s19  ;;  %v1293_v62 = vld [vmem:[%s2531_s0 + $0x31] sm:$0x2]   ;;  %v448_v0 = vsel %vm29_vm6, %v1283_v45, %v444_v59  ;;  %s1485_s3 = smov 80   ;;  %s1486_s20 = smov 76  }
  0x25   :  { %v1287_v52 = vld [vmem:[%s2531_s0 + $0x70] sm:$0x8]   ;;  %v463_v56 = vsel %vm9_vm1, %v1286_v51, %v459_v50  ;;  %v1294_v63 = vld [vmem:[%s2531_s0 + $0x50] sm:$0x4]   ;;  %v494_v3 = vsel %vm5_vm0, %v1293_v62, %v1292_v61  ;;  %v1300_v13 = vld [vmem:[%s2531_s0 + $0x11] sm:$0x1]  }
  0x26   :  { %v1288_v53 = vld [vmem:[%s2531_s0 + $0x8f] sm:$0x10]   ;;  %v467_v60 = vsel %vm13_vm2, %v1287_v52, %v463_v56  ;;  %v1295_v4 = vld [vmem:[%s2531_s0 + $0x6f] sm:$0x8]   ;;  %v498_v7 = vsel %vm9_vm1, %v1294_v63, %v494_v3  ;;  %v1301_v14 = vld [vmem:[%s2531_s0 + $0x30] sm:$0x2]  }
  0x27   :  { %v1289_v57 = vld [vmem:[%s2531_s0 + $0xae] sm:$0x20]   ;;  %v471_v1 = vsel %vm17_vm3, %v1288_v53, %v467_v60  ;;  %v1296_v5 = vld [vmem:[%s2531_s0 + $0x8e] sm:$0x10]   ;;  %449 = vrot.lane.b32.xlu1 %v448_v0, %s1485_s3  ;;  %v502_v12 = vsel %vm13_vm2, %v1295_v4, %v498_v7  ;;  %v1302_v15 = vld [vmem:[%s2531_s0 + $0x4f] sm:$0x4]   ;;  %v529_v18 = vsel %vm5_vm0, %v1301_v14, %v1300_v13 }
  0x28   :  { %v1290_v58 = vld [vmem:[%s2531_s0 + $0xcd] sm:$0x40]   ;;  %v475_v6 = vsel %vm21_vm4, %v1289_v57, %v471_v1  ;;  %v1297_v8 = vld [vmem:[%s2531_s0 + $0xad] sm:$0x20]   ;;  %v506_v17 = vsel %vm17_vm3, %v1296_v5, %v502_v12  ;;  %v1303_v19 = vld [vmem:[%s2531_s0 + $0x6e] sm:$0x8]   ;;  %v533_v22 = vsel %vm9_vm1, %v1302_v15, %v529_v18 }
  0x29   :  { %v1291_v2 = vld [vmem:[%s2531_s0 + $0xec] sm:$0x80]   ;;  %v1298_v9 = vld [vmem:[%s2531_s0 + $0xcc] sm:$0x40]   ;;  %v479_v11 = vsel %vm25_vm5, %v1290_v58, %v475_v6  ;;  %v1304_v20 = vld [vmem:[%s2531_s0 + $0x8d] sm:$0x10]   ;;  %v510_v21 = vsel %vm21_vm4, %v1297_v8, %v506_v17  ;;  %v537_v27 = vsel %vm13_vm2, %v1303_v19, %v533_v22 }
  0x2a   :  { %v1299_v10 = vld [vmem:[%s2531_s0 + $0xeb] sm:$0x80]   ;;  %v483_v16 = vsel %vm29_vm6, %v1291_v2, %v479_v11  ;;  %v1305_v23 = vld [vmem:[%s2531_s0 + $0xac] sm:$0x20]   ;;  %v1308_v25 = vld [vmem:[%s2531_s0 + $0x10] sm:$0x1]   ;;  %v514_v26 = vsel %vm25_vm5, %v1298_v9, %v510_v21  ;;  %v541_v32 = vsel %vm17_vm3, %v1304_v20, %v537_v27 }
  0x2b   :  { %484 = vrot.lane.b32.xlu0 %v483_v16, %s1486_s20  ;;  %v1306_v24 = vld [vmem:[%s2531_s0 + $0xcb] sm:$0x40]   ;;  %v1309_v28 = vld [vmem:[%s2531_s0 + $0x2f] sm:$0x2]   ;;  %v518_v31 = vsel %vm29_vm6, %v1299_v10, %v514_v26  ;;  %s1487_s10 = smov 72   ;;  %v545_v37 = vsel %vm21_vm4, %v1305_v23, %v541_v32  ;;  %s1488_s27 = smov 68  }
  0x2c   :  { %v1310_v29 = vld [vmem:[%s2531_s0 + $0x4e] sm:$0x4]   ;;  %v1307_v33 = vld [vmem:[%s2531_s0 + $0xea] sm:$0x80]   ;;  %v564_v34 = vsel %vm5_vm0, %v1309_v28, %v1308_v25  ;;  %519 = vrot.lane.b32.xlu1 %v518_v31, %s1487_s10  ;;  %v1316_v41 = vld [vmem:[%s2531_s0 + $0xf] sm:$0x1]   ;;  %v549_v42 = vsel %vm25_vm5, %v1306_v24, %v545_v37 }
  0x2d   :  { %v1311_v30 = vld [vmem:[%s2531_s0 + $0x6d] sm:$0x8]   ;;  %v568_v38 = vsel %vm9_vm1, %v1310_v29, %v564_v34  ;;  %v1317_v44 = vld [vmem:[%s2531_s0 + $0x2e] sm:$0x2]   ;;  %v553_v47 = vsel %vm29_vm6, %v1307_v33, %v549_v42  ;;  %v1324_v55 = vld [vmem:[%s2531_s0 + $0xe] sm:$0x1]  }
  0x2e   :  { %v1312_v35 = vld [vmem:[%s2531_s0 + $0x8c] sm:$0x10]   ;;  %v572_v43 = vsel %vm13_vm2, %v1311_v30, %v568_v38  ;;  %v1318_v45 = vld [vmem:[%s2531_s0 + $0x4d] sm:$0x4]   ;;  %v599_v49 = vsel %vm5_vm0, %v1317_v44, %v1316_v41  ;;  %v1325_v56 = vld [vmem:[%s2531_s0 + $0x2d] sm:$0x2]  }
  0x2f   :  { %v1313_v36 = vld [vmem:[%s2531_s0 + $0xab] sm:$0x20]   ;;  %v1319_v46 = vld [vmem:[%s2531_s0 + $0x6c] sm:$0x8]   ;;  %v576_v48 = vsel %vm17_vm3, %v1312_v35, %v572_v43  ;;  %554 = vrot.lane.b32.xlu0 %v553_v47, %s1488_s27  ;;  %v603_v53 = vsel %vm9_vm1, %v1318_v45, %v599_v49  ;;  %v634_v59 = vsel %vm5_vm0, %v1325_v56, %v1324_v55  ;;  %v1326_v60 = vld [vmem:[%s2531_s0 + $0x4c] sm:$0x4]  }
  0x30   :  { %v1314_v39 = vld [vmem:[%s2531_s0 + $0xca] sm:$0x40]   ;;  %v1320_v50 = vld [vmem:[%s2531_s0 + $0x8b] sm:$0x10]   ;;  %v580_v52 = vsel %vm21_vm4, %v1313_v36, %v576_v48  ;;  %v607_v58 = vsel %vm13_vm2, %v1319_v46, %v603_v53  ;;  %v1327_v61 = vld [vmem:[%s2531_s0 + $0x6b] sm:$0x8]   ;;  %v638_v2 = vsel %vm9_vm1, %v1326_v60, %v634_v59 }
  0x31   :  { %v1315_v40 = vld [vmem:[%s2531_s0 + $0xe9] sm:$0x80]   ;;  %v1321_v51 = vld [vmem:[%s2531_s0 + $0xaa] sm:$0x20]   ;;  %v584_v57 = vsel %vm25_vm5, %v1314_v39, %v580_v52  ;;  %v1328_v62 = vld [vmem:[%s2531_s0 + $0x8a] sm:$0x10]   ;;  %v611_v0 = vsel %vm17_vm3, %v1320_v50, %v607_v58  ;;  %v642_v6 = vsel %vm13_vm2, %v1327_v61, %v638_v2 }
  0x32   :  { %v1322_v54 = vld [vmem:[%s2531_s0 + $0xc9] sm:$0x40]   ;;  %v588_v63 = vsel %vm29_vm6, %v1315_v40, %v584_v57  ;;  %v1329_v3 = vld [vmem:[%s2531_s0 + $0xa9] sm:$0x20]   ;;  %s1489_s17 = smov 64   ;;  %v615_v5 = vsel %vm21_vm4, %v1321_v51, %v611_v0  ;;  %v646_v11 = vsel %vm17_vm3, %v1328_v62, %v642_v6  ;;  %s1490_s5 = smov 60  }
  0x33   :  { %v1323_v1 = vld [vmem:[%s2531_s0 + $0xe8] sm:$0x80]   ;;  %v1330_v4 = vld [vmem:[%s2531_s0 + $0xc8] sm:$0x40]   ;;  %589 = vrot.lane.b32.xlu1 %v588_v63, %s1489_s17  ;;  %v1332_v8 = vld [vmem:[%s2531_s0 + $0xd] sm:$0x1]   ;;  %v619_v10 = vsel %vm25_vm5, %v1322_v54, %v615_v5  ;;  %v650_v17 = vsel %vm21_vm4, %v1329_v3, %v646_v11 }
  0x34   :  { %v1331_v7 = vld [vmem:[%s2531_s0 + $0xe7] sm:$0x80]   ;;  %v1333_v9 = vld [vmem:[%s2531_s0 + $0x2c] sm:$0x2]   ;;  %v623_v16 = vsel %vm29_vm6, %v1323_v1, %v619_v10  ;;  %v654_v21 = vsel %vm25_vm5, %v1330_v4, %v650_v17  ;;  %v1340_v23 = vld [vmem:[%s2531_s0 + $0xc] sm:$0x1]  }
  0x35   :  { %v669_v12 = vsel %vm5_vm0, %v1333_v9, %v1332_v8  ;;  %v1334_v13 = vld [vmem:[%s2531_s0 + $0x4b] sm:$0x4]   ;;  %624 = vrot.lane.b32.xlu0 %v623_v16, %s1490_s5  ;;  %v1341_v24 = vld [vmem:[%s2531_s0 + $0x2b] sm:$0x2]   ;;  %v658_v26 = vsel %vm29_vm6, %v1331_v7, %v654_v21  ;;  %s1491_s18 = smov 56   ;;  %s1492_s6 = smov 52  }
  0x36   :  { %v1335_v14 = vld [vmem:[%s2531_s0 + $0x6a] sm:$0x8]   ;;  %v673_v18 = vsel %vm9_vm1, %v1334_v13, %v669_v12  ;;  %v1342_v25 = vld [vmem:[%s2531_s0 + $0x4a] sm:$0x4]   ;;  %v704_v29 = vsel %vm5_vm0, %v1341_v24, %v1340_v23  ;;  %v1348_v39 = vld [vmem:[%s2531_s0 + $0xb] sm:$0x1]  }
  0x37   :  { %v1336_v15 = vld [vmem:[%s2531_s0 + $0x89] sm:$0x10]   ;;  %v677_v22 = vsel %vm13_vm2, %v1335_v14, %v673_v18  ;;  %v1343_v30 = vld [vmem:[%s2531_s0 + $0x69] sm:$0x8]   ;;  %659 = vrot.lane.b32.xlu1 %v658_v26, %s1491_s18  ;;  %v708_v33 = vsel %vm9_vm1, %v1342_v25, %v704_v29  ;;  %v1349_v40 = vld [vmem:[%s2531_s0 + $0x2a] sm:$0x2]  }
  0x38   :  { %v1337_v19 = vld [vmem:[%s2531_s0 + $0xa8] sm:$0x20]   ;;  %v681_v27 = vsel %vm17_vm3, %v1336_v15, %v677_v22  ;;  %v1344_v31 = vld [vmem:[%s2531_s0 + $0x88] sm:$0x10]   ;;  %v712_v38 = vsel %vm13_vm2, %v1343_v30, %v708_v33  ;;  %v1350_v41 = vld [vmem:[%s2531_s0 + $0x49] sm:$0x4]   ;;  %v739_v44 = vsel %vm5_vm0, %v1349_v40, %v1348_v39 }
  0x39   :  { %v1338_v20 = vld [vmem:[%s2531_s0 + $0xc7] sm:$0x40]   ;;  %v685_v32 = vsel %vm21_vm4, %v1337_v19, %v681_v27  ;;  %v1345_v34 = vld [vmem:[%s2531_s0 + $0xa7] sm:$0x20]   ;;  %v716_v43 = vsel %vm17_vm3, %v1344_v31, %v712_v38  ;;  %v1351_v45 = vld [vmem:[%s2531_s0 + $0x68] sm:$0x8]   ;;  %v743_v48 = vsel %vm9_vm1, %v1350_v41, %v739_v44 }
  0x3a   :  { %v1339_v28 = vld [vmem:[%s2531_s0 + $0xe6] sm:$0x80]   ;;  %v1346_v35 = vld [vmem:[%s2531_s0 + $0xc6] sm:$0x40]   ;;  %v689_v37 = vsel %vm25_vm5, %v1338_v20, %v685_v32  ;;  %v1352_v46 = vld [vmem:[%s2531_s0 + $0x87] sm:$0x10]   ;;  %v720_v47 = vsel %vm21_vm4, %v1345_v34, %v716_v43  ;;  %v747_v53 = vsel %vm13_vm2, %v1351_v45, %v743_v48 }
  0x3b   :  { %v1347_v36 = vld [vmem:[%s2531_s0 + $0xe5] sm:$0x80]   ;;  %v693_v42 = vsel %vm29_vm6, %v1339_v28, %v689_v37  ;;  %v1353_v49 = vld [vmem:[%s2531_s0 + $0xa6] sm:$0x20]   ;;  %v1356_v51 = vld [vmem:[%s2531_s0 + $0xa] sm:$0x1]   ;;  %v724_v52 = vsel %vm25_vm5, %v1346_v35, %v720_v47  ;;  %v751_v58 = vsel %vm17_vm3, %v1352_v46, %v747_v53 }
  0x3c   :  { %694 = vrot.lane.b32.xlu0 %v693_v42, %s1492_s6  ;;  %v1354_v50 = vld [vmem:[%s2531_s0 + $0xc5] sm:$0x40]   ;;  %v1357_v54 = vld [vmem:[%s2531_s0 + $0x29] sm:$0x2]   ;;  %v728_v57 = vsel %vm29_vm6, %v1347_v36, %v724_v52  ;;  %s1493_s25 = smov 48   ;;  %v755_v63 = vsel %vm21_vm4, %v1353_v49, %v751_v58  ;;  %s1494_s13 = smov 44  }
  0x3d   :  { %v1358_v55 = vld [vmem:[%s2531_s0 + $0x48] sm:$0x4]   ;;  %v1355_v59 = vld [vmem:[%s2531_s0 + $0xe4] sm:$0x80]   ;;  %v774_v60 = vsel %vm5_vm0, %v1357_v54, %v1356_v51  ;;  %729 = vrot.lane.b32.xlu1 %v728_v57, %s1493_s25  ;;  %v1364_v3 = vld [vmem:[%s2531_s0 + $0x9] sm:$0x1]   ;;  %v759_v4 = vsel %vm25_vm5, %v1354_v50, %v755_v63 }
  0x3e   :  { %v1359_v56 = vld [vmem:[%s2531_s0 + $0x67] sm:$0x8]   ;;  %v778_v0 = vsel %vm9_vm1, %v1358_v55, %v774_v60  ;;  %v1365_v6 = vld [vmem:[%s2531_s0 + $0x28] sm:$0x2]   ;;  %v763_v9 = vsel %vm29_vm6, %v1355_v59, %v759_v4  ;;  %v1372_v17 = vld [vmem:[%s2531_s0 + $0x8] sm:$0x1]  }
  0x3f   :  { %v1360_v61 = vld [vmem:[%s2531_s0 + $0x86] sm:$0x10]   ;;  %v782_v5 = vsel %vm13_vm2, %v1359_v56, %v778_v0  ;;  %v1366_v7 = vld [vmem:[%s2531_s0 + $0x47] sm:$0x4]   ;;  %v809_v11 = vsel %vm5_vm0, %v1365_v6, %v1364_v3  ;;  %v1373_v18 = vld [vmem:[%s2531_s0 + $0x27] sm:$0x2]  }
  0x40   :  { %v1361_v62 = vld [vmem:[%s2531_s0 + $0xa5] sm:$0x20]   ;;  %v1367_v8 = vld [vmem:[%s2531_s0 + $0x66] sm:$0x8]   ;;  %v786_v10 = vsel %vm17_vm3, %v1360_v61, %v782_v5  ;;  %764 = vrot.lane.b32.xlu0 %v763_v9, %s1494_s13  ;;  %v813_v15 = vsel %vm9_vm1, %v1366_v7, %v809_v11  ;;  %v844_v21 = vsel %vm5_vm0, %v1373_v18, %v1372_v17  ;;  %v1374_v22 = vld [vmem:[%s2531_s0 + $0x46] sm:$0x4]  }
  0x41   :  { %v1362_v1 = vld [vmem:[%s2531_s0 + $0xc4] sm:$0x40]   ;;  %v1368_v12 = vld [vmem:[%s2531_s0 + $0x85] sm:$0x10]   ;;  %v790_v14 = vsel %vm21_vm4, %v1361_v62, %v786_v10  ;;  %v817_v20 = vsel %vm13_vm2, %v1367_v8, %v813_v15  ;;  %v1375_v23 = vld [vmem:[%s2531_s0 + $0x65] sm:$0x8]   ;;  %v848_v28 = vsel %vm9_vm1, %v1374_v22, %v844_v21 }
  0x42   :  { %v1363_v2 = vld [vmem:[%s2531_s0 + $0xe3] sm:$0x80]   ;;  %v1369_v13 = vld [vmem:[%s2531_s0 + $0xa4] sm:$0x20]   ;;  %v794_v19 = vsel %vm25_vm5, %v1362_v1, %v790_v14  ;;  %v1376_v24 = vld [vmem:[%s2531_s0 + $0x84] sm:$0x10]   ;;  %v821_v26 = vsel %vm17_vm3, %v1368_v12, %v817_v20  ;;  %v852_v32 = vsel %vm13_vm2, %v1375_v23, %v848_v28 }
  0x43   :  { %v1370_v16 = vld [vmem:[%s2531_s0 + $0xc3] sm:$0x40]   ;;  %v798_v25 = vsel %vm29_vm6, %v1363_v2, %v794_v19  ;;  %v1377_v29 = vld [vmem:[%s2531_s0 + $0xa3] sm:$0x20]   ;;  %s1495_s3 = smov 40   ;;  %v825_v31 = vsel %vm21_vm4, %v1369_v13, %v821_v26  ;;  %v856_v37 = vsel %vm17_vm3, %v1376_v24, %v852_v32  ;;  %s1496_s20 = smov 36  }
  0x44   :  { %v1371_v27 = vld [vmem:[%s2531_s0 + $0xe2] sm:$0x80]   ;;  %v1378_v30 = vld [vmem:[%s2531_s0 + $0xc2] sm:$0x40]   ;;  %799 = vrot.lane.b32.xlu1 %v798_v25, %s1495_s3  ;;  %v1380_v34 = vld [vmem:[%s2531_s0 + $0x7] sm:$0x1]   ;;  %v829_v36 = vsel %vm25_vm5, %v1370_v16, %v825_v31  ;;  %v860_v43 = vsel %vm21_vm4, %v1377_v29, %v856_v37 }
  0x45   :  { %v1379_v33 = vld [vmem:[%s2531_s0 + $0xe1] sm:$0x80]   ;;  %v1381_v35 = vld [vmem:[%s2531_s0 + $0x26] sm:$0x2]   ;;  %v833_v42 = vsel %vm29_vm6, %v1371_v27, %v829_v36  ;;  %v864_v47 = vsel %vm25_vm5, %v1378_v30, %v860_v43  ;;  %v1388_v49 = vld [vmem:[%s2531_s0 + $0x6] sm:$0x1]  }
  0x46   :  { %v879_v38 = vsel %vm5_vm0, %v1381_v35, %v1380_v34  ;;  %v1382_v39 = vld [vmem:[%s2531_s0 + $0x45] sm:$0x4]   ;;  %834 = vrot.lane.b32.xlu0 %v833_v42, %s1496_s20  ;;  %v1389_v50 = vld [vmem:[%s2531_s0 + $0x25] sm:$0x2]   ;;  %v868_v52 = vsel %vm29_vm6, %v1379_v33, %v864_v47  ;;  %s1497_s4 = smov 32   ;;  %s1498_s21 = smov 28  }
  0x47   :  { %v1383_v40 = vld [vmem:[%s2531_s0 + $0x64] sm:$0x8]   ;;  %v883_v44 = vsel %vm9_vm1, %v1382_v39, %v879_v38  ;;  %v1390_v51 = vld [vmem:[%s2531_s0 + $0x44] sm:$0x4]   ;;  %v914_v55 = vsel %vm5_vm0, %v1389_v50, %v1388_v49  ;;  %v1396_v1 = vld [vmem:[%s2531_s0 + $0x5] sm:$0x1]  }
  0x48   :  { %v1384_v41 = vld [vmem:[%s2531_s0 + $0x83] sm:$0x10]   ;;  %v887_v48 = vsel %vm13_vm2, %v1383_v40, %v883_v44  ;;  %v1391_v56 = vld [vmem:[%s2531_s0 + $0x63] sm:$0x8]   ;;  %869 = vrot.lane.b32.xlu1 %v868_v52, %s1497_s4  ;;  %v918_v59 = vsel %vm9_vm1, %v1390_v51, %v914_v55  ;;  %v1397_v2 = vld [vmem:[%s2531_s0 + $0x24] sm:$0x2]  }
  0x49   :  { %v1385_v45 = vld [vmem:[%s2531_s0 + $0xa2] sm:$0x20]   ;;  %v891_v53 = vsel %vm17_vm3, %v1384_v41, %v887_v48  ;;  %v1392_v57 = vld [vmem:[%s2531_s0 + $0x82] sm:$0x10]   ;;  %v922_v0 = vsel %vm13_vm2, %v1391_v56, %v918_v59  ;;  %v1398_v3 = vld [vmem:[%s2531_s0 + $0x43] sm:$0x4]   ;;  %v949_v6 = vsel %vm5_vm0, %v1397_v2, %v1396_v1 }
  0x4a   :  { %v1386_v46 = vld [vmem:[%s2531_s0 + $0xc1] sm:$0x40]   ;;  %v895_v58 = vsel %vm21_vm4, %v1385_v45, %v891_v53  ;;  %v1393_v60 = vld [vmem:[%s2531_s0 + $0xa1] sm:$0x20]   ;;  %v926_v5 = vsel %vm17_vm3, %v1392_v57, %v922_v0  ;;  %v1399_v7 = vld [vmem:[%s2531_s0 + $0x62] sm:$0x8]   ;;  %v953_v10 = vsel %vm9_vm1, %v1398_v3, %v949_v6 }
  0x4b   :  { %v1387_v54 = vld [vmem:[%s2531_s0 + $0xe0] sm:$0x80]   ;;  %v1394_v61 = vld [vmem:[%s2531_s0 + $0xc0] sm:$0x40]   ;;  %v899_v63 = vsel %vm25_vm5, %v1386_v46, %v895_v58  ;;  %v1400_v8 = vld [vmem:[%s2531_s0 + $0x81] sm:$0x10]   ;;  %v930_v9 = vsel %vm21_vm4, %v1393_v60, %v926_v5  ;;  %v957_v15 = vsel %vm13_vm2, %v1399_v7, %v953_v10 }
  0x4c   :  { %v1395_v62 = vld [vmem:[%s2531_s0 + $0xdf] sm:$0x80]   ;;  %v903_v4 = vsel %vm29_vm6, %v1387_v54, %v899_v63  ;;  %v1401_v11 = vld [vmem:[%s2531_s0 + $0xa0] sm:$0x20]   ;;  %v1404_v13 = vld [vmem:[%s2531_s0 + $0x4] sm:$0x1]   ;;  %v934_v14 = vsel %vm25_vm5, %v1394_v61, %v930_v9  ;;  %v961_v20 = vsel %vm17_vm3, %v1400_v8, %v957_v15 }
  0x4d   :  { %904 = vrot.lane.b32.xlu0 %v903_v4, %s1498_s21  ;;  %v1402_v12 = vld [vmem:[%s2531_s0 + $0xbf] sm:$0x40]   ;;  %v1405_v16 = vld [vmem:[%s2531_s0 + $0x23] sm:$0x2]   ;;  %v938_v19 = vsel %vm29_vm6, %v1395_v62, %v934_v14  ;;  %s1499_s11 = smov 24   ;;  %v965_v25 = vsel %vm21_vm4, %v1401_v11, %v961_v20  ;;  %s1500_s28 = smov 20  }
  0x4e   :  { %v1406_v17 = vld [vmem:[%s2531_s0 + $0x42] sm:$0x4]   ;;  %v1403_v21 = vld [vmem:[%s2531_s0 + $0xde] sm:$0x80]   ;;  %v984_v22 = vsel %vm5_vm0, %v1405_v16, %v1404_v13  ;;  %939 = vrot.lane.b32.xlu1 %v938_v19, %s1499_s11  ;;  %v1412_v29 = vld [vmem:[%s2531_s0 + $0x3] sm:$0x1]   ;;  %v969_v30 = vsel %vm25_vm5, %v1402_v12, %v965_v25 }
  0x4f   :  { %v1407_v18 = vld [vmem:[%s2531_s0 + $0x61] sm:$0x8]   ;;  %v988_v26 = vsel %vm9_vm1, %v1406_v17, %v984_v22  ;;  %v1413_v32 = vld [vmem:[%s2531_s0 + $0x22] sm:$0x2]   ;;  %v973_v35 = vsel %vm29_vm6, %v1403_v21, %v969_v30  ;;  %v1420_v43 = vld [vmem:[%s2531_s0 + $0x2] sm:$0x1]  }
  0x50   :  { %v1408_v23 = vld [vmem:[%s2531_s0 + $0x80] sm:$0x10]   ;;  %v992_v31 = vsel %vm13_vm2, %v1407_v18, %v988_v26  ;;  %v1414_v33 = vld [vmem:[%s2531_s0 + $0x41] sm:$0x4]   ;;  %v1019_v37 = vsel %vm5_vm0, %v1413_v32, %v1412_v29  ;;  %v1421_v44 = vld [vmem:[%s2531_s0 + $0x21] sm:$0x2]  }
  0x51   :  { %v1409_v24 = vld [vmem:[%s2531_s0 + $0x9f] sm:$0x20]   ;;  %v1415_v34 = vld [vmem:[%s2531_s0 + $0x60] sm:$0x8]   ;;  %v996_v36 = vsel %vm17_vm3, %v1408_v23, %v992_v31  ;;  %974 = vrot.lane.b32.xlu0 %v973_v35, %s1500_s28  ;;  %v1023_v41 = vsel %vm9_vm1, %v1414_v33, %v1019_v37  ;;  %v1054_v47 = vsel %vm5_vm0, %v1421_v44, %v1420_v43  ;;  %v1422_v48 = vld [vmem:[%s2531_s0 + $0x40] sm:$0x4]  }
  0x52   :  { %v1410_v27 = vld [vmem:[%s2531_s0 + $0xbe] sm:$0x40]   ;;  %v1416_v38 = vld [vmem:[%s2531_s0 + $0x7f] sm:$0x10]   ;;  %v1000_v40 = vsel %vm21_vm4, %v1409_v24, %v996_v36  ;;  %v1027_v46 = vsel %vm13_vm2, %v1415_v34, %v1023_v41  ;;  %v1423_v49 = vld [vmem:[%s2531_s0 + $0x5f] sm:$0x8]   ;;  %v1058_v54 = vsel %vm9_vm1, %v1422_v48, %v1054_v47 }
  0x53   :  { %v1411_v28 = vld [vmem:[%s2531_s0 + $0xdd] sm:$0x80]   ;;  %v1417_v39 = vld [vmem:[%s2531_s0 + $0x9e] sm:$0x20]   ;;  %v1004_v45 = vsel %vm25_vm5, %v1410_v27, %v1000_v40  ;;  %v1424_v50 = vld [vmem:[%s2531_s0 + $0x7e] sm:$0x10]   ;;  %v1031_v52 = vsel %vm17_vm3, %v1416_v38, %v1027_v46  ;;  %v1062_v58 = vsel %vm13_vm2, %v1423_v49, %v1058_v54 }
  0x54   :  { %v1418_v42 = vld [vmem:[%s2531_s0 + $0xbd] sm:$0x40]   ;;  %v1008_v51 = vsel %vm29_vm6, %v1411_v28, %v1004_v45  ;;  %v1425_v55 = vld [vmem:[%s2531_s0 + $0x9d] sm:$0x20]   ;;  %s1501_s18 = smov 16   ;;  %v1035_v57 = vsel %vm21_vm4, %v1417_v39, %v1031_v52  ;;  %v1066_v63 = vsel %vm17_vm3, %v1424_v50, %v1062_v58  ;;  %s1502_s4 = smov 12  }
  0x55   :  { %v1419_v53 = vld [vmem:[%s2531_s0 + $0xdc] sm:$0x80]   ;;  %v1426_v56 = vld [vmem:[%s2531_s0 + $0xbc] sm:$0x40]   ;;  %1009 = vrot.lane.b32.xlu1 %v1008_v51, %s1501_s18  ;;  %v1428_v60 = vld [vmem:[%s2531_s0 + $0x1] sm:$0x1]   ;;  %v1039_v62 = vsel %vm25_vm5, %v1418_v42, %v1035_v57  ;;  %v1070_v5 = vsel %vm21_vm4, %v1425_v55, %v1066_v63 }
  0x56   :  { %v1427_v59 = vld [vmem:[%s2531_s0 + $0xdb] sm:$0x80]   ;;  %v1429_v61 = vld [vmem:[%s2531_s0 + $0x20] sm:$0x2]   ;;  %v1043_v4 = vsel %vm29_vm6, %v1419_v53, %v1039_v62  ;;  %v1074_v8 = vsel %vm25_vm5, %v1426_v56, %v1070_v5  ;;  %v1182_v14 = vld [vmem:[%s2531_s0 + $0x3e] sm:$0x4]  }
  0x57   :  { %v1089_v0 = vsel %vm5_vm0, %v1429_v61, %v1428_v60  ;;  %v1430_v1 = vld [vmem:[%s2531_s0 + $0x3f] sm:$0x4]   ;;  %1044 = vrot.lane.b32.xlu0 %v1043_v4, %s1502_s4  ;;  %v1078_v11 = vsel %vm29_vm6, %v1427_v59, %v1074_v8  ;;  %s1503_s11 = smov 8   ;;  %v1183_v16 = vld [vmem:[%s2531_s0 + $0x5d] sm:$0x8]   ;;  %s1504_s22 = smov 4  }
  0x58   :  { %v1431_v2 = vld [vmem:[%s2531_s0 + $0x5e] sm:$0x8]   ;;  %v1093_v6 = vsel %vm9_vm1, %v1430_v1, %v1089_v0  ;;  %v2_v17 = vld [vmem:[%s2531_s0] sm:$0x1]   ;;  %vm31_vm7 = vcmask 31744   ;;  %vm66_vm8 = vcmask 1048544  }
  0x59   :  { %v1432_v3 = vld [vmem:[%s2531_s0 + $0x7d] sm:$0x10]   ;;  %v1097_v9 = vsel %vm13_vm2, %v1431_v2, %v1093_v6  ;;  %1079 = vrot.lane.b32.xlu1 %v1078_v11, %s1503_s11  ;;  %v1181_v18 = vld [vmem:[%s2531_s0 + $0x1f] sm:$0x2]   ;;  %vm101_vm9 = vcmask 1015744   ;;  %vm136_vm10 = vcmask 982944  }
  0x5a   :  { %v1433_v7 = vld [vmem:[%s2531_s0 + $0x9c] sm:$0x20]   ;;  %v1101_v12 = vsel %vm17_vm3, %v1432_v3, %v1097_v9  ;;  %v1184_v20 = vld [vmem:[%s2531_s0 + $0x7c] sm:$0x10]   ;;  %v6_v21 = vsel %vm5_vm0, %v1181_v18, %v2_v17  ;;  %vm171_vm11 = vcmask 950144   ;;  %vm206_vm12 = vcmask 917344  }
  0x5b   :  { %v1434_v10 = vld [vmem:[%s2531_s0 + $0xbb] sm:$0x40]   ;;  %v1105_v15 = vsel %vm21_vm4, %v1433_v7, %v1101_v12  ;;  %v1185_v23 = vld [vmem:[%s2531_s0 + $0x9b] sm:$0x20]   ;;  %v10_v24 = vsel %vm9_vm1, %v1182_v14, %v6_v21  ;;  %vm241_vm13 = vcmask 884544   ;;  %vm276_vm14 = vcmask 851744  }
  0x5c   :  { %v1435_v13 = vld [vmem:[%s2531_s0 + $0xda] sm:$0x80]   ;;  %v1109_v19 = vsel %vm25_vm5, %v1434_v10, %v1105_v15  ;;  %v1186_v25 = vld [vmem:[%s2531_s0 + $0xba] sm:$0x40]   ;;  %v14_v26 = vsel %vm13_vm2, %v1183_v16, %v10_v24  ;;  %vm311_vm15 = vcmask 818944   ;;  %vm346_vm0 = vcmask 786144  }
  0x5d   :  { %v1113_v22 = vsel %vm29_vm6, %v1435_v13, %v1109_v19  ;;  %v1187_v27 = vld [vmem:[%s2531_s0 + $0xd9] sm:$0x80]   ;;  %v18_v28 = vsel %vm17_vm3, %v1184_v20, %v14_v26  ;;  %vm381_vm1 = vcmask 753344   ;;  %vm416_vm2 = vcmask 720544  }
  0x5e   :  { %1114 = vrot.lane.b32.xlu0 %v1113_v22, %s1504_s22  ;;  %v22_v29 = vsel %vm21_vm4, %v1185_v23, %v18_v28  ;;  %vm451_vm3 = vcmask 687744   ;;  %vm486_vm4 = vcmask 654944  }
  0x5f   :  { %v26_v30 = vsel %vm25_vm5, %v1186_v25, %v22_v29  ;;  %vm521_vm5 = vcmask 622144  }
  0x60   :  { %v30_v31 = vsel %vm29_vm6, %v1187_v27, %v26_v30  ;;  %vm556_vm6 = vcmask 589344  }
  0x61   :  { %32 = vst.msk [vmem:[#allocation0] ss:$8 sm:$0xf] %vm31_vm7, %v30_v31   ;;  %33 = vst.msk [vmem:[#allocation0] ss:$8 sm:$0xf0] %vm31_vm7, %v30_v31  }
  0x62   :  { %vm591_vm7 = vcmask 556544  }
  0x7c   :  { %v65_v32 = vpop.permute.xlu0 %64  }
  0x7d   :  { %67 = vst.msk [vmem:[#allocation0] ss:$8 sm:$0xf] %vm66_vm8, %v65_v32   ;;  %68 = vst.msk [vmem:[#allocation0] ss:$8 sm:$0xf0] %vm66_vm8, %v65_v32   ;;  %v135_v33 = vpop.permute.xlu1 %134  }
  0x7e   :  { %vm626_vm8 = vcmask 523744  }
  0x80   :  { %v100_v34 = vpop.permute.xlu0 %99  }
  0x81   :  { %102 = vst.msk [vmem:[#allocation0] ss:$8 sm:$0xf] %vm101_vm9, %v100_v34   ;;  %103 = vst.msk [vmem:[#allocation0] ss:$8 sm:$0xf0] %vm101_vm9, %v100_v34  }
  0x82   :  { %137 = vst.msk [vmem:[#allocation0] ss:$8 sm:$0xf] %vm136_vm10, %v135_v33   ;;  %138 = vst.msk [vmem:[#allocation0] ss:$8 sm:$0xf0] %vm136_vm10, %v135_v33  }
  0x83   :  { %vm661_vm9 = vcmask 490944   ;;  %vm696_vm10 = vcmask 458144  }
  0x84   :  { %v170_v35 = vpop.permute.xlu1 %169  }
  0x85   :  { %172 = vst.msk [vmem:[#allocation0] ss:$8 sm:$0xf] %vm171_vm11, %v170_v35   ;;  %173 = vst.msk [vmem:[#allocation0] ss:$8 sm:$0xf0] %vm171_vm11, %v170_v35   ;;  %v205_v36 = vpop.permute.xlu0 %204  }
  0x86   :  { %207 = vst.msk [vmem:[#allocation0] ss:$8 sm:$0xf] %vm206_vm12, %v205_v36   ;;  %208 = vst.msk [vmem:[#allocation0] ss:$8 sm:$0xf0] %vm206_vm12, %v205_v36  }
  0x87   :  { %vm731_vm11 = vcmask 425344   ;;  %vm766_vm12 = vcmask 392544  }
  0x88   :  { %v240_v37 = vpop.permute.xlu1 %239  }
  0x89   :  { %242 = vst.msk [vmem:[#allocation0] ss:$8 sm:$0xf] %vm241_vm13, %v240_v37   ;;  %243 = vst.msk [vmem:[#allocation0] ss:$8 sm:$0xf0] %vm241_vm13, %v240_v37  }
  0x8a   :  { %vm801_vm13 = vcmask 359744  }
  0x8d   :  { %v275_v38 = vpop.permute.xlu0 %274   ;;  %v310_v39 = vpop.permute.xlu1 %309  }
  0x8e   :  { %277 = vst.msk [vmem:[#allocation0] ss:$8 sm:$0xf] %vm276_vm14, %v275_v38   ;;  %278 = vst.msk [vmem:[#allocation0] ss:$8 sm:$0xf0] %vm276_vm14, %v275_v38  }
  0x8f   :  { %312 = vst.msk [vmem:[#allocation0] ss:$8 sm:$0xf] %vm311_vm15, %v310_v39   ;;  %313 = vst.msk [vmem:[#allocation0] ss:$8 sm:$0xf0] %vm311_vm15, %v310_v39  }
  0x90   :  { %vm836_vm14 = vcmask 326944   ;;  %vm871_vm15 = vcmask 294144  }
  0x91   :  { %v345_v40 = vpop.permute.xlu0 %344  }
  0x92   :  { %347 = vst.msk [vmem:[#allocation0] ss:$8 sm:$0xf] %vm346_vm0, %v345_v40   ;;  %348 = vst.msk [vmem:[#allocation0] ss:$8 sm:$0xf0] %vm346_vm0, %v345_v40  }
  0x93   :  { %vm906_vm0 = vcmask 261344  }
  0x95   :  { %v380_v41 = vpop.permute.xlu1 %379  }
  0x96   :  { %382 = vst.msk [vmem:[#allocation0] ss:$8 sm:$0xf] %vm381_vm1, %v380_v41   ;;  %383 = vst.msk [vmem:[#allocation0] ss:$8 sm:$0xf0] %vm381_vm1, %v380_v41   ;;  %v415_v42 = vpop.permute.xlu0 %414  }
  0x97   :  { %417 = vst.msk [vmem:[#allocation0] ss:$8 sm:$0xf] %vm416_vm2, %v415_v42   ;;  %418 = vst.msk [vmem:[#allocation0] ss:$8 sm:$0xf0] %vm416_vm2, %v415_v42  }
  0x98   :  { %vm941_vm1 = vcmask 228544   ;;  %vm976_vm2 = vcmask 195744  }
  0x99   :  { %v450_v43 = vpop.permute.xlu1 %449  }
  0x9a   :  { %452 = vst.msk [vmem:[#allocation0] ss:$8 sm:$0xf] %vm451_vm3, %v450_v43   ;;  %453 = vst.msk [vmem:[#allocation0] ss:$8 sm:$0xf0] %vm451_vm3, %v450_v43  }
  0x9b   :  { %vm1011_vm3 = vcmask 162944  }
  0x9d   :  { %v485_v44 = vpop.permute.xlu0 %484  }
  0x9e   :  { %487 = vst.msk [vmem:[#allocation0] ss:$8 sm:$0xf] %vm486_vm4, %v485_v44   ;;  %488 = vst.msk [vmem:[#allocation0] ss:$8 sm:$0xf0] %vm486_vm4, %v485_v44   ;;  %v520_v45 = vpop.permute.xlu1 %519  }
  0x9f   :  { %522 = vst.msk [vmem:[#allocation0] ss:$8 sm:$0xf] %vm521_vm5, %v520_v45   ;;  %523 = vst.msk [vmem:[#allocation0] ss:$8 sm:$0xf0] %vm521_vm5, %v520_v45  }
  0xa0   :  { %vm1046_vm4 = vcmask 130144   ;;  %vm1081_vm5 = vcmask 97344  }
  0xa1   :  { %v555_v46 = vpop.permute.xlu0 %554  }
  0xa2   :  { %557 = vst.msk [vmem:[#allocation0] ss:$8 sm:$0xf] %vm556_vm6, %v555_v46   ;;  %558 = vst.msk [vmem:[#allocation0] ss:$8 sm:$0xf0] %vm556_vm6, %v555_v46  }
  0xa3   :  { %vm1116_vm6 = vcmask 64544  }
  0xa5   :  { %v590_v47 = vpop.permute.xlu1 %589  }
  0xa6   :  { %592 = vst.msk [vmem:[#allocation0] ss:$8 sm:$0xf] %vm591_vm7, %v590_v47   ;;  %593 = vst.msk [vmem:[#allocation0] ss:$8 sm:$0xf0] %vm591_vm7, %v590_v47  }
  0xa7   :  { %v625_v48 = vpop.permute.xlu0 %624  }
  0xa8   :  { %627 = vst.msk [vmem:[#allocation0] ss:$8 sm:$0xf] %vm626_vm8, %v625_v48   ;;  %628 = vst.msk [vmem:[#allocation0] ss:$8 sm:$0xf0] %vm626_vm8, %v625_v48  }
  0xa9   :  { %v660_v49 = vpop.permute.xlu1 %659  }
  0xaa   :  { %662 = vst.msk [vmem:[#allocation0] ss:$8 sm:$0xf] %vm661_vm9, %v660_v49   ;;  %663 = vst.msk [vmem:[#allocation0] ss:$8 sm:$0xf0] %vm661_vm9, %v660_v49  }
  0xae   :  { %v695_v50 = vpop.permute.xlu0 %694  }
  0xaf   :  { %697 = vst.msk [vmem:[#allocation0] ss:$8 sm:$0xf] %vm696_vm10, %v695_v50   ;;  %698 = vst.msk [vmem:[#allocation0] ss:$8 sm:$0xf0] %vm696_vm10, %v695_v50   ;;  %v730_v51 = vpop.permute.xlu1 %729  }
  0xb0   :  { %732 = vst.msk [vmem:[#allocation0] ss:$8 sm:$0xf] %vm731_vm11, %v730_v51   ;;  %733 = vst.msk [vmem:[#allocation0] ss:$8 sm:$0xf0] %vm731_vm11, %v730_v51  }
  0xb2   :  { %v765_v52 = vpop.permute.xlu0 %764  }
  0xb3   :  { %767 = vst.msk [vmem:[#allocation0] ss:$8 sm:$0xf] %vm766_vm12, %v765_v52   ;;  %768 = vst.msk [vmem:[#allocation0] ss:$8 sm:$0xf0] %vm766_vm12, %v765_v52  }
  0xb6   :  { %v800_v53 = vpop.permute.xlu1 %799  }
  0xb7   :  { %802 = vst.msk [vmem:[#allocation0] ss:$8 sm:$0xf] %vm801_vm13, %v800_v53   ;;  %803 = vst.msk [vmem:[#allocation0] ss:$8 sm:$0xf0] %vm801_vm13, %v800_v53  }
  0xb8   :  { %v835_v54 = vpop.permute.xlu0 %834  }
  0xb9   :  { %837 = vst.msk [vmem:[#allocation0] ss:$8 sm:$0xf] %vm836_vm14, %v835_v54   ;;  %838 = vst.msk [vmem:[#allocation0] ss:$8 sm:$0xf0] %vm836_vm14, %v835_v54  }
  0xba   :  { %v870_v55 = vpop.permute.xlu1 %869  }
  0xbb   :  { %872 = vst.msk [vmem:[#allocation0] ss:$8 sm:$0xf] %vm871_vm15, %v870_v55   ;;  %873 = vst.msk [vmem:[#allocation0] ss:$8 sm:$0xf0] %vm871_vm15, %v870_v55  }
  0xbf   :  { %v905_v56 = vpop.permute.xlu0 %904  }
  0xc0   :  { %907 = vst.msk [vmem:[#allocation0] ss:$8 sm:$0xf] %vm906_vm0, %v905_v56   ;;  %908 = vst.msk [vmem:[#allocation0] ss:$8 sm:$0xf0] %vm906_vm0, %v905_v56   ;;  %v940_v57 = vpop.permute.xlu1 %939  }
  0xc1   :  { %942 = vst.msk [vmem:[#allocation0] ss:$8 sm:$0xf] %vm941_vm1, %v940_v57   ;;  %943 = vst.msk [vmem:[#allocation0] ss:$8 sm:$0xf0] %vm941_vm1, %v940_v57  }
  0xc3   :  { %v975_v58 = vpop.permute.xlu0 %974  }
  0xc4   :  { %977 = vst.msk [vmem:[#allocation0] ss:$8 sm:$0xf] %vm976_vm2, %v975_v58   ;;  %978 = vst.msk [vmem:[#allocation0] ss:$8 sm:$0xf0] %vm976_vm2, %v975_v58  }
  0xc7   :  { %v1010_v59 = vpop.permute.xlu1 %1009  }
  0xc8   :  { %1012 = vst.msk [vmem:[#allocation0] ss:$8 sm:$0xf] %vm1011_vm3, %v1010_v59   ;;  %1013 = vst.msk [vmem:[#allocation0] ss:$8 sm:$0xf0] %vm1011_vm3, %v1010_v59  }
  0xc9   :  { %v1045_v60 = vpop.permute.xlu0 %1044  }
  0xca   :  { %1047 = vst.msk [vmem:[#allocation0] ss:$8 sm:$0xf] %vm1046_vm4, %v1045_v60   ;;  %1048 = vst.msk [vmem:[#allocation0] ss:$8 sm:$0xf0] %vm1046_vm4, %v1045_v60  }
  0xcb   :  { %v1080_v61 = vpop.permute.xlu1 %1079  }
  0xcc   :  { %1082 = vst.msk [vmem:[#allocation0] ss:$8 sm:$0xf] %vm1081_vm5, %v1080_v61   ;;  %1083 = vst.msk [vmem:[#allocation0] ss:$8 sm:$0xf0] %vm1081_vm5, %v1080_v61  }
  0xd0   :  { %v1115_v62 = vpop.permute.xlu0 %1114  }
  0xd1   :  { %1117 = vst.msk [vmem:[#allocation0] ss:$8 sm:$0xf] %vm1116_vm6, %v1115_v62   ;;  %1118 = vst.msk [vmem:[#allocation0] ss:$8 sm:$0xf0] %vm1116_vm6, %v1115_v62  }
  0xd8   :  { %v1123_v63 = vld [vmem:[#allocation0] sm:$0x1]  ;;  %v1128_v0 = vld [vmem:[#allocation0 + $0x8] sm:$0x1]  ;;  %v1134_v1 = vld [vmem:[#allocation0 + $0x10] sm:$0x1] }
  0xd9   :  { %1126 = vst [vmem:[%s2532_s1] sm:$0x1] %v1123_v63  ;;  %1436 = vst [vmem:[%s2532_s1 + $0x1] sm:$0x1] %v1128_v0  ;;  %v1141_v2 = vld [vmem:[#allocation0 + $0x18] sm:$0x1] }
  0xda   :  { %1437 = vst [vmem:[%s2532_s1 + $0x2] sm:$0x1] %v1134_v1  ;;  %v1148_v3 = vld [vmem:[#allocation0 + $0x20] sm:$0x1]  ;;  %v1155_v4 = vld [vmem:[#allocation0 + $0x28] sm:$0x1] }
  0xdb   :  { %1438 = vst [vmem:[%s2532_s1 + $0x3] sm:$0x1] %v1141_v2  ;;  %1439 = vst [vmem:[%s2532_s1 + $0x4] sm:$0x1] %v1148_v3  ;;  %v1162_v5 = vld [vmem:[#allocation0 + $0x30] sm:$0x1] }
  0xdc   :  { %1440 = vst [vmem:[%s2532_s1 + $0x5] sm:$0x1] %v1155_v4  ;;  %v1169_v6 = vld [vmem:[#allocation0 + $0x38] sm:$0x1]  ;;  %1441 = vst [vmem:[%s2532_s1 + $0x6] sm:$0x1] %v1162_v5 }
  0xdd   :  { %1442 = vst [vmem:[%s2532_s1 + $0x7] sm:$0x1] %v1169_v6 }

// kernel: fpg_forward.9
= control target key start
LH: loop header
LB: loop body
LE: loop exit
PB: predicated region body
PF: predicated region fallthrough
CT: control target
= control target key end

     0   :  { %s107_s0 = inlined_call_operand.vmem [shape: f32[16,128], index: 0, kind: input, shape index: {}]   ;;  %s108_s1 = inlined_call_operand.vmem [shape: f32[1,128], index: 1, kind: input, shape index: {}]   ;;  %s109_s2 = inlined_call_operand.vmem [shape: f32[1,128], index: 2, kind: input, shape index: {}]   ;;  %s110_s3 = inlined_call_operand.vmem [shape: f32[16,128], index: 3, kind: output, shape index: {}]  }
   0x1   :  { %v14_v0 = vld [vmem:[%s107_s0] sm:$0xff]  ;;  %v15_v1 = vld [vmem:[%s107_s0 + $0x8] sm:$0xff] }
   0x2   :  { %16 = vadd.xlane.f32.xlu0 %v14_v0  ;;  %v63_v17 = vld [vmem:[%s108_s1] ss:$0 sm:$0xff] }
   0x3   :  { %v64_v19 = vld [vmem:[%s109_s2] ss:$0 sm:$0xff] }
   0x6   :  { %18 = vadd.xlane.f32.xlu0 %v15_v1 }
  0x8b   :  { %v17_v2 = vpop.xlane.xlu0 %16 }
  0x8c   :  { %v21_v3 = vmul.f32 0.0078125, %v17_v2 }
  0x8e   :  { %v23_v4 = vsub.f32 %v14_v0, %v21_v3 }
  0x8f   :  { %v19_v5 = vpop.xlane.xlu0 %18 }
  0x90   :  { %v22_v6 = vmul.f32 0.0078125, %v19_v5  ;;  %v25_v7 = vmul.f32 %v23_v4, %v23_v4 }
  0x92   :  { %v24_v8 = vsub.f32 %v15_v1, %v22_v6  ;;  %27 = vadd.xlane.f32.xlu1 %v25_v7 }
  0x94   :  { %v26_v9 = vmul.f32 %v24_v8, %v24_v8 }
  0x96   :  { %29 = vadd.xlane.f32.xlu1 %v26_v9 }
 0x11b   :  { %v28_v10 = vpop.xlane.xlu1 %27 }
 0x11c   :  { %v31_v11 = vmul.f32 0.0078125, %v28_v10 }
 0x11e   :  { %v33_v12 = vadd.f32 1e-06, %v31_v11 }
 0x11f   :  { %v30_v13 = vpop.xlane.xlu1 %29 }
 0x120   :  { %65 = vrsqrt.f32 %v33_v12  ;;  %v32_v14 = vmul.f32 0.0078125, %v30_v13 }
 0x122   :  { %v34_v15 = vadd.f32 1e-06, %v32_v14 }
 0x124   :  { %67 = vrsqrt.f32 %v34_v15 }
 0x12d   :  { %v66_v16 = vpop.eup %65 }
 0x12e   :  { %v37_v18 = vmul.f32 %v66_v16, %v23_v4 }
 0x130   :  { %v46_v20 = vmul.f32 %v63_v17, %v37_v18 }
 0x131   :  { %v68_v21 = vpop.eup %67 }
 0x132   :  { %v55_v22 = vadd.f32 %v64_v19, %v46_v20  ;;  %v38_v23 = vmul.f32 %v68_v21, %v24_v8 }
 0x134   :  { %57 = vst [vmem:[%s110_s3] sm:$0xff] %v55_v22  ;;  %v47_v24 = vmul.f32 %v63_v17, %v38_v23 }
 0x136   :  { %v56_v25 = vadd.f32 %v64_v19, %v47_v24 }
 0x138   :  { %58 = vst [vmem:[%s110_s3 + $0x8] sm:$0xff] %v56_v25 }

// kernel: fpg_forward.8
= control target key start
LH: loop header
LB: loop body
LE: loop exit
PB: predicated region body
PF: predicated region fallthrough
CT: control target
= control target key end

     0   :  { %s1251_s15 = smov 0   ;;  %s1484_s0 = inlined_call_operand.vmem [shape: bf16[4,4,1024], index: 0, kind: input, shape index: {}]   ;;  %s1485_s1 = inlined_call_operand.vmem [shape: bf16[1024,128], index: 1, kind: input, shape index: {}]   ;;  %s1486_s2 = inlined_call_operand.vmem [shape: f32[1,128], index: 2, kind: input, shape index: {}]   ;;  %s1487_s3 = inlined_call_operand.vmem [shape: f32[4,128], index: 3, kind: input, shape index: {}]   ;;  %s1488_s4 = inlined_call_operand.vmem [shape: f32[4,4,128], index: 4, kind: output, shape index: {}]  }
   0x1 LB: > { %s978_s16 = sadd.s32 4294967295, %s1223_s15   ;;  %p982_p0 = scmp.ge.s32.totalorder %s1223_s15, 1  ;;  %s1223_s15 = sphi %s1251_s15, %s14_s15  }
   0x2   : > { %p162_p1 = scmp.lt.s32.totalorder %s1223_s15, 5 }
   0x4   : > { %p163_p2 = pnand %p982_p0, %p162_p1 }
   0x5   : > { %p187_p3 = scmp.lt.s32.totalorder (!%p163_p2), %s978_s16, 3 }
   0x6   : > { %166 = sbr.rel (%p163_p2) target bundleno = 281 (0x119), region = 36 }
   0xb   : > { %v1151_v0 = vld [vmem:[%s1485_s1 + $0x78] sm:$0xff]   ;;  %v1155_v4 = vld [vmem:[%s1485_s1 + $0x70] sm:$0xff]   ;;  %v1159_v8 = vld [vmem:[%s1485_s1 + $0x68] sm:$0xff]   ;;  %s1490_s16 = smov (!%p187_p3, %s978_s16), 3  ;;  %v340_v30 = vlaneseq  ;;  %v1225_v35 = vmov 1983009808  }
   0xc   : > { %v1152_v1 = vld [vmem:[%s1485_s1 + $0xf8] sm:$0xff]   ;;  %1054 = vmatprep.subr.bf16.mxu0 %v1151_v0  ;;  %v1156_v5 = vld [vmem:[%s1485_s1 + $0xf0] sm:$0xff]   ;;  %v1160_v9 = vld [vmem:[%s1485_s1 + $0xe8] sm:$0xff]   ;;  %s1053_s23 = sshll.u32 %s1490_s16, 4  ;;  %v338_v36 = vunpack.c.l.s4 %v1225_v35  ;;  %s985_s5 = sshll.u32 %s1490_s16, 2 }
   0xd   : > { %v1153_v2 = vld [vmem:[%s1485_s1 + $0x38] sm:$0xff]   ;;  %1076 = vmatprep.subr.bf16.mxu1 %v1152_v1  ;;  %v1157_v6 = vld [vmem:[%s1485_s1 + $0x30] sm:$0xff]   ;;  %v1161_v10 = vld [vmem:[%s1485_s1 + $0x28] sm:$0xff]   ;;  %s191_s6 = scalar_lea.vmem %s1484_s0, %s1053_s23  ;;  %v341_v37 = vshrl.u32 %v340_v30, 7  ;;  %s195_s10 = scalar_lea.vmem %s1488_s4, %s985_s5 }
   0xe   : > { %v1154_v3 = vld [vmem:[%s1485_s1 + $0xb8] sm:$0xff]   ;;  %1055 = vmatpush3.bf16.msra.mxu0 %v1153_v2  ;;  %v1158_v7 = vld [vmem:[%s1485_s1 + $0xb0] sm:$0xff]   ;;  %v1162_v11 = vld [vmem:[%s1485_s1 + $0xa8] sm:$0xff]   ;;  %v339_v40 = vunpack.c.0.s8 %v338_v36 }
   0xf   : > { %1077 = vmatpush3.bf16.msra.mxu1 %v1154_v3  ;;  %1056 = vmatprep.subr.bf16.mxu0 %v1155_v4  ;;  %v1163_v12 = vld [vmem:[%s1485_s1 + $0x60] sm:$0xff]   ;;  %v1167_v16 = vld [vmem:[%s1485_s1 + $0x58] sm:$0xff]   ;;  %v1171_v20 = vld [vmem:[%s1485_s1 + $0x50] sm:$0xff]  }
  0x10   : > { %1078 = vmatprep.subr.bf16.mxu1 %v1156_v5  ;;  %v1164_v13 = vld [vmem:[%s1485_s1 + $0xe0] sm:$0xff]   ;;  %v1168_v17 = vld [vmem:[%s1485_s1 + $0xd8] sm:$0xff]   ;;  %v1172_v21 = vld [vmem:[%s1485_s1 + $0xd0] sm:$0xff]   ;;  %v342_v43 = vsub.s32 %v339_v40, %v341_v37 }
  0x11   : > { %v1165_v14 = vld [vmem:[%s1485_s1 + $0x20] sm:$0xff]   ;;  %v1169_v18 = vld [vmem:[%s1485_s1 + $0x18] sm:$0xff]   ;;  %v1173_v22 = vld [vmem:[%s1485_s1 + $0x10] sm:$0xff]  }
  0x12   : > { %1057 = vmatpush3.bf16.msra.mxu0 %v1157_v6  ;;  %v1166_v15 = vld [vmem:[%s1485_s1 + $0xa0] sm:$0xff]   ;;  %v1170_v19 = vld [vmem:[%s1485_s1 + $0x98] sm:$0xff]   ;;  %v1174_v23 = vld [vmem:[%s1485_s1 + $0x90] sm:$0xff]  }
  0x13   : > { %1079 = vmatpush3.bf16.msra.mxu1 %v1158_v7  ;;  %1058 = vmatprep.subr.bf16.mxu0 %v1159_v8  ;;  %v1175_v24 = vld [vmem:[%s1485_s1 + $0x48] sm:$0xff]   ;;  %v1179_v28 = vld [vmem:[%s1485_s1 + $0x40] sm:$0xff]   ;;  %v1185_v38 = vld [vmem:[%s1485_s1 + $0x178] sm:$0xff]  }
  0x14   : > { %1080 = vmatprep.subr.bf16.mxu1 %v1160_v9  ;;  %v1176_v25 = vld [vmem:[%s1485_s1 + $0xc8] sm:$0xff]   ;;  %v1180_v29 = vld [vmem:[%s1485_s1 + $0xc0] sm:$0xff]   ;;  %v1186_v39 = vld [vmem:[%s1485_s1 + $0x1f8] sm:$0xff]  }
  0x15   : > { %v1177_v26 = vld [vmem:[%s1485_s1 + $0x8] sm:$0xff]   ;;  %v1181_v31 = vld [vmem:[%s1485_s1] sm:$0xff]   ;;  %v1187_v46 = vld [vmem:[%s1485_s1 + $0x138] sm:$0xff]  }
  0x16   : > { %1059 = vmatpush3.bf16.msra.mxu0 %v1161_v10  ;;  %v1178_v27 = vld [vmem:[%s1485_s1 + $0x88] sm:$0xff]   ;;  %v1182_v32 = vld [vmem:[%s1485_s1 + $0x80] sm:$0xff]   ;;  %v1188_v49 = vld [vmem:[%s1485_s1 + $0x1b8] sm:$0xff]  }
  0x17   : > { %1081 = vmatpush3.bf16.msra.mxu1 %v1162_v11  ;;  %1060 = vmatprep.subr.bf16.mxu0 %v1163_v12  ;;  %v197_v33 = vld [vmem:[%s191_s6] sm:$0xff]  ;;  %v198_v34 = vld [vmem:[%s191_s6 + $0x8] sm:$0xff]  ;;  %v1189_v52 = vld [vmem:[%s1485_s1 + $0x170] sm:$0xff]  }
  0x18   : > { %1082 = vmatprep.subr.bf16.mxu1 %v1164_v13  ;;  %v353_v41 = vcombine.high %v198_v34, %v198_v34  ;;  %v336_v42 = vcombine.high %v197_v33, %v197_v33  ;;  %v343_v44 = vrot.slane %v197_v33, %v342_v43  ;;  %v1374_v47 = vrot.slane %v198_v34, %v342_v43  ;;  %v1190_v53 = vld [vmem:[%s1485_s1 + $0x1f0] sm:$0xff]   ;;  %v1193_v58 = vld [vmem:[%s1485_s1 + $0x168] sm:$0xff]   ;;  %v1197_v62 = vld [vmem:[%s1485_s1 + $0x160] sm:$0xff]  }
  0x19   : > { %v1191_v54 = vld [vmem:[%s1485_s1 + $0x130] sm:$0xff]   ;;  %v1194_v59 = vld [vmem:[%s1485_s1 + $0x1e8] sm:$0xff]   ;;  %v1198_v63 = vld [vmem:[%s1485_s1 + $0x1e0] sm:$0xff]  }
  0x1a   : > { %1061 = vmatpush3.bf16.msra.mxu0 %v1165_v14  ;;  %v350_v45 = vrot.slane %v336_v42, %v342_v43  ;;  %v1376_v48 = vrot.slane %v353_v41, %v342_v43  ;;  %v351_v50 = vcombine.high %v343_v44, %v343_v44  ;;  %v368_v55 = vcombine.high %v1374_v47, %v1374_v47  ;;  %v1192_v57 = vld [vmem:[%s1485_s1 + $0x1b0] sm:$0xff]   ;;  %v1195_v60 = vld [vmem:[%s1485_s1 + $0x128] sm:$0xff]   ;;  %v1199_v0 = vld [vmem:[%s1485_s1 + $0x120] sm:$0xff]  }
  0x1b   : > { %1083 = vmatpush3.bf16.msra.mxu1 %v1166_v15  ;;  %1062 = vmatprep.subr.bf16.mxu0 %v1167_v16  ;;  %v1196_v61 = vld [vmem:[%s1485_s1 + $0x1a8] sm:$0xff]   ;;  %v1200_v1 = vld [vmem:[%s1485_s1 + $0x1a0] sm:$0xff]   ;;  %v1201_v2 = vld [vmem:[%s1485_s1 + $0x158] sm:$0xff]  }
  0x1c   : > { %1084 = vmatprep.subr.bf16.mxu1 %v1168_v17  ;;  %v352_v51 = vcombine.high %v350_v45, %v350_v45  ;;  %794 = vmatprep.mubr.bf16.mxu0 %v351_v50  ;;  %v369_v56 = vcombine.high %v1376_v48, %v1376_v48  ;;  %v1202_v3 = vld [vmem:[%s1485_s1 + $0x1d8] sm:$0xff]   ;;  %v1205_v6 = vld [vmem:[%s1485_s1 + $0x150] sm:$0xff]   ;;  %v1209_v10 = vld [vmem:[%s1485_s1 + $0x148] sm:$0xff]  }
  0x1d   : > { %v1203_v4 = vld [vmem:[%s1485_s1 + $0x118] sm:$0xff]   ;;  %v1206_v7 = vld [vmem:[%s1485_s1 + $0x1d0] sm:$0xff]   ;;  %v1210_v11 = vld [vmem:[%s1485_s1 + $0x1c8] sm:$0xff]  }
  0x1e   : > { %1063 = vmatpush3.bf16.msra.mxu0 %v1169_v18  ;;  %834 = vmatprep.mubr.bf16.mxu1 %v352_v51  ;;  %v1204_v5 = vld [vmem:[%s1485_s1 + $0x198] sm:$0xff]   ;;  %v1207_v8 = vld [vmem:[%s1485_s1 + $0x110] sm:$0xff]   ;;  %v1211_v12 = vld [vmem:[%s1485_s1 + $0x108] sm:$0xff]  }
  0x1f   : > { %1085 = vmatpush3.bf16.msra.mxu1 %v1170_v19  ;;  %1064 = vmatprep.subr.bf16.mxu0 %v1171_v20  ;;  %v1208_v9 = vld [vmem:[%s1485_s1 + $0x190] sm:$0xff]   ;;  %v1212_v13 = vld [vmem:[%s1485_s1 + $0x188] sm:$0xff]   ;;  %v1213_v14 = vld [vmem:[%s1485_s1 + $0x140] sm:$0xff]  }
  0x20   : > { %1086 = vmatprep.subr.bf16.mxu1 %v1172_v21  ;;  %v1214_v15 = vld [vmem:[%s1485_s1 + $0x1c0] sm:$0xff]  }
  0x21   : > { %v1215_v16 = vld [vmem:[%s1485_s1 + $0x100] sm:$0xff]  }
  0x22   : > { %1065 = vmatpush3.bf16.msra.mxu0 %v1173_v22  ;;  %v1216_v17 = vld [vmem:[%s1485_s1 + $0x180] sm:$0xff]  }
  0x23   : > { %1087 = vmatpush3.bf16.msra.mxu1 %v1174_v23  ;;  %1066 = vmatprep.subr.bf16.mxu0 %v1175_v24  ;;  %v922_v40 = vld [vmem:[%s1487_s3] sm:$0xf] }
  0x24   : > { %1088 = vmatprep.subr.bf16.mxu1 %v1176_v25 }
  0x26   : > { %1067 = vmatpush3.bf16.msra.mxu0 %v1177_v26 }
  0x27   : > { %1089 = vmatpush3.bf16.msra.mxu1 %v1178_v27  ;;  %1068 = vmatprep.subr.bf16.mxu0 %v1179_v28  ;;  %v986_v27 = vld [vmem:[%s1486_s2] ss:$0 sm:$0xff] }
  0x28   : > { %1090 = vmatprep.subr.bf16.mxu1 %v1180_v29 }
  0x2a   : > { %1069 = vmatpush3.bf16.msra.mxu0 %v1181_v31 }
  0x2b   : > { %1091 = vmatpush3.bf16.msra.mxu1 %v1182_v32  ;;  %1098 = vmatprep.subr.bf16.mxu0 %v1185_v38 }
  0x2c   : > { %1120 = vmatprep.subr.bf16.mxu1 %v1186_v39 }
  0x2d   : > { %795 = vmatmul.mubr.bf16.vlgmr.msra.gmra.mxu0 %v343_v44 }
  0x2e   : > { %835 = vmatmul.mubr.bf16.vlgmr.msra.gmra.mxu1 %v350_v45  ;;  %1099 = vmatpush3.bf16.msra.mxu0 %v1187_v46 }
  0x2f   : > { %1121 = vmatpush3.bf16.msra.mxu1 %v1188_v49  ;;  %1100 = vmatprep.subr.bf16.mxu0 %v1189_v52 }
  0x30   : > { %1122 = vmatprep.subr.bf16.mxu1 %v1190_v53  ;;  %874 = vmatprep.mubr.bf16.mxu0 %v368_v55 }
  0x31   : > { %914 = vmatprep.mubr.bf16.mxu1 %v369_v56 }
  0x32   : > { %1101 = vmatpush3.bf16.msra.mxu0 %v1191_v54 }
  0x33   : > { %1123 = vmatpush3.bf16.msra.mxu1 %v1192_v57  ;;  %1102 = vmatprep.subr.bf16.mxu0 %v1193_v58 }
  0x34   : > { %1124 = vmatprep.subr.bf16.mxu1 %v1194_v59 }
  0x36   : > { %1103 = vmatpush3.bf16.msra.mxu0 %v1195_v60 }
  0x37   : > { %1125 = vmatpush3.bf16.msra.mxu1 %v1196_v61  ;;  %1104 = vmatprep.subr.bf16.mxu0 %v1197_v62 }
  0x38   : > { %1126 = vmatprep.subr.bf16.mxu1 %v1198_v63 }
  0x3a   : > { %1105 = vmatpush3.bf16.msra.mxu0 %v1199_v0 }
  0x3b   : > { %1127 = vmatpush3.bf16.msra.mxu1 %v1200_v1  ;;  %1106 = vmatprep.subr.bf16.mxu0 %v1201_v2 }
  0x3c   : > { %1128 = vmatprep.subr.bf16.mxu1 %v1202_v3 }
  0x3e   : > { %1107 = vmatpush3.bf16.msra.mxu0 %v1203_v4 }
  0x3f   : > { %1129 = vmatpush3.bf16.msra.mxu1 %v1204_v5  ;;  %1108 = vmatprep.subr.bf16.mxu0 %v1205_v6 }
  0x40   : > { %1130 = vmatprep.subr.bf16.mxu1 %v1206_v7 }
  0x42   : > { %1109 = vmatpush3.bf16.msra.mxu0 %v1207_v8 }
  0x43   : > { %1131 = vmatpush3.bf16.msra.mxu1 %v1208_v9  ;;  %1110 = vmatprep.subr.bf16.mxu0 %v1209_v10 }
  0x44   : > { %1132 = vmatprep.subr.bf16.mxu1 %v1210_v11 }
  0x46   : > { %1111 = vmatpush3.bf16.msra.mxu0 %v1211_v12 }
  0x47   : > { %1133 = vmatpush3.bf16.msra.mxu1 %v1212_v13  ;;  %1112 = vmatprep.subr.bf16.mxu0 %v1213_v14 }
  0x48   : > { %1134 = vmatprep.subr.bf16.mxu1 %v1214_v15 }
  0x4a   : > { %1113 = vmatpush3.bf16.msra.mxu0 %v1215_v16 }
  0x4b   : > { %1135 = vmatpush3.bf16.msra.mxu1 %v1216_v17 }
  0x4d   : > { %875 = vmatmul.mubr.bf16.vlgmr.msra.gmra.mxu0 %v1374_v47 }
  0x4e   : > { %915 = vmatmul.mubr.bf16.vlgmr.msra.gmra.mxu1 %v1376_v48 }
  0xed   : > { %v1070_v18 = vpop.f32.mrf.mxu0 }
  0xee   : > { %v1092_v19 = vpop.f32.mrf.mxu1 }
  0xef   : > { %v1071_v20 = vpop.f32.mrf.mxu0 }
  0xf0   : > { %v1093_v21 = vpop.f32.mrf.mxu1  ;;  %v1072_v26 = vadd.f32 %v1071_v20, %v1070_v18 }
  0xf1   : > { %v1073_v22 = vpop.f32.mrf.mxu0  ;;  %v1094_v29 = vadd.f32 %v1093_v21, %v1092_v19 }
  0xf2   : > { %v1095_v23 = vpop.f32.mrf.mxu1  ;;  %v797_v28 = vadd.f32 %v1072_v26, %v986_v27 }
  0xf3   : > { %v1074_v24 = vpop.f32.mrf.mxu0 }
  0xf4   : > { %v1096_v25 = vpop.f32.mrf.mxu1  ;;  %v837_v34 = vadd.f32 %v1094_v29, %v797_v28 }
 0x10d   : > { %v1114_v30 = vpop.f32.mrf.mxu0 }
 0x10e   : > { %v1136_v31 = vpop.f32.mrf.mxu1 }
 0x10f   : > { %v1115_v32 = vpop.f32.mrf.mxu0 }
 0x110   : > { %v1137_v33 = vpop.f32.mrf.mxu1  ;;  %v1116_v35 = vadd.f32 %v1115_v32, %v1114_v30 }
 0x111   : > { %v1117_v36 = vpop.f32.mrf.mxu0  ;;  %v1138_v39 = vadd.f32 %v1137_v33, %v1136_v31 }
 0x112   : > { %v1139_v37 = vpop.f32.mrf.mxu1  ;;  %v877_v38 = vadd.f32 %v1116_v35, %v837_v34 }
 0x113   : > { %v1118_v41 = vpop.f32.mrf.mxu0 }
 0x114   : > { %v1140_v42 = vpop.f32.mrf.mxu1  ;;  %v917_v43 = vadd.f32 %v1138_v39, %v877_v38 }
 0x116   : > { %v923_v44 = vadd.f32 %v922_v40, %v917_v43 }
 0x118   : > { %924 = vst [vmem:[%s195_s10] sm:$0xf] %v923_v44 }
 0x119 PF: > { %s14_s15 = sadd.s32 1, %s1223_s15  }
 0x11a   : > { %p11_p4 = scmp.ge.s32.totalorder %s14_s15, 6  }
 0x11c   :  { %13 = sbr.rel (!%p11_p4) target bundleno = 1 (0x1), region = 66 }

// kernel: fpg_forward.10
= control target key start
LH: loop header
LB: loop body
LE: loop exit
PB: predicated region body
PF: predicated region fallthrough
CT: control target
= control target key end

     0   :  { %s413_s18 = smov 0   ;;  %s436_s0 = inlined_call_operand.vmem [shape: f32[4,4,128], index: 0, kind: input, shape index: {}]   ;;  %s437_s1 = inlined_call_operand.vmem [shape: f32[4,4,128], index: 1, kind: input, shape index: {}]   ;;  %s438_s2 = inlined_call_operand.vmem [shape: f32[4,128], index: 2, kind: input, shape index: {}]   ;;  %s439_s3 = inlined_call_operand.vmem [shape: f32[4,128], index: 3, kind: input, shape index: {}]   ;;  %s440_s4 = inlined_call_operand.vmem [shape: f32[4,4,128], index: 4, kind: output, shape index: {0}]   ;;  %s441_s5 = inlined_call_operand.vmem [shape: f32[4,4,128], index: 5, kind: output, shape index: {1}]  }
   0x1 LB: > { %s356_s19 = sadd.s32 4294967295, %s381_s18   ;;  %p360_p0 = scmp.ge.s32.totalorder %s381_s18, 1  ;;  %s381_s18 = sphi %s413_s18, %s16_s18  }
   0x2   : > { %p198_p1 = scmp.lt.s32.totalorder %s381_s18, 5 }
   0x4   : > { %p199_p2 = pnand %p360_p0, %p198_p1 }
   0x5   : > { %p232_p3 = scmp.lt.s32.totalorder (!%p199_p2), %s356_s19, 3 }
   0x6   : > { %202 = sbr.rel (%p199_p2) target bundleno = 21 (0x15), region = 36 }
   0xb   : > { %s443_s19 = smov (!%p232_p3, %s356_s19), 3  ;;  %v250_v0 = vld [vmem:[%s438_s2] sm:$0xf] }
   0xc   : > { %s361_s20 = sshll.u32 %s443_s19, 2  ;;  %v251_v1 = vld [vmem:[%s439_s3] sm:$0xf] }
   0xd   : > { %s235_s27 = scalar_lea.vmem %s436_s0, %s361_s20  ;;  %s239_s30 = scalar_lea.vmem %s437_s1, %s361_s20 }
   0xe   : > { %v248_v2 = vld [vmem:[%s235_s27] sm:$0xf]  ;;  %s243_s8 = scalar_lea.vmem %s440_s4, %s361_s20  ;;  %s247_s11 = scalar_lea.vmem %s441_s5, %s361_s20 }
   0xf   : > { %v249_v3 = vld [vmem:[%s239_s30] sm:$0xf]  ;;  %v252_v4 = vmul.f32 %v250_v0, %v248_v2  ;;  %v256_v6 = vmul.f32 %v251_v1, %v248_v2 }
  0x10   : > { %v253_v5 = vmul.f32 %v251_v1, %v249_v3  ;;  %v257_v7 = vmul.f32 %v250_v0, %v249_v3 }
  0x12   : > { %v254_v8 = vsub.f32 %v252_v4, %v253_v5  ;;  %v258_v9 = vadd.f32 %v257_v7, %v256_v6 }
  0x14   : > { %255 = vst [vmem:[%s243_s8] sm:$0xf] %v254_v8  ;;  %259 = vst [vmem:[%s247_s11] sm:$0xf] %v258_v9 }
  0x15 PF: > { %s16_s18 = sadd.s32 1, %s381_s18  }
  0x16   : > { %p13_p4 = scmp.ge.s32.totalorder %s16_s18, 6  }
  0x18   :  { %15 = sbr.rel (!%p13_p4) target bundleno = 1 (0x1), region = 81 }

// kernel: fpg_forward.11
= control target key start
LH: loop header
LB: loop body
LE: loop exit
PB: predicated region body
PF: predicated region fallthrough
CT: control target
= control target key end

     0   :  { %v1017_v36 = vmov 0   ;;  %s1351_s0 = inlined_call_operand.vmem [shape: f32[16,128], index: 0, kind: input, shape index: {}]   ;;  %s1352_s4 = inlined_call_operand.vmem [shape: bf16[128,512], index: 4, kind: input, shape index: {}]   ;;  %s1353_s2 = inlined_call_operand.vmem [shape: f32[1,128], index: 2, kind: input, shape index: {}]   ;;  %s1354_s3 = inlined_call_operand.vmem [shape: f32[1,128], index: 3, kind: input, shape index: {}]   ;;  %s1355_s6 = inlined_call_operand.vmem [shape: bf16[512,128], index: 6, kind: input, shape index: {}]   ;;  %s1356_s5 = inlined_call_operand.vmem [shape: f32[1,512], index: 5, kind: input, shape index: {}]   ;;  %s1357_s7 = inlined_call_operand.vmem [shape: f32[1,128], index: 7, kind: input, shape index: {}]   ;;  %s1358_s1 = inlined_call_operand.vmem [shape: f32[16,128], index: 1, kind: input, shape index: {}]   ;;  %s1359_s8 = inlined_call_operand.vmem [shape: f32[16,128], index: 8, kind: output, shape index: {}]  }
   0x1   :  { %v30_v0 = vld [vmem:[%s1351_s0] sm:$0xff]  ;;  %v31_v1 = vld [vmem:[%s1351_s0 + $0x8] sm:$0xff]  ;;  %320 = vmatprep.mubr.bf16.mxu0 %v1017_v36  ;;  %363 = vmatprep.mubr.bf16.mxu1 %v1017_v36  ;;  %v965_v60 = vld [vmem:[%s1355_s6 + $0x78] sm:$0xff]  }
   0x2   :  { %32 = vadd.xlane.f32.xlu0 %v30_v0  ;;  %v917_v2 = vld [vmem:[%s1352_s4 + $0xe4] ss:$16 sps:$4 sm:$0xff]   ;;  %v919_v3 = vld [vmem:[%s1352_s4 + $0xec] ss:$16 sps:$4 sm:$0xff]   ;;  %v921_v4 = vld [vmem:[%s1352_s4 + $0xe0] ss:$16 sps:$4 sm:$0xff]  }
   0x3   :  { %288 = vmatprep.subr.bf16.mxu0 %v917_v2  ;;  %v922_v5 = vld [vmem:[%s1352_s4 + $0xe8] ss:$16 sps:$4 sm:$0xff]   ;;  %331 = vmatprep.subr.bf16.mxu1 %v919_v3  ;;  %v923_v14 = vld [vmem:[%s1352_s4 + $0xc4] ss:$16 sps:$4 sm:$0xff]   ;;  %v925_v15 = vld [vmem:[%s1352_s4 + $0xcc] ss:$16 sps:$4 sm:$0xff]  }
   0x4   :  { %289 = vmatpush1.bf16.msra.mxu0 %v921_v4  ;;  %332 = vmatpush1.bf16.msra.mxu1 %v922_v5  ;;  %v927_v16 = vld [vmem:[%s1352_s4 + $0xc0] ss:$16 sps:$4 sm:$0xff]   ;;  %v928_v17 = vld [vmem:[%s1352_s4 + $0xc8] ss:$16 sps:$4 sm:$0xff]   ;;  %v929_v18 = vld [vmem:[%s1352_s4 + $0xa4] ss:$16 sps:$4 sm:$0xff]  }
   0x5   :  { %290 = vmatprep.subr.bf16.mxu0 %v923_v14  ;;  %333 = vmatprep.subr.bf16.mxu1 %v925_v15  ;;  %v931_v19 = vld [vmem:[%s1352_s4 + $0xac] ss:$16 sps:$4 sm:$0xff]   ;;  %v933_v20 = vld [vmem:[%s1352_s4 + $0xa0] ss:$16 sps:$4 sm:$0xff]   ;;  %v934_v21 = vld [vmem:[%s1352_s4 + $0xa8] ss:$16 sps:$4 sm:$0xff]  }
   0x6   :  { %34 = vadd.xlane.f32.xlu0 %v31_v1  ;;  %v935_v22 = vld [vmem:[%s1352_s4 + $0x84] ss:$16 sps:$4 sm:$0xff]   ;;  %v937_v23 = vld [vmem:[%s1352_s4 + $0x8c] ss:$16 sps:$4 sm:$0xff]   ;;  %v939_v24 = vld [vmem:[%s1352_s4 + $0x80] ss:$16 sps:$4 sm:$0xff]  }
   0x7   :  { %v940_v25 = vld [vmem:[%s1352_s4 + $0x88] ss:$16 sps:$4 sm:$0xff]   ;;  %v941_v26 = vld [vmem:[%s1352_s4 + $0x64] ss:$16 sps:$4 sm:$0xff]   ;;  %v943_v27 = vld [vmem:[%s1352_s4 + $0x6c] ss:$16 sps:$4 sm:$0xff]  }
   0x8   :  { %291 = vmatpush1.bf16.msra.mxu0 %v927_v16  ;;  %334 = vmatpush1.bf16.msra.mxu1 %v928_v17  ;;  %v945_v28 = vld [vmem:[%s1352_s4 + $0x60] ss:$16 sps:$4 sm:$0xff]   ;;  %v946_v29 = vld [vmem:[%s1352_s4 + $0x68] ss:$16 sps:$4 sm:$0xff]   ;;  %v947_v30 = vld [vmem:[%s1352_s4 + $0x44] ss:$16 sps:$4 sm:$0xff]  }
   0x9   :  { %292 = vmatprep.subr.bf16.mxu0 %v929_v18  ;;  %335 = vmatprep.subr.bf16.mxu1 %v931_v19  ;;  %v949_v31 = vld [vmem:[%s1352_s4 + $0x4c] ss:$16 sps:$4 sm:$0xff]   ;;  %v951_v32 = vld [vmem:[%s1352_s4 + $0x40] ss:$16 sps:$4 sm:$0xff]   ;;  %v952_v33 = vld [vmem:[%s1352_s4 + $0x48] ss:$16 sps:$4 sm:$0xff]  }
   0xa   :  { %v953_v34 = vld [vmem:[%s1352_s4 + $0x24] ss:$16 sps:$4 sm:$0xff]   ;;  %v955_v35 = vld [vmem:[%s1352_s4 + $0x2c] ss:$16 sps:$4 sm:$0xff]   ;;  %v957_v37 = vld [vmem:[%s1352_s4 + $0x20] ss:$16 sps:$4 sm:$0xff]  }
   0xb   :  { %v958_v38 = vld [vmem:[%s1352_s4 + $0x28] ss:$16 sps:$4 sm:$0xff]   ;;  %v959_v39 = vld [vmem:[%s1352_s4 + $0x4] ss:$16 sps:$4 sm:$0xff]   ;;  %v961_v40 = vld [vmem:[%s1352_s4 + $0xc] ss:$16 sps:$4 sm:$0xff]  }
   0xc   :  { %293 = vmatpush1.bf16.msra.mxu0 %v933_v20  ;;  %336 = vmatpush1.bf16.msra.mxu1 %v934_v21  ;;  %v963_v41 = vld [vmem:[%s1352_s4] ss:$16 sps:$4 sm:$0xff]   ;;  %v964_v42 = vld [vmem:[%s1352_s4 + $0x8] ss:$16 sps:$4 sm:$0xff]  }
   0xd   :  { %294 = vmatprep.subr.bf16.mxu0 %v935_v22  ;;  %337 = vmatprep.subr.bf16.mxu1 %v937_v23  ;;  %v805_v51 = vld [vmem:[%s1353_s2] ss:$0 sm:$0xff]  ;;  %v966_v61 = vld [vmem:[%s1355_s6 + $0xf8] sm:$0xff]   ;;  %v971_v2 = vld [vmem:[%s1355_s6 + $0x30] sm:$0xff]  }
   0xe   :  { %v806_v55 = vld [vmem:[%s1354_s3] ss:$0 sm:$0xff]  ;;  %v967_v62 = vld [vmem:[%s1355_s6 + $0x38] sm:$0xff]   ;;  %v972_v3 = vld [vmem:[%s1355_s6 + $0xb0] sm:$0xff]  }
   0xf   :  { %v968_v63 = vld [vmem:[%s1355_s6 + $0xb8] sm:$0xff]   ;;  %v973_v4 = vld [vmem:[%s1355_s6 + $0x68] sm:$0xff]   ;;  %v985_v16 = vld [vmem:[%s1355_s6 + $0x50] sm:$0xff]  }
  0x10   :  { %295 = vmatpush1.bf16.msra.mxu0 %v939_v24  ;;  %338 = vmatpush1.bf16.msra.mxu1 %v940_v25  ;;  %v974_v5 = vld [vmem:[%s1355_s6 + $0xe8] sm:$0xff]   ;;  %v983_v14 = vld [vmem:[%s1355_s6 + $0x18] sm:$0xff]   ;;  %v986_v17 = vld [vmem:[%s1355_s6 + $0xd0] sm:$0xff]  }
  0x11   :  { %296 = vmatprep.subr.bf16.mxu0 %v941_v26  ;;  %339 = vmatprep.subr.bf16.mxu1 %v943_v27  ;;  %v984_v15 = vld [vmem:[%s1355_s6 + $0x98] sm:$0xff]   ;;  %v987_v18 = vld [vmem:[%s1355_s6 + $0x10] sm:$0xff]   ;;  %v989_v20 = vld [vmem:[%s1355_s6 + $0x48] sm:$0xff]  }
  0x12   :  { %v988_v19 = vld [vmem:[%s1355_s6 + $0x90] sm:$0xff]   ;;  %v990_v21 = vld [vmem:[%s1355_s6 + $0xc8] sm:$0xff]   ;;  %v993_v24 = vld [vmem:[%s1355_s6 + $0x40] sm:$0xff]  }
  0x13   :  { %v991_v22 = vld [vmem:[%s1355_s6 + $0x8] sm:$0xff]   ;;  %v994_v25 = vld [vmem:[%s1355_s6 + $0xc0] sm:$0xff]  }
  0x14   :  { %297 = vmatpush1.bf16.msra.mxu0 %v945_v28  ;;  %340 = vmatpush1.bf16.msra.mxu1 %v946_v29  ;;  %v992_v23 = vld [vmem:[%s1355_s6 + $0x88] sm:$0xff]   ;;  %v995_v26 = vld [vmem:[%s1355_s6] sm:$0xff]   ;;  %v108_v28 = vlaneseq }
  0x15   :  { %298 = vmatprep.subr.bf16.mxu0 %v947_v30  ;;  %341 = vmatprep.subr.bf16.mxu1 %v949_v31  ;;  %v996_v27 = vld [vmem:[%s1355_s6 + $0x80] sm:$0xff]  }
  0x16   :  { %v109_v29 = vshrl.u32 %v108_v28, 7 }
  0x18   :  { %299 = vmatpush1.bf16.msra.mxu0 %v951_v32  ;;  %342 = vmatpush1.bf16.msra.mxu1 %v952_v33  ;;  %v110_v30 = vsub.s32 0, %v109_v29  ;;  %v118_v31 = vsub.s32 2, %v109_v29  ;;  %v106_v32 = vld [vmem:[%s1356_s5] sm:$0xf]  ;;  %v114_v33 = vsub.s32 1, %v109_v29 }
  0x19   :  { %300 = vmatprep.subr.bf16.mxu0 %v953_v34  ;;  %343 = vmatprep.subr.bf16.mxu1 %v955_v35  ;;  %v122_v34 = vsub.s32 3, %v109_v29 }
  0x1a   :  { %v111_v35 = vrot.slane %v106_v32, %v110_v30  ;;  %v119_v36 = vrot.slane %v106_v32, %v118_v31 }
  0x1c   :  { %301 = vmatpush1.bf16.msra.mxu0 %v957_v37  ;;  %344 = vmatpush1.bf16.msra.mxu1 %v958_v38  ;;  %v115_v37 = vrot.slane %v106_v32, %v114_v33  ;;  %v123_v38 = vrot.slane %v106_v32, %v122_v34 }
  0x1d   :  { %302 = vmatprep.subr.bf16.mxu0 %v959_v39  ;;  %345 = vmatprep.subr.bf16.mxu1 %v961_v40 }
  0x20   :  { %303 = vmatpush1.bf16.msra.mxu0 %v963_v41  ;;  %346 = vmatpush1.bf16.msra.mxu1 %v964_v42 }
  0x21   :  { %872 = vmatprep.subr.bf16.mxu0 %v965_v60  ;;  %894 = vmatprep.subr.bf16.mxu1 %v966_v61 }
  0x8b   :  { %v33_v6 = vpop.xlane.xlu0 %32 }
  0x8c   :  { %v37_v7 = vmul.f32 0.0078125, %v33_v6  ;;  %v975_v6 = vld [vmem:[%s1355_s6 + $0x28] sm:$0xff]  }
  0x8e   :  { %v1081_v8 = vsub.f32 %v30_v0, %v37_v7  ;;  %v969_v0 = vld [vmem:[%s1355_s6 + $0x70] sm:$0xff]   ;;  %v976_v7 = vld [vmem:[%s1355_s6 + $0xa8] sm:$0xff]  }
  0x8f   :  { %v35_v9 = vpop.xlane.xlu0 %34 }
  0x90   :  { %v38_v10 = vmul.f32 0.0078125, %v35_v9  ;;  %v41_v11 = vmul.f32 %v1081_v8, %v1081_v8  ;;  %v978_v9 = vld [vmem:[%s1355_s6 + $0xe0] sm:$0xff]  }
  0x92   :  { %v1085_v12 = vsub.f32 %v31_v1, %v38_v10  ;;  %43 = vadd.xlane.f32.xlu1 %v41_v11  ;;  %v970_v1 = vld [vmem:[%s1355_s6 + $0xf0] sm:$0xff]   ;;  %v979_v10 = vld [vmem:[%s1355_s6 + $0x20] sm:$0xff]  }
  0x93   :  { %v980_v11 = vld [vmem:[%s1355_s6 + $0xa0] sm:$0xff]  }
  0x94   :  { %v42_v13 = vmul.f32 %v1085_v12, %v1085_v12 }
  0x96   :  { %45 = vadd.xlane.f32.xlu1 %v42_v13  ;;  %v982_v13 = vld [vmem:[%s1355_s6 + $0xd8] sm:$0xff]  }
 0x11b   :  { %v44_v43 = vpop.xlane.xlu1 %43 }
 0x11c   :  { %v47_v44 = vmul.f32 0.0078125, %v44_v43 }
 0x11e   :  { %v49_v45 = vadd.f32 1e-06, %v47_v44 }
 0x11f   :  { %v46_v46 = vpop.xlane.xlu1 %45 }
 0x120   :  { %997 = vrsqrt.f32 %v49_v45  ;;  %v48_v47 = vmul.f32 0.0078125, %v46_v46 }
 0x122   :  { %v50_v48 = vadd.f32 1e-06, %v48_v47 }
 0x124   :  { %999 = vrsqrt.f32 %v50_v48 }
 0x12d   :  { %v998_v49 = vpop.eup %997 }
 0x12e   :  { %v53_v50 = vmul.f32 %v998_v49, %v1081_v8  ;;  %v977_v8 = vld [vmem:[%s1355_s6 + $0x60] sm:$0xff]  }
 0x130   :  { %v62_v54 = vmul.f32 %v805_v51, %v53_v50 }
 0x131   :  { %v1000_v52 = vpop.eup %999 }
 0x132   :  { %v54_v53 = vmul.f32 %v1000_v52, %v1085_v12  ;;  %v71_v57 = vadd.f32 %v806_v55, %v62_v54  ;;  %v981_v12 = vld [vmem:[%s1355_s6 + $0x58] sm:$0xff]  }
 0x134   :  { %v63_v56 = vmul.f32 %v805_v51, %v54_v53 }
 0x136   :  { %v72_v58 = vadd.f32 %v806_v55, %v63_v56 }
 0x138   :  { %v73_v59 = vpack.c.bf16 %v72_v58, %v71_v57 }
 0x13a   :  { %321 = vmatmul.mubr.bf16.vlgmr.msra.gmra.mxu0 %v73_v59  ;;  %364 = vmatmul.mubr.bf16.vlgmr.msra.gmra.mxu1 %v73_v59 }
 0x13b   :  { %873 = vmatpush3.bf16.msra.mxu0 %v967_v62  ;;  %895 = vmatpush3.bf16.msra.mxu1 %v968_v63 }
 0x13c   :  { %874 = vmatprep.subr.bf16.mxu0 %v969_v0  ;;  %896 = vmatprep.subr.bf16.mxu1 %v970_v1 }
 0x13f   :  { %875 = vmatpush3.bf16.msra.mxu0 %v971_v2  ;;  %897 = vmatpush3.bf16.msra.mxu1 %v972_v3 }
 0x140   :  { %876 = vmatprep.subr.bf16.mxu0 %v973_v4  ;;  %898 = vmatprep.subr.bf16.mxu1 %v974_v5 }
 0x143   :  { %877 = vmatpush3.bf16.msra.mxu0 %v975_v6  ;;  %899 = vmatpush3.bf16.msra.mxu1 %v976_v7 }
 0x144   :  { %878 = vmatprep.subr.bf16.mxu0 %v977_v8  ;;  %900 = vmatprep.subr.bf16.mxu1 %v978_v9 }
 0x147   :  { %879 = vmatpush3.bf16.msra.mxu0 %v979_v10  ;;  %901 = vmatpush3.bf16.msra.mxu1 %v980_v11 }
 0x148   :  { %880 = vmatprep.subr.bf16.mxu0 %v981_v12  ;;  %902 = vmatprep.subr.bf16.mxu1 %v982_v13 }
 0x14b   :  { %881 = vmatpush3.bf16.msra.mxu0 %v983_v14  ;;  %903 = vmatpush3.bf16.msra.mxu1 %v984_v15 }
 0x14c   :  { %882 = vmatprep.subr.bf16.mxu0 %v985_v16  ;;  %904 = vmatprep.subr.bf16.mxu1 %v986_v17 }
 0x14f   :  { %883 = vmatpush3.bf16.msra.mxu0 %v987_v18  ;;  %905 = vmatpush3.bf16.msra.mxu1 %v988_v19 }
 0x150   :  { %884 = vmatprep.subr.bf16.mxu0 %v989_v20  ;;  %906 = vmatprep.subr.bf16.mxu1 %v990_v21 }
 0x153   :  { %885 = vmatpush3.bf16.msra.mxu0 %v991_v22  ;;  %907 = vmatpush3.bf16.msra.mxu1 %v992_v23 }
 0x154   :  { %886 = vmatprep.subr.bf16.mxu0 %v993_v24  ;;  %908 = vmatprep.subr.bf16.mxu1 %v994_v25 }
 0x157   :  { %887 = vmatpush3.bf16.msra.mxu0 %v995_v26  ;;  %909 = vmatpush3.bf16.msra.mxu1 %v996_v27 }
 0x1fa   :  { %v322_v39 = vpop.f32.mrf.mxu0  ;;  %v365_v40 = vpop.f32.mrf.mxu1 }
 0x1fb   :  { %v1280_v41 = vadd.f32 %v322_v39, %v111_v35  ;;  %v1282_v42 = vadd.f32 %v365_v40, %v119_v36 }
 0x1fc   :  { %v324_v43 = vpop.f32.mrf.mxu0  ;;  %v367_v44 = vpop.f32.mrf.mxu1 }
 0x1fd   :  { %v374_v45 = vmul.f32 %v1280_v41, %v1280_v41  ;;  %v376_v46 = vmul.f32 %v1282_v42, %v1282_v42  ;;  %v1288_v47 = vadd.f32 %v324_v43, %v115_v37  ;;  %v1290_v48 = vadd.f32 %v367_v44, %v123_v38 }
 0x1fe   :  { %v326_v49 = vpop.f32.mrf.mxu0  ;;  %v369_v50 = vpop.f32.mrf.mxu1 }
 0x1ff   :  { %v382_v51 = vmul.f32 %v374_v45, %v1280_v41  ;;  %v384_v52 = vmul.f32 %v376_v46, %v1282_v42  ;;  %v375_v53 = vmul.f32 %v1288_v47, %v1288_v47  ;;  %v377_v54 = vmul.f32 %v1290_v48, %v1290_v48 }
 0x200   :  { %v1298_v55 = vadd.f32 %v326_v49, %v111_v35  ;;  %v1300_v56 = vadd.f32 %v369_v50, %v119_v36  ;;  %v328_v57 = vpop.f32.mrf.mxu0  ;;  %v371_v58 = vpop.f32.mrf.mxu1 }
 0x201   :  { %v390_v59 = vmul.f32 0.044715, %v382_v51  ;;  %v392_v60 = vmul.f32 0.044715, %v384_v52  ;;  %v383_v61 = vmul.f32 %v375_v53, %v1288_v47  ;;  %v385_v62 = vmul.f32 %v377_v54, %v1290_v48 }
 0x202   :  { %v378_v63 = vmul.f32 %v1298_v55, %v1298_v55  ;;  %v380_v0 = vmul.f32 %v1300_v56, %v1300_v56  ;;  %v1308_v1 = vadd.f32 %v328_v57, %v115_v37  ;;  %v1310_v2 = vadd.f32 %v371_v58, %v123_v38 }
 0x203   :  { %v398_v3 = vadd.f32 %v390_v59, %v1280_v41  ;;  %v400_v4 = vadd.f32 %v392_v60, %v1282_v42  ;;  %v391_v5 = vmul.f32 0.044715, %v383_v61  ;;  %v393_v6 = vmul.f32 0.044715, %v385_v62 }
 0x204   :  { %v386_v7 = vmul.f32 %v378_v63, %v1298_v55  ;;  %v388_v8 = vmul.f32 %v380_v0, %v1300_v56  ;;  %v379_v9 = vmul.f32 %v1308_v1, %v1308_v1  ;;  %v381_v10 = vmul.f32 %v1310_v2, %v1310_v2 }
 0x205   :  { %v406_v11 = vmul.f32 0.7978846, %v398_v3  ;;  %v408_v12 = vmul.f32 0.7978846, %v400_v4  ;;  %v399_v13 = vadd.f32 %v391_v5, %v1288_v47  ;;  %v401_v14 = vadd.f32 %v393_v6, %v1290_v48 }
 0x206   :  { %v394_v15 = vmul.f32 0.044715, %v386_v7  ;;  %v396_v16 = vmul.f32 0.044715, %v388_v8  ;;  %v387_v17 = vmul.f32 %v379_v9, %v1308_v1  ;;  %v389_v18 = vmul.f32 %v381_v10, %v1310_v2 }
 0x207   :  { %1001 = vtanh.f32 %v406_v11  ;;  %v407_v19 = vmul.f32 0.7978846, %v399_v13  ;;  %v409_v20 = vmul.f32 0.7978846, %v401_v14  ;;  %v795_v13 = vld [vmem:[%s1358_s1] sm:$0xff] }
 0x208   :  { %1003 = vtanh.f32 %v408_v12  ;;  %v402_v21 = vadd.f32 %v394_v15, %v1298_v55  ;;  %v404_v22 = vadd.f32 %v396_v16, %v1300_v56  ;;  %v395_v23 = vmul.f32 0.044715, %v387_v17 }
 0x209   :  { %1005 = vtanh.f32 %v407_v19  ;;  %v397_v24 = vmul.f32 0.044715, %v389_v18 }
 0x20a   :  { %1007 = vtanh.f32 %v409_v20  ;;  %v410_v25 = vmul.f32 0.7978846, %v402_v21  ;;  %v412_v26 = vmul.f32 0.7978846, %v404_v22  ;;  %v403_v27 = vadd.f32 %v395_v23, %v1308_v1  ;;  %v796_v21 = vld [vmem:[%s1358_s1 + $0x8] sm:$0xff] }
 0x20b   :  { %v405_v28 = vadd.f32 %v397_v24, %v1310_v2 }
 0x20c   :  { %1009 = vtanh.f32 %v410_v25  ;;  %v411_v29 = vmul.f32 0.7978846, %v403_v27 }
 0x20d   :  { %1011 = vtanh.f32 %v412_v26  ;;  %v413_v30 = vmul.f32 0.7978846, %v405_v28 }
 0x20e   :  { %1013 = vtanh.f32 %v411_v29 }
 0x20f   :  { %1015 = vtanh.f32 %v413_v30 }
 0x214   :  { %v1002_v31 = vpop.eup %1001 }
 0x215   :  { %v1004_v32 = vpop.eup %1003  ;;  %v422_v37 = vadd.f32 1.0, %v1002_v31 }
 0x216   :  { %v1006_v33 = vpop.eup %1005  ;;  %v424_v40 = vadd.f32 1.0, %v1004_v32 }
 0x217   :  { %v1008_v34 = vpop.eup %1007  ;;  %v423_v35 = vadd.f32 1.0, %v1006_v33  ;;  %v430_v52 = vmul.f32 0.5, %v422_v37 }
 0x218   :  { %v425_v38 = vadd.f32 1.0, %v1008_v34  ;;  %v432_v58 = vmul.f32 0.5, %v424_v40 }
 0x219   :  { %v1010_v36 = vpop.eup %1009  ;;  %v431_v51 = vmul.f32 0.5, %v423_v35  ;;  %v438_v3 = vmul.f32 %v430_v52, %v1280_v41  ;;  %v839_v41 = vld [vmem:[%s1357_s7] ss:$0 sm:$0xff] }
 0x21a   :  { %v1012_v39 = vpop.eup %1011  ;;  %v426_v43 = vadd.f32 1.0, %v1010_v36  ;;  %v433_v57 = vmul.f32 0.5, %v425_v38  ;;  %v440_v6 = vmul.f32 %v432_v58, %v1282_v42 }
 0x21b   :  { %v1014_v44 = vpop.eup %1013  ;;  %v428_v45 = vadd.f32 1.0, %v1012_v39  ;;  %v439_v63 = vmul.f32 %v431_v51, %v1288_v47 }
 0x21c   :  { %v1016_v46 = vpop.eup %1015  ;;  %v434_v49 = vmul.f32 0.5, %v426_v43  ;;  %v427_v50 = vadd.f32 1.0, %v1014_v44  ;;  %v441_v4 = vmul.f32 %v433_v57, %v1290_v48 }
 0x21d   :  { %v436_v53 = vmul.f32 0.5, %v428_v45  ;;  %v429_v54 = vadd.f32 1.0, %v1016_v46 }
 0x21e   :  { %v435_v59 = vmul.f32 0.5, %v427_v50  ;;  %v442_v60 = vmul.f32 %v434_v49, %v1298_v55 }
 0x21f   :  { %v437_v61 = vmul.f32 0.5, %v429_v54  ;;  %v444_v62 = vmul.f32 %v436_v53, %v1300_v56 }
 0x220   :  { %v443_v0 = vmul.f32 %v435_v59, %v1308_v1  ;;  %v446_v9 = vpack.c.bf16 %v442_v60, %v438_v3 }
 0x221   :  { %v445_v5 = vmul.f32 %v437_v61, %v1310_v2  ;;  %v448_v55 = vpack.c.bf16 %v444_v62, %v440_v6 }
 0x222   :  { %v447_v7 = vpack.c.bf16 %v443_v0, %v439_v63 }
 0x223   :  { %v449_v8 = vpack.c.bf16 %v445_v5, %v441_v4 }
 0x224   :  { %745 = vmatprep.mubr.bf16.mxu0 %v447_v7 }
 0x225   :  { %786 = vmatprep.mubr.bf16.mxu1 %v449_v8  ;;  %746 = vmatmul.mubr.bf16.vlgmr.msra.gmra.mxu0 %v446_v9 }
 0x226   :  { %787 = vmatmul.mubr.bf16.vlgmr.msra.gmra.mxu1 %v448_v55 }
 0x2e5   :  { %v888_v56 = vpop.f32.mrf.mxu0 }
 0x2e6   :  { %v910_v47 = vpop.f32.mrf.mxu1 }
 0x2e7   :  { %v889_v1 = vpop.f32.mrf.mxu0 }
 0x2e8   :  { %v890_v48 = vadd.f32 %v889_v1, %v888_v56  ;;  %v911_v10 = vpop.f32.mrf.mxu1 }
 0x2e9   :  { %v891_v2 = vpop.f32.mrf.mxu0  ;;  %v912_v42 = vadd.f32 %v911_v10, %v910_v47 }
 0x2ea   :  { %v748_v11 = vadd.f32 %v890_v48, %v839_v41  ;;  %v913_v12 = vpop.f32.mrf.mxu1 }
 0x2eb   :  { %v892_v14 = vpop.f32.mrf.mxu0 }
 0x2ec   :  { %v789_v15 = vadd.f32 %v912_v42, %v748_v11  ;;  %v893_v16 = vadd.f32 %v892_v14, %v891_v2  ;;  %v914_v17 = vpop.f32.mrf.mxu1 }
 0x2ed   :  { %v915_v20 = vadd.f32 %v914_v17, %v913_v12 }
 0x2ee   :  { %v797_v18 = vadd.f32 %v795_v13, %v789_v15  ;;  %v751_v19 = vadd.f32 %v893_v16, %v839_v41 }
 0x2f0   :  { %799 = vst [vmem:[%s1359_s8] sm:$0xff] %v797_v18  ;;  %v792_v22 = vadd.f32 %v915_v20, %v751_v19 }
 0x2f2   :  { %v798_v23 = vadd.f32 %v796_v21, %v792_v22 }
 0x2f4   :  { %800 = vst [vmem:[%s1359_s8 + $0x8] sm:$0xff] %v798_v23 }

// kernel: fpg_forward.15
= control target key start
LH: loop header
LB: loop body
LE: loop exit
PB: predicated region body
PF: predicated region fallthrough
CT: control target
= control target key end

     0   :  { %v1760_v21 = vmov 0   ;;  %s2455_s0 = inlined_call_operand.vmem [shape: f32[16,128], index: 0, kind: input, shape index: {}]   ;;  %s2456_s3 = inlined_call_operand.vmem [shape: bf16[128,256], index: 3, kind: input, shape index: {}]   ;;  %s2457_s5 = inlined_call_operand.vmem [shape: bf16[256,256], index: 5, kind: input, shape index: {}]   ;;  %s2458_s1 = inlined_call_operand.vmem [shape: f32[1,128], index: 1, kind: input, shape index: {}]   ;;  %s2459_s2 = inlined_call_operand.vmem [shape: f32[1,128], index: 2, kind: input, shape index: {}]   ;;  %s2460_s7 = inlined_call_operand.vmem [shape: bf16[256,1024], index: 7, kind: input, shape index: {}]   ;;  %s2461_s4 = inlined_call_operand.vmem [shape: f32[1,256], index: 4, kind: input, shape index: {}]   ;;  %s2462_s6 = inlined_call_operand.vmem [shape: f32[1,256], index: 6, kind: input, shape index: {}]   ;;  %s2463_s8 = inlined_call_operand.vmem [shape: f32[1,1024], index: 8, kind: input, shape index: {}]   ;;  %s2464_s9 = inlined_call_operand.vmem [shape: f32[16,1024], index: 9, kind: output, shape index: {}]  }
   0x1   :  { %v33_v0 = vld [vmem:[%s2455_s0] sm:$0xff]  ;;  %v34_v1 = vld [vmem:[%s2455_s0 + $0x8] sm:$0xff]  ;;  %v1668_v2 = vld [vmem:[%s2456_s3 + $0x74] ss:$8 sps:$4 sm:$0xff]   ;;  %217 = vmatprep.mubr.bf16.mxu0 %v1760_v21 }
   0x2   :  { %35 = vadd.xlane.f32.xlu0 %v33_v0  ;;  %v1670_v3 = vld [vmem:[%s2456_s3 + $0x70] ss:$8 sps:$4 sm:$0xff]   ;;  %185 = vmatprep.subr.bf16.mxu0 %v1668_v2  ;;  %v1671_v12 = vld [vmem:[%s2456_s3 + $0x64] ss:$8 sps:$4 sm:$0xff]   ;;  %v1673_v13 = vld [vmem:[%s2456_s3 + $0x60] ss:$8 sps:$4 sm:$0xff]  }
   0x3   :  { %186 = vmatpush1.bf16.msra.mxu0 %v1670_v3  ;;  %v1674_v14 = vld [vmem:[%s2456_s3 + $0x54] ss:$8 sps:$4 sm:$0xff]   ;;  %v1676_v15 = vld [vmem:[%s2456_s3 + $0x50] ss:$8 sps:$4 sm:$0xff]   ;;  %v1677_v16 = vld [vmem:[%s2456_s3 + $0x44] ss:$8 sps:$4 sm:$0xff]  }
   0x4   :  { %187 = vmatprep.subr.bf16.mxu0 %v1671_v12  ;;  %v1679_v17 = vld [vmem:[%s2456_s3 + $0x40] ss:$8 sps:$4 sm:$0xff]   ;;  %v1680_v18 = vld [vmem:[%s2456_s3 + $0x34] ss:$8 sps:$4 sm:$0xff]   ;;  %v1682_v19 = vld [vmem:[%s2456_s3 + $0x30] ss:$8 sps:$4 sm:$0xff]  }
   0x5   :  { %v1683_v20 = vld [vmem:[%s2456_s3 + $0x24] ss:$8 sps:$4 sm:$0xff]   ;;  %v1685_v22 = vld [vmem:[%s2456_s3 + $0x20] ss:$8 sps:$4 sm:$0xff]   ;;  %v1686_v23 = vld [vmem:[%s2456_s3 + $0x14] ss:$8 sps:$4 sm:$0xff]  }
   0x6   :  { %37 = vadd.xlane.f32.xlu0 %v34_v1  ;;  %v1688_v24 = vld [vmem:[%s2456_s3 + $0x10] ss:$8 sps:$4 sm:$0xff]   ;;  %v1689_v25 = vld [vmem:[%s2456_s3 + $0x4] ss:$8 sps:$4 sm:$0xff]   ;;  %v1691_v26 = vld [vmem:[%s2456_s3] ss:$8 sps:$4 sm:$0xff]  }
   0x7   :  { %188 = vmatpush1.bf16.msra.mxu0 %v1673_v13  ;;  %v1692_v27 = vld [vmem:[%s2457_s5 + $0x74] ss:$8 sps:$4 sm:$0xff]   ;;  %v1694_v28 = vld [vmem:[%s2457_s5 + $0x70] ss:$8 sps:$4 sm:$0xff]   ;;  %v1695_v29 = vld [vmem:[%s2457_s5 + $0x64] ss:$8 sps:$4 sm:$0xff]  }
   0x8   :  { %189 = vmatprep.subr.bf16.mxu0 %v1674_v14  ;;  %438 = vmatprep.subr.bf16.mxu1 %v1692_v27  ;;  %v1697_v30 = vld [vmem:[%s2457_s5 + $0x60] ss:$8 sps:$4 sm:$0xff]   ;;  %v1698_v31 = vld [vmem:[%s2457_s5 + $0x54] ss:$8 sps:$4 sm:$0xff]   ;;  %v1700_v32 = vld [vmem:[%s2457_s5 + $0x50] ss:$8 sps:$4 sm:$0xff]  }
   0x9   :  { %439 = vmatpush1.bf16.msra.mxu1 %v1694_v28  ;;  %v1701_v33 = vld [vmem:[%s2457_s5 + $0x44] ss:$8 sps:$4 sm:$0xff]   ;;  %v1703_v34 = vld [vmem:[%s2457_s5 + $0x40] ss:$8 sps:$4 sm:$0xff]   ;;  %v1704_v35 = vld [vmem:[%s2457_s5 + $0x34] ss:$8 sps:$4 sm:$0xff]  }
   0xa   :  { %440 = vmatprep.subr.bf16.mxu1 %v1695_v29  ;;  %v1706_v36 = vld [vmem:[%s2457_s5 + $0x30] ss:$8 sps:$4 sm:$0xff]   ;;  %v1707_v37 = vld [vmem:[%s2457_s5 + $0x24] ss:$8 sps:$4 sm:$0xff]   ;;  %v1709_v38 = vld [vmem:[%s2457_s5 + $0x20] ss:$8 sps:$4 sm:$0xff]  }
   0xb   :  { %190 = vmatpush1.bf16.msra.mxu0 %v1676_v15  ;;  %v1710_v39 = vld [vmem:[%s2457_s5 + $0x14] ss:$8 sps:$4 sm:$0xff]   ;;  %v1712_v40 = vld [vmem:[%s2457_s5 + $0x10] ss:$8 sps:$4 sm:$0xff]   ;;  %v1713_v41 = vld [vmem:[%s2457_s5 + $0x4] ss:$8 sps:$4 sm:$0xff]  }
   0xc   :  { %191 = vmatprep.subr.bf16.mxu0 %v1677_v16  ;;  %v1715_v42 = vld [vmem:[%s2457_s5] ss:$8 sps:$4 sm:$0xff]   ;;  %v1716_v43 = vld [vmem:[%s2457_s5 + $0xf4] ss:$8 sps:$4 sm:$0xff]   ;;  %v1718_v44 = vld [vmem:[%s2457_s5 + $0xf0] ss:$8 sps:$4 sm:$0xff]  }
   0xd   :  { %441 = vmatpush1.bf16.msra.mxu1 %v1697_v30  ;;  %v1719_v45 = vld [vmem:[%s2457_s5 + $0xe4] ss:$8 sps:$4 sm:$0xff]   ;;  %v1721_v46 = vld [vmem:[%s2457_s5 + $0xe0] ss:$8 sps:$4 sm:$0xff]  }
   0xe   :  { %442 = vmatprep.subr.bf16.mxu1 %v1698_v31  ;;  %v1489_v55 = vld [vmem:[%s2458_s1] ss:$0 sm:$0xff]  ;;  %v1725_v2 = vld [vmem:[%s2457_s5 + $0xc4] ss:$8 sps:$4 sm:$0xff]  }
   0xf   :  { %192 = vmatpush1.bf16.msra.mxu0 %v1679_v17  ;;  %v1490_v59 = vld [vmem:[%s2459_s2] ss:$0 sm:$0xff]  ;;  %v1986_v14 = vld [vmem:[%s2460_s7 + $0x1c8] sm:$0xff] }
  0x10   :  { %193 = vmatprep.subr.bf16.mxu0 %v1680_v18  ;;  %v1727_v3 = vld [vmem:[%s2457_s5 + $0xc0] ss:$8 sps:$4 sm:$0xff]  }
  0x11   :  { %443 = vmatpush1.bf16.msra.mxu1 %v1700_v32  ;;  %v543_v12 = vld [vmem:[%s2460_s7 + $0x1c0] sm:$0xff]  ;;  %v1991_v17 = vld [vmem:[%s2460_s7 + $0x1e8] sm:$0xff] }
  0x12   :  { %444 = vmatprep.subr.bf16.mxu1 %v1701_v33  ;;  %v547_v13 = vld [vmem:[%s2460_s7 + $0x1e0] sm:$0xff]  ;;  %v1598_v21 = vcombine.high %v1986_v14, %v1991_v17 }
  0x13   :  { %194 = vmatpush1.bf16.msra.mxu0 %v1682_v19  ;;  %v1595_v15 = vcombine.low %v543_v12, %v547_v13  ;;  %v1596_v16 = vcombine.high %v543_v12, %v547_v13  ;;  %v535_v18 = vld [vmem:[%s2460_s7 + $0x180] sm:$0xff] }
  0x14   :  { %195 = vmatprep.subr.bf16.mxu0 %v1683_v20  ;;  %v539_v19 = vld [vmem:[%s2460_s7 + $0x1a0] sm:$0xff]  ;;  %v1597_v20 = vcombine.low %v1986_v14, %v1991_v17  ;;  %v512_v14 = vld [vmem:[%s2460_s7 + $0xc8] sm:$0xff] }
  0x15   :  { %445 = vmatpush1.bf16.msra.mxu1 %v1703_v34  ;;  %v519_v28 = vld [vmem:[%s2460_s7 + $0x100] sm:$0xff]  ;;  %v516_v17 = vld [vmem:[%s2460_s7 + $0xe8] sm:$0xff] }
  0x16   :  { %446 = vmatprep.subr.bf16.mxu1 %v1704_v35  ;;  %v523_v29 = vld [vmem:[%s2460_s7 + $0x120] sm:$0xff] }
  0x17   :  { %196 = vmatpush1.bf16.msra.mxu0 %v1685_v22  ;;  %v1588_v22 = vcombine.high %v535_v18, %v539_v19  ;;  %v1572_v30 = vcombine.high %v519_v28, %v523_v29  ;;  %v1571_v31 = vcombine.low %v519_v28, %v523_v29  ;;  %v511_v32 = vld [vmem:[%s2460_s7 + $0xc0] sm:$0xff]  ;;  %v504_v28 = vld [vmem:[%s2460_s7 + $0x88] sm:$0xff] }
  0x18   :  { %197 = vmatprep.subr.bf16.mxu0 %v1686_v23  ;;  %v1587_v23 = vcombine.low %v535_v18, %v539_v19  ;;  %v515_v33 = vld [vmem:[%s2460_s7 + $0xe0] sm:$0xff]  ;;  %v528_v18 = vld [vmem:[%s2460_s7 + $0x148] sm:$0xff] }
  0x19   :  { %447 = vmatpush1.bf16.msra.mxu1 %v1706_v36  ;;  %v1564_v34 = vcombine.high %v511_v32, %v515_v33  ;;  %v1563_v35 = vcombine.low %v511_v32, %v515_v33  ;;  %v503_v36 = vld [vmem:[%s2460_s7 + $0x80] sm:$0xff]  ;;  %v532_v19 = vld [vmem:[%s2460_s7 + $0x168] sm:$0xff] }
  0x1a   :  { %448 = vmatprep.subr.bf16.mxu1 %v1707_v37  ;;  %v507_v37 = vld [vmem:[%s2460_s7 + $0xa0] sm:$0xff]  ;;  %v508_v29 = vld [vmem:[%s2460_s7 + $0xa8] sm:$0xff] }
  0x1b   :  { %198 = vmatpush1.bf16.msra.mxu0 %v1688_v24  ;;  %v527_v24 = vld [vmem:[%s2460_s7 + $0x140] sm:$0xff]  ;;  %v496_v32 = vld [vmem:[%s2460_s7 + $0x48] sm:$0xff] }
  0x1c   :  { %199 = vmatprep.subr.bf16.mxu0 %v1689_v25  ;;  %v531_v25 = vld [vmem:[%s2460_s7 + $0x160] sm:$0xff]  ;;  %v500_v33 = vld [vmem:[%s2460_s7 + $0x68] sm:$0xff] }
  0x1d   :  { %449 = vmatpush1.bf16.msra.mxu1 %v1709_v38  ;;  %v1579_v27 = vcombine.low %v527_v24, %v531_v25  ;;  %v1556_v38 = vcombine.high %v503_v36, %v507_v37 }
  0x1e   :  { %450 = vmatprep.subr.bf16.mxu1 %v1710_v39  ;;  %v1555_v39 = vcombine.low %v503_v36, %v507_v37  ;;  %v488_v36 = vld [vmem:[%s2460_s7 + $0x8] sm:$0xff] }
  0x1f   :  { %200 = vmatpush1.bf16.msra.mxu0 %v1691_v26  ;;  %v1580_v26 = vcombine.high %v527_v24, %v531_v25  ;;  %v524_v24 = vld [vmem:[%s2460_s7 + $0x128] sm:$0xff]  ;;  %v1581_v25 = vcombine.low %v528_v18, %v532_v19 }
  0x20   :  { %1297 = vmatprep.subr.bf16.mxu0 %v1596_v16  ;;  %v492_v37 = vld [vmem:[%s2460_s7 + $0x28] sm:$0xff] }
  0x21   :  { %451 = vmatpush1.bf16.msra.mxu1 %v1712_v40  ;;  %v495_v40 = vld [vmem:[%s2460_s7 + $0x40] sm:$0xff] }
  0x22   :  { %452 = vmatprep.subr.bf16.mxu1 %v1713_v41  ;;  %v499_v41 = vld [vmem:[%s2460_s7 + $0x60] sm:$0xff] }
  0x25   :  { %453 = vmatpush1.bf16.msra.mxu1 %v1715_v42  ;;  %v1548_v42 = vcombine.high %v495_v40, %v499_v41 }
  0x26   :  { %454 = vmatprep.subr.bf16.mxu1 %v1716_v43  ;;  %v1547_v43 = vcombine.low %v495_v40, %v499_v41  ;;  %v608_v40 = vld [vmem:[%s2460_s7 + $0x3c8] sm:$0xff] }
  0x27   :  { %v612_v41 = vld [vmem:[%s2460_s7 + $0x3e8] sm:$0xff] }
  0x29   :  { %455 = vmatpush2.bf16.msra.mxu1 %v1718_v44  ;;  %v487_v44 = vld [vmem:[%s2460_s7] sm:$0xff] }
  0x2a   :  { %456 = vmatprep.subr.bf16.mxu1 %v1719_v45  ;;  %v491_v45 = vld [vmem:[%s2460_s7 + $0x20] sm:$0xff] }
  0x2d   :  { %457 = vmatpush2.bf16.msra.mxu1 %v1721_v46  ;;  %v1540_v46 = vcombine.high %v487_v44, %v491_v45 }
  0x8b   :  { %v36_v4 = vpop.xlane.xlu0 %35 }
  0x8c   :  { %v40_v5 = vmul.f32 0.0078125, %v36_v4  ;;  %v1728_v4 = vld [vmem:[%s2457_s5 + $0xb4] ss:$8 sps:$4 sm:$0xff]  }
  0x8e   :  { %v1823_v6 = vsub.f32 %v33_v0, %v40_v5  ;;  %v1722_v0 = vld [vmem:[%s2457_s5 + $0xd4] ss:$8 sps:$4 sm:$0xff]   ;;  %v1730_v5 = vld [vmem:[%s2457_s5 + $0xb0] ss:$8 sps:$4 sm:$0xff]  }
  0x8f   :  { %v38_v7 = vpop.xlane.xlu0 %37  ;;  %458 = vmatprep.subr.bf16.mxu1 %v1722_v0 }
  0x90   :  { %v41_v8 = vmul.f32 0.0078125, %v38_v7  ;;  %v44_v9 = vmul.f32 %v1823_v6, %v1823_v6  ;;  %v1733_v7 = vld [vmem:[%s2457_s5 + $0xa0] ss:$8 sps:$4 sm:$0xff]  }
  0x92   :  { %v1827_v10 = vsub.f32 %v34_v1, %v41_v8  ;;  %46 = vadd.xlane.f32.xlu1 %v44_v9  ;;  %v1724_v1 = vld [vmem:[%s2457_s5 + $0xd0] ss:$8 sps:$4 sm:$0xff]   ;;  %v1734_v8 = vld [vmem:[%s2457_s5 + $0x94] ss:$8 sps:$4 sm:$0xff]  }
  0x93   :  { %459 = vmatpush2.bf16.msra.mxu1 %v1724_v1  ;;  %v1736_v9 = vld [vmem:[%s2457_s5 + $0x90] ss:$8 sps:$4 sm:$0xff]  }
  0x94   :  { %v45_v11 = vmul.f32 %v1827_v10, %v1827_v10  ;;  %460 = vmatprep.subr.bf16.mxu1 %v1725_v2 }
  0x96   :  { %48 = vadd.xlane.f32.xlu1 %v45_v11  ;;  %v1739_v11 = vld [vmem:[%s2457_s5 + $0x80] ss:$8 sps:$4 sm:$0xff]  }
  0x97   :  { %461 = vmatpush2.bf16.msra.mxu1 %v1727_v3 }
  0x98   :  { %462 = vmatprep.subr.bf16.mxu1 %v1728_v4 }
  0x9b   :  { %463 = vmatpush2.bf16.msra.mxu1 %v1730_v5 }
 0x11b   :  { %v47_v47 = vpop.xlane.xlu1 %46 }
 0x11c   :  { %v50_v48 = vmul.f32 0.0078125, %v47_v47  ;;  %v1539_v47 = vcombine.low %v487_v44, %v491_v45  ;;  %v600_v44 = vld [vmem:[%s2460_s7 + $0x388] sm:$0xff] }
 0x11d   :  { %v604_v45 = vld [vmem:[%s2460_s7 + $0x3a8] sm:$0xff] }
 0x11e   :  { %v52_v49 = vadd.f32 1e-06, %v50_v48  ;;  %v607_v48 = vld [vmem:[%s2460_s7 + $0x3c0] sm:$0xff] }
 0x11f   :  { %v49_v50 = vpop.xlane.xlu1 %48 }
 0x120   :  { %1740 = vrsqrt.f32 %v52_v49  ;;  %v51_v51 = vmul.f32 0.0078125, %v49_v50  ;;  %v611_v49 = vld [vmem:[%s2460_s7 + $0x3e0] sm:$0xff] }
 0x121   :  { %v1660_v50 = vcombine.high %v607_v48, %v611_v49 }
 0x122   :  { %v53_v52 = vadd.f32 1e-06, %v51_v51  ;;  %v1659_v51 = vcombine.low %v607_v48, %v611_v49  ;;  %v1653_v48 = vcombine.low %v600_v44, %v604_v45  ;;  %v591_v49 = vld [vmem:[%s2460_s7 + $0x340] sm:$0xff] }
 0x124   :  { %1742 = vrsqrt.f32 %v53_v52  ;;  %v599_v52 = vld [vmem:[%s2460_s7 + $0x380] sm:$0xff] }
 0x12d   :  { %v1741_v53 = vpop.eup %1740 }
 0x12e   :  { %v56_v54 = vmul.f32 %v1741_v53, %v1823_v6  ;;  %v1731_v6 = vld [vmem:[%s2457_s5 + $0xa4] ss:$8 sps:$4 sm:$0xff]  }
 0x12f   :  { %464 = vmatprep.subr.bf16.mxu1 %v1731_v6  ;;  %v603_v53 = vld [vmem:[%s2460_s7 + $0x3a0] sm:$0xff] }
 0x130   :  { %v65_v58 = vmul.f32 %v1489_v55, %v56_v54  ;;  %465 = vmatpush2.bf16.msra.mxu1 %v1733_v7  ;;  %v1652_v54 = vcombine.high %v599_v52, %v603_v53 }
 0x131   :  { %v1743_v56 = vpop.eup %1742  ;;  %466 = vmatprep.subr.bf16.mxu1 %v1734_v8 }
 0x132   :  { %v57_v57 = vmul.f32 %v1743_v56, %v1827_v10  ;;  %v74_v61 = vadd.f32 %v1490_v59, %v65_v58  ;;  %v1737_v10 = vld [vmem:[%s2457_s5 + $0x84] ss:$8 sps:$4 sm:$0xff]   ;;  %v95_v56 = vlaneseq }
 0x134   :  { %v66_v60 = vmul.f32 %v1489_v55, %v57_v57  ;;  %467 = vmatpush2.bf16.msra.mxu1 %v1736_v9  ;;  %v1651_v55 = vcombine.low %v599_v52, %v603_v53  ;;  %v2051_v57 = vshrl.u32 %v95_v56, 7  ;;  %v536_v9 = vld [vmem:[%s2460_s7 + $0x188] sm:$0xff] }
 0x135   :  { %468 = vmatprep.subr.bf16.mxu1 %v1737_v10  ;;  %v540_v10 = vld [vmem:[%s2460_s7 + $0x1a8] sm:$0xff] }
 0x136   :  { %v75_v62 = vadd.f32 %v1490_v59, %v66_v60  ;;  %v2054_v58 = vsub.s32 1, %v2051_v57  ;;  %v93_v59 = vld [vmem:[%s2461_s4] sm:$0x3]  ;;  %v2060_v60 = vsub.s32 0, %v2051_v57  ;;  %v1590_v16 = vcombine.high %v536_v9, %v540_v10  ;;  %v596_v53 = vld [vmem:[%s2460_s7 + $0x368] sm:$0xff] }
 0x138   :  { %v76_v63 = vpack.c.bf16 %v75_v62, %v74_v61  ;;  %469 = vmatpush2.bf16.msra.mxu1 %v1739_v11  ;;  %v102_v61 = vrot.slane %v93_v59, %v2054_v58 }
 0x139   :  { %1340 = vmatprep.subr.bf16.mxu1 %v1598_v21  ;;  %v1589_v21 = vcombine.low %v536_v9, %v540_v10 }
 0x13a   :  { %218 = vmatmul.mubr.bf16.vlgmr.msra.gmra.mxu0 %v76_v63  ;;  %v98_v63 = vrot.slane %v93_v59, %v2060_v60  ;;  %v583_v59 = vld [vmem:[%s2460_s7 + $0x300] sm:$0xff] }
 0x13b   :  { %1298 = vmatpush1.bf16.msra.mxu0 %v1595_v15 }
 0x13c   :  { %1299 = vmatprep.subr.bf16.mxu0 %v1588_v22  ;;  %v1582_v22 = vcombine.high %v528_v18, %v532_v19  ;;  %v572_v19 = vld [vmem:[%s2460_s7 + $0x2a8] sm:$0xff] }
 0x13f   :  { %1300 = vmatpush1.bf16.msra.mxu0 %v1587_v23  ;;  %v520_v23 = vld [vmem:[%s2460_s7 + $0x108] sm:$0xff] }
 0x140   :  { %1301 = vmatprep.subr.bf16.mxu0 %v1580_v26  ;;  %v1574_v26 = vcombine.high %v520_v23, %v524_v24 }
 0x143   :  { %1302 = vmatpush1.bf16.msra.mxu0 %v1579_v27  ;;  %v1566_v27 = vcombine.high %v512_v14, %v516_v17 }
 0x144   :  { %1303 = vmatprep.subr.bf16.mxu0 %v1572_v30  ;;  %v1565_v30 = vcombine.low %v512_v14, %v516_v17  ;;  %v564_v14 = vld [vmem:[%s2460_s7 + $0x268] sm:$0xff] }
 0x147   :  { %1304 = vmatpush1.bf16.msra.mxu0 %v1571_v31  ;;  %v1558_v31 = vcombine.high %v504_v28, %v508_v29 }
 0x148   :  { %1305 = vmatprep.subr.bf16.mxu0 %v1564_v34  ;;  %v1557_v34 = vcombine.low %v504_v28, %v508_v29  ;;  %v552_v28 = vld [vmem:[%s2460_s7 + $0x208] sm:$0xff] }
 0x149   :  { %v556_v29 = vld [vmem:[%s2460_s7 + $0x228] sm:$0xff] }
 0x14b   :  { %1306 = vmatpush1.bf16.msra.mxu0 %v1563_v35  ;;  %v1550_v35 = vcombine.high %v496_v32, %v500_v33 }
 0x14c   :  { %1307 = vmatprep.subr.bf16.mxu0 %v1556_v38  ;;  %v1549_v38 = vcombine.low %v496_v32, %v500_v33  ;;  %v1606_v33 = vcombine.high %v552_v28, %v556_v29 }
 0x14f   :  { %1308 = vmatpush1.bf16.msra.mxu0 %v1555_v39  ;;  %v1542_v39 = vcombine.high %v488_v36, %v492_v37 }
 0x150   :  { %1309 = vmatprep.subr.bf16.mxu0 %v1548_v42  ;;  %v1541_v42 = vcombine.low %v488_v36, %v492_v37  ;;  %v545_v36 = vld [vmem:[%s2460_s7 + $0x1d0] sm:$0xff] }
 0x151   :  { %v549_v37 = vld [vmem:[%s2460_s7 + $0x1f0] sm:$0xff] }
 0x153   :  { %1310 = vmatpush1.bf16.msra.mxu0 %v1547_v43  ;;  %v1662_v43 = vcombine.high %v608_v40, %v612_v41 }
 0x154   :  { %1311 = vmatprep.subr.bf16.mxu0 %v1540_v46  ;;  %v1661_v46 = vcombine.low %v608_v40, %v612_v41  ;;  %v550_v40 = vld [vmem:[%s2460_s7 + $0x1f8] sm:$0xff]  ;;  %v1599_v41 = vcombine.low %v545_v36, %v549_v37 }
 0x157   :  { %1312 = vmatpush1.bf16.msra.mxu0 %v1539_v47  ;;  %v1654_v47 = vcombine.high %v600_v44, %v604_v45  ;;  %v266_v44 = vld [vmem:[%s2462_s6] sm:$0x3] }
 0x158   :  { %1313 = vmatprep.subr.bf16.mxu0 %v1660_v50  ;;  %v595_v50 = vld [vmem:[%s2460_s7 + $0x360] sm:$0xff]  ;;  %v275_v45 = vrot.slane %v266_v44, %v2054_v58 }
 0x159   :  { %v1644_v52 = vcombine.high %v591_v49, %v595_v50 }
 0x15b   :  { %1314 = vmatpush2.bf16.msra.mxu0 %v1659_v51  ;;  %v592_v51 = vld [vmem:[%s2460_s7 + $0x348] sm:$0xff] }
 0x15c   :  { %1315 = vmatprep.subr.bf16.mxu0 %v1652_v54  ;;  %v1643_v54 = vcombine.low %v591_v49, %v595_v50  ;;  %v1646_v56 = vcombine.high %v592_v51, %v596_v53 }
 0x15f   :  { %1316 = vmatpush2.bf16.msra.mxu0 %v1651_v55  ;;  %v1645_v55 = vcombine.low %v592_v51, %v596_v53 }
 0x160   :  { %1317 = vmatprep.subr.bf16.mxu0 %v1644_v52 }
 0x163   :  { %1318 = vmatpush2.bf16.msra.mxu0 %v1643_v54 }
 0x1fa   :  { %v219_v62 = vpop.f32.mrf.mxu0 }
 0x1fb   :  { %v220_v4 = vadd.f32 %v219_v62, %v98_v63  ;;  %v584_v62 = vld [vmem:[%s2460_s7 + $0x308] sm:$0xff] }
 0x1fc   :  { %v221_v0 = vpop.f32.mrf.mxu0 }
 0x1fd   :  { %v222_v1 = vadd.f32 %v221_v0, %v102_v61  ;;  %v588_v0 = vld [vmem:[%s2460_s7 + $0x328] sm:$0xff] }
 0x1fe   :  { %v223_v2 = vpop.f32.mrf.mxu0 }
 0x1ff   :  { %v224_v3 = vadd.f32 %v223_v2, %v98_v63  ;;  %1744 = vtanh.f32 %v222_v1  ;;  %v1637_v2 = vcombine.low %v584_v62, %v588_v0 }
 0x200   :  { %v225_v5 = vpop.f32.mrf.mxu0 }
 0x201   :  { %v226_v6 = vadd.f32 %v225_v5, %v102_v61  ;;  %1746 = vtanh.f32 %v224_v3  ;;  %v587_v61 = vld [vmem:[%s2460_s7 + $0x320] sm:$0xff]  ;;  %v1638_v3 = vcombine.high %v584_v62, %v588_v0  ;;  %v541_v62 = vld [vmem:[%s2460_s7 + $0x1b0] sm:$0xff]  ;;  %v542_v0 = vld [vmem:[%s2460_s7 + $0x1b8] sm:$0xff] }
 0x202   :  { %v1636_v63 = vcombine.high %v583_v59, %v587_v61  ;;  %v1635_v1 = vcombine.low %v583_v59, %v587_v61  ;;  %v579_v5 = vld [vmem:[%s2460_s7 + $0x2e0] sm:$0xff]  ;;  %v537_v59 = vld [vmem:[%s2460_s7 + $0x190] sm:$0xff] }
 0x203   :  { %1748 = vtanh.f32 %v226_v6  ;;  %v576_v6 = vld [vmem:[%s2460_s7 + $0x2c8] sm:$0xff] }
 0x204   :  { %1750 = vtanh.f32 %v220_v4  ;;  %1319 = vmatprep.subr.bf16.mxu0 %v1636_v63  ;;  %v575_v4 = vld [vmem:[%s2460_s7 + $0x2c0] sm:$0xff]  ;;  %v538_v63 = vld [vmem:[%s2460_s7 + $0x198] sm:$0xff] }
 0x205   :  { %1320 = vmatpush2.bf16.msra.mxu0 %v1635_v1  ;;  %v1627_v9 = vcombine.low %v575_v4, %v579_v5 }
 0x20c   :  { %v1745_v7 = vpop.eup %1744 }
 0x20e   :  { %v1747_v8 = vpop.eup %1746 }
 0x210   :  { %v1749_v11 = vpop.eup %1748 }
 0x211   :  { %v1751_v12 = vpop.eup %1750  ;;  %v233_v13 = vpack.c.bf16 %v1749_v11, %v1745_v7  ;;  %v1628_v7 = vcombine.high %v575_v4, %v579_v5  ;;  %v529_v4 = vld [vmem:[%s2460_s7 + $0x150] sm:$0xff]  ;;  %v1592_v5 = vcombine.high %v537_v59, %v541_v62 }
 0x212   :  { %v232_v15 = vpack.c.bf16 %v1747_v8, %v1751_v12  ;;  %v580_v8 = vld [vmem:[%s2460_s7 + $0x2e8] sm:$0xff]  ;;  %v567_v12 = vld [vmem:[%s2460_s7 + $0x280] sm:$0xff] }
 0x213   :  { %470 = vmatprep.mubr.bf16.mxu1 %v233_v13  ;;  %v1629_v10 = vcombine.low %v576_v6, %v580_v8  ;;  %v1630_v11 = vcombine.high %v576_v6, %v580_v8  ;;  %1321 = vmatprep.subr.bf16.mxu0 %v1628_v7  ;;  %v571_v13 = vld [vmem:[%s2460_s7 + $0x2a0] sm:$0xff]  ;;  %v1594_v6 = vcombine.high %v538_v63, %v542_v0  ;;  %v533_v7 = vld [vmem:[%s2460_s7 + $0x170] sm:$0xff]  ;;  %v530_v8 = vld [vmem:[%s2460_s7 + $0x158] sm:$0xff] }
 0x214   :  { %471 = vmatmul.mubr.bf16.vlgmr.msra.gmra.mxu1 %v232_v15  ;;  %v568_v15 = vld [vmem:[%s2460_s7 + $0x288] sm:$0xff]  ;;  %1322 = vmatpush2.bf16.msra.mxu0 %v1627_v9  ;;  %v1620_v18 = vcombine.high %v567_v12, %v571_v13  ;;  %v534_v9 = vld [vmem:[%s2460_s7 + $0x178] sm:$0xff] }
 0x215   :  { %1341 = vmatpush1.bf16.msra.mxu1 %v1597_v20  ;;  %v1573_v20 = vcombine.low %v520_v23, %v524_v24  ;;  %v1621_v23 = vcombine.low %v568_v15, %v572_v19  ;;  %v1622_v24 = vcombine.high %v568_v15, %v572_v19  ;;  %v521_v15 = vld [vmem:[%s2460_s7 + $0x110] sm:$0xff]  ;;  %v526_v19 = vld [vmem:[%s2460_s7 + $0x138] sm:$0xff] }
 0x216   :  { %1342 = vmatprep.subr.bf16.mxu1 %v1590_v16  ;;  %v1619_v16 = vcombine.low %v567_v12, %v571_v13  ;;  %1323 = vmatprep.subr.bf16.mxu0 %v1620_v18  ;;  %v1584_v12 = vcombine.high %v529_v4, %v533_v7  ;;  %v1586_v13 = vcombine.high %v530_v8, %v534_v9  ;;  %v522_v18 = vld [vmem:[%s2460_s7 + $0x118] sm:$0xff] }
 0x218   :  { %1324 = vmatpush2.bf16.msra.mxu0 %v1619_v16  ;;  %v525_v16 = vld [vmem:[%s2460_s7 + $0x130] sm:$0xff] }
 0x219   :  { %1343 = vmatpush1.bf16.msra.mxu1 %v1589_v21  ;;  %v559_v21 = vld [vmem:[%s2460_s7 + $0x240] sm:$0xff] }
 0x21a   :  { %1344 = vmatprep.subr.bf16.mxu1 %v1582_v22  ;;  %v563_v22 = vld [vmem:[%s2460_s7 + $0x260] sm:$0xff] }
 0x21d   :  { %1345 = vmatpush1.bf16.msra.mxu1 %v1581_v25  ;;  %v1612_v25 = vcombine.high %v559_v21, %v563_v22 }
 0x21e   :  { %1346 = vmatprep.subr.bf16.mxu1 %v1574_v26  ;;  %v560_v26 = vld [vmem:[%s2460_s7 + $0x248] sm:$0xff] }
 0x21f   :  { %v1614_v17 = vcombine.high %v560_v26, %v564_v14  ;;  %1325 = vmatprep.subr.bf16.mxu0 %v1612_v25  ;;  %v513_v25 = vld [vmem:[%s2460_s7 + $0xd0] sm:$0xff] }
 0x221   :  { %1347 = vmatpush1.bf16.msra.mxu1 %v1573_v20  ;;  %v551_v20 = vld [vmem:[%s2460_s7 + $0x200] sm:$0xff] }
 0x222   :  { %1348 = vmatprep.subr.bf16.mxu1 %v1566_v27  ;;  %v555_v27 = vld [vmem:[%s2460_s7 + $0x220] sm:$0xff] }
 0x223   :  { %v1604_v32 = vcombine.high %v551_v20, %v555_v27 }
 0x225   :  { %1349 = vmatpush1.bf16.msra.mxu1 %v1565_v30  ;;  %v1611_v30 = vcombine.low %v559_v21, %v563_v22  ;;  %v1583_v21 = vcombine.low %v529_v4, %v533_v7  ;;  %v1585_v22 = vcombine.low %v530_v8, %v534_v9  ;;  %v602_v4 = vld [vmem:[%s2460_s7 + $0x398] sm:$0xff] }
 0x226   :  { %1350 = vmatprep.subr.bf16.mxu1 %v1558_v31  ;;  %v1613_v31 = vcombine.low %v560_v26, %v564_v14  ;;  %v517_v26 = vld [vmem:[%s2460_s7 + $0xf0] sm:$0xff]  ;;  %v514_v14 = vld [vmem:[%s2460_s7 + $0xd8] sm:$0xff] }
 0x227   :  { %1326 = vmatpush2.bf16.msra.mxu0 %v1611_v30  ;;  %v505_v30 = vld [vmem:[%s2460_s7 + $0x90] sm:$0xff] }
 0x228   :  { %1327 = vmatprep.subr.bf16.mxu0 %v1604_v32  ;;  %v506_v32 = vld [vmem:[%s2460_s7 + $0x98] sm:$0xff] }
 0x229   :  { %1351 = vmatpush1.bf16.msra.mxu1 %v1557_v34  ;;  %v1603_v34 = vcombine.low %v551_v20, %v555_v27  ;;  %v1575_v20 = vcombine.low %v521_v15, %v525_v16  ;;  %v1577_v27 = vcombine.low %v522_v18, %v526_v19 }
 0x22a   :  { %1352 = vmatprep.subr.bf16.mxu1 %v1550_v35  ;;  %v1605_v35 = vcombine.low %v552_v28, %v556_v29  ;;  %v1568_v28 = vcombine.high %v513_v25, %v517_v26 }
 0x22b   :  { %1328 = vmatpush2.bf16.msra.mxu0 %v1603_v34  ;;  %v1567_v34 = vcombine.low %v513_v25, %v517_v26 }
 0x22d   :  { %1353 = vmatpush1.bf16.msra.mxu1 %v1549_v38  ;;  %v546_v38 = vld [vmem:[%s2460_s7 + $0x1d8] sm:$0xff] }
 0x22e   :  { %1354 = vmatprep.subr.bf16.mxu1 %v1542_v39  ;;  %v1600_v39 = vcombine.high %v545_v36, %v549_v37 }
 0x230   :  { %1383 = vmatprep.subr.bf16.mxu0 %v1600_v39  ;;  %v501_v39 = vld [vmem:[%s2460_s7 + $0x70] sm:$0xff] }
 0x231   :  { %1355 = vmatpush1.bf16.msra.mxu1 %v1541_v42  ;;  %v1601_v42 = vcombine.low %v546_v38, %v550_v40 }
 0x232   :  { %1356 = vmatprep.subr.bf16.mxu1 %v1662_v43  ;;  %v1602_v43 = vcombine.high %v546_v38, %v550_v40  ;;  %v497_v38 = vld [vmem:[%s2460_s7 + $0x50] sm:$0xff]  ;;  %v498_v40 = vld [vmem:[%s2460_s7 + $0x58] sm:$0xff] }
 0x235   :  { %1357 = vmatpush2.bf16.msra.mxu1 %v1661_v46 }
 0x236   :  { %1358 = vmatprep.subr.bf16.mxu1 %v1654_v47  ;;  %v271_v47 = vrot.slane %v266_v44, %v2060_v60  ;;  %v1552_v44 = vcombine.high %v497_v38, %v501_v39 }
 0x239   :  { %1359 = vmatpush2.bf16.msra.mxu1 %v1653_v48 }
 0x23a   :  { %1360 = vmatprep.subr.bf16.mxu1 %v1646_v56 }
 0x23d   :  { %1361 = vmatpush2.bf16.msra.mxu1 %v1645_v55 }
 0x23e   :  { %1362 = vmatprep.subr.bf16.mxu1 %v1638_v3 }
 0x241   :  { %1363 = vmatpush2.bf16.msra.mxu1 %v1637_v2 }
 0x242   :  { %1364 = vmatprep.subr.bf16.mxu1 %v1630_v11  ;;  %v1593_v11 = vcombine.low %v538_v63, %v542_v0 }
 0x245   :  { %1365 = vmatpush2.bf16.msra.mxu1 %v1629_v10  ;;  %v1591_v10 = vcombine.low %v537_v59, %v541_v62  ;;  %v614_v59 = vld [vmem:[%s2460_s7 + $0x3f8] sm:$0xff] }
 0x246   :  { %1366 = vmatprep.subr.bf16.mxu1 %v1622_v24  ;;  %v1578_v24 = vcombine.high %v522_v18, %v526_v19 }
 0x249   :  { %1367 = vmatpush2.bf16.msra.mxu1 %v1621_v23  ;;  %v1576_v23 = vcombine.high %v521_v15, %v525_v16 }
 0x24a   :  { %1368 = vmatprep.subr.bf16.mxu1 %v1614_v17  ;;  %v518_v17 = vld [vmem:[%s2460_s7 + $0xf8] sm:$0xff] }
 0x24b   :  { %v1570_v29 = vcombine.high %v514_v14, %v518_v17 }
 0x24d   :  { %1369 = vmatpush2.bf16.msra.mxu1 %v1613_v31  ;;  %v509_v31 = vld [vmem:[%s2460_s7 + $0xb0] sm:$0xff] }
 0x24e   :  { %1370 = vmatprep.subr.bf16.mxu1 %v1606_v33  ;;  %v510_v33 = vld [vmem:[%s2460_s7 + $0xb8] sm:$0xff]  ;;  %v1560_v36 = vcombine.high %v505_v30, %v509_v31 }
 0x24f   :  { %v1562_v37 = vcombine.high %v506_v32, %v510_v33 }
 0x251   :  { %1371 = vmatpush2.bf16.msra.mxu1 %v1605_v35  ;;  %v1569_v35 = vcombine.low %v514_v14, %v518_v17 }
 0x252   :  { %1426 = vmatprep.subr.bf16.mxu1 %v1602_v43  ;;  %v1561_v43 = vcombine.low %v506_v32, %v510_v33 }
 0x2d4   :  { %v472_v46 = vpop.f32.mrf.mxu1 }
 0x2d5   :  { %v473_v52 = vadd.f32 %v472_v46, %v271_v47  ;;  %v489_v46 = vld [vmem:[%s2460_s7 + $0x10] sm:$0xff] }
 0x2d6   :  { %v474_v48 = vpop.f32.mrf.mxu1 }
 0x2d7   :  { %v475_v49 = vadd.f32 %v474_v48, %v275_v45  ;;  %v490_v48 = vld [vmem:[%s2460_s7 + $0x18] sm:$0xff] }
 0x2d8   :  { %v476_v50 = vpop.f32.mrf.mxu1 }
 0x2d9   :  { %v477_v51 = vadd.f32 %v476_v50, %v271_v47  ;;  %1752 = vtanh.f32 %v475_v49  ;;  %v493_v47 = vld [vmem:[%s2460_s7 + $0x30] sm:$0xff]  ;;  %v494_v49 = vld [vmem:[%s2460_s7 + $0x38] sm:$0xff]  ;;  %v1551_v50 = vcombine.low %v497_v38, %v501_v39 }
 0x2da   :  { %v478_v53 = vpop.f32.mrf.mxu1  ;;  %v1545_v62 = vcombine.low %v490_v48, %v494_v49 }
 0x2db   :  { %v479_v54 = vadd.f32 %v478_v53, %v275_v45  ;;  %1754 = vtanh.f32 %v477_v51  ;;  %v1546_v53 = vcombine.high %v490_v48, %v494_v49 }
 0x2dd   :  { %1756 = vtanh.f32 %v479_v54  ;;  %v609_v54 = vld [vmem:[%s2460_s7 + $0x3d0] sm:$0xff] }
 0x2de   :  { %1758 = vtanh.f32 %v473_v52  ;;  %v1544_v52 = vcombine.high %v489_v46, %v493_v47 }
 0x2e6   :  { %v1753_v55 = vpop.eup %1752 }
 0x2e8   :  { %v1755_v56 = vpop.eup %1754 }
 0x2ea   :  { %v1757_v61 = vpop.eup %1756 }
 0x2eb   :  { %v1759_v1 = vpop.eup %1758  ;;  %v486_v2 = vpack.c.bf16 %v1757_v61, %v1753_v55  ;;  %v613_v55 = vld [vmem:[%s2460_s7 + $0x3f0] sm:$0xff]  ;;  %v1543_v61 = vcombine.low %v489_v46, %v493_v47 }
 0x2ec   :  { %v2222_v3 = vpack.c.bf16 %v1755_v56, %v1759_v1  ;;  %v610_v56 = vld [vmem:[%s2460_s7 + $0x3d8] sm:$0xff]  ;;  %v1664_v63 = vcombine.high %v609_v54, %v613_v55  ;;  %v601_v1 = vld [vmem:[%s2460_s7 + $0x390] sm:$0xff] }
 0x2ed   :  { %1329 = vmatprep.mubr.bf16.mxu0 %v486_v2  ;;  %1372 = vmatprep.mubr.bf16.mxu1 %v486_v2  ;;  %v1666_v0 = vcombine.high %v610_v56, %v614_v59  ;;  %v1665_v7 = vcombine.low %v610_v56, %v614_v59 }
 0x2ee   :  { %1330 = vmatmul.mubr.bf16.vlgmr.msra.gmra.mxu0 %v2222_v3  ;;  %1373 = vmatmul.mubr.bf16.vlgmr.msra.gmra.mxu1 %v2222_v3 }
 0x2ef   :  { %1384 = vmatpush1.bf16.msra.mxu0 %v1599_v41  ;;  %1427 = vmatpush1.bf16.msra.mxu1 %v1601_v42  ;;  %v502_v41 = vld [vmem:[%s2460_s7 + $0x78] sm:$0xff]  ;;  %v1559_v42 = vcombine.low %v505_v30, %v509_v31 }
 0x2f0   :  { %1415 = vmatprep.mubr.bf16.mxu0 %v486_v2  ;;  %1458 = vmatprep.mubr.bf16.mxu1 %v486_v2  ;;  %v1554_v45 = vcombine.high %v498_v40, %v502_v41  ;;  %v1553_v51 = vcombine.low %v498_v40, %v502_v41  ;;  %v605_v2 = vld [vmem:[%s2460_s7 + $0x3b0] sm:$0xff] }
 0x2f1   :  { %1385 = vmatprep.subr.bf16.mxu0 %v1592_v5  ;;  %1428 = vmatprep.subr.bf16.mxu1 %v1594_v6  ;;  %v606_v5 = vld [vmem:[%s2460_s7 + $0x3b8] sm:$0xff]  ;;  %v1663_v6 = vcombine.low %v609_v54, %v613_v55  ;;  %v1656_v8 = vcombine.high %v601_v1, %v605_v2  ;;  %v1655_v15 = vcombine.low %v601_v1, %v605_v2  ;;  %v631_v1 = vsub.s32 3, %v2051_v57 }
 0x2f2   :  { %v1658_v9 = vcombine.high %v602_v4, %v606_v5  ;;  %v1657_v16 = vcombine.low %v602_v4, %v606_v5 }
 0x2f3   :  { %1386 = vmatpush1.bf16.msra.mxu0 %v1591_v10  ;;  %1429 = vmatpush1.bf16.msra.mxu1 %v1593_v11  ;;  %v593_v10 = vld [vmem:[%s2460_s7 + $0x350] sm:$0xff] }
 0x2f4   :  { %1387 = vmatprep.subr.bf16.mxu0 %v1584_v12  ;;  %1430 = vmatprep.subr.bf16.mxu1 %v1586_v13  ;;  %v597_v11 = vld [vmem:[%s2460_s7 + $0x370] sm:$0xff]  ;;  %v594_v12 = vld [vmem:[%s2460_s7 + $0x358] sm:$0xff] }
 0x2f5   :  { %v598_v13 = vld [vmem:[%s2460_s7 + $0x378] sm:$0xff]  ;;  %v1648_v18 = vcombine.high %v593_v10, %v597_v11  ;;  %v1647_v25 = vcombine.low %v593_v10, %v597_v11 }
 0x2f6   :  { %v1650_v19 = vcombine.high %v594_v12, %v598_v13  ;;  %v1649_v26 = vcombine.low %v594_v12, %v598_v13 }
 0x2f7   :  { %1388 = vmatpush1.bf16.msra.mxu0 %v1583_v21  ;;  %1431 = vmatpush1.bf16.msra.mxu1 %v1585_v22  ;;  %v585_v21 = vld [vmem:[%s2460_s7 + $0x310] sm:$0xff] }
 0x2f8   :  { %1389 = vmatprep.subr.bf16.mxu0 %v1576_v23  ;;  %1432 = vmatprep.subr.bf16.mxu1 %v1578_v24  ;;  %v589_v22 = vld [vmem:[%s2460_s7 + $0x330] sm:$0xff]  ;;  %v586_v23 = vld [vmem:[%s2460_s7 + $0x318] sm:$0xff] }
 0x2f9   :  { %v590_v24 = vld [vmem:[%s2460_s7 + $0x338] sm:$0xff]  ;;  %v1640_v14 = vcombine.high %v585_v21, %v589_v22  ;;  %v1639_v30 = vcombine.low %v585_v21, %v589_v22 }
 0x2fa   :  { %v1642_v17 = vcombine.high %v586_v23, %v590_v24  ;;  %v1641_v31 = vcombine.low %v586_v23, %v590_v24  ;;  %v635_v23 = vsub.s32 4, %v2051_v57  ;;  %v643_v24 = vsub.s32 6, %v2051_v57 }
 0x2fb   :  { %1390 = vmatpush1.bf16.msra.mxu0 %v1575_v20  ;;  %1433 = vmatpush1.bf16.msra.mxu1 %v1577_v27  ;;  %v577_v20 = vld [vmem:[%s2460_s7 + $0x2d0] sm:$0xff] }
 0x2fc   :  { %1391 = vmatprep.subr.bf16.mxu0 %v1568_v28  ;;  %1434 = vmatprep.subr.bf16.mxu1 %v1570_v29  ;;  %v581_v27 = vld [vmem:[%s2460_s7 + $0x2f0] sm:$0xff]  ;;  %v578_v28 = vld [vmem:[%s2460_s7 + $0x2d8] sm:$0xff] }
 0x2fd   :  { %v582_v29 = vld [vmem:[%s2460_s7 + $0x2f8] sm:$0xff]  ;;  %v1632_v32 = vcombine.high %v577_v20, %v581_v27  ;;  %v1631_v38 = vcombine.low %v577_v20, %v581_v27 }
 0x2fe   :  { %v1634_v33 = vcombine.high %v578_v28, %v582_v29  ;;  %v1633_v39 = vcombine.low %v578_v28, %v582_v29 }
 0x2ff   :  { %1392 = vmatpush1.bf16.msra.mxu0 %v1567_v34  ;;  %1435 = vmatpush1.bf16.msra.mxu1 %v1569_v35  ;;  %v569_v34 = vld [vmem:[%s2460_s7 + $0x290] sm:$0xff] }
 0x300   :  { %1393 = vmatprep.subr.bf16.mxu0 %v1560_v36  ;;  %1436 = vmatprep.subr.bf16.mxu1 %v1562_v37  ;;  %v573_v35 = vld [vmem:[%s2460_s7 + $0x2b0] sm:$0xff]  ;;  %v570_v36 = vld [vmem:[%s2460_s7 + $0x298] sm:$0xff] }
 0x301   :  { %v574_v37 = vld [vmem:[%s2460_s7 + $0x2b8] sm:$0xff]  ;;  %v1624_v40 = vcombine.high %v569_v34, %v573_v35  ;;  %v1623_v46 = vcombine.low %v569_v34, %v573_v35 }
 0x302   :  { %v1626_v41 = vcombine.high %v570_v36, %v574_v37  ;;  %v1625_v47 = vcombine.low %v570_v36, %v574_v37 }
 0x303   :  { %1394 = vmatpush1.bf16.msra.mxu0 %v1559_v42  ;;  %1437 = vmatpush1.bf16.msra.mxu1 %v1561_v43  ;;  %v561_v42 = vld [vmem:[%s2460_s7 + $0x250] sm:$0xff] }
 0x304   :  { %1395 = vmatprep.subr.bf16.mxu0 %v1552_v44  ;;  %1438 = vmatprep.subr.bf16.mxu1 %v1554_v45  ;;  %v565_v43 = vld [vmem:[%s2460_s7 + $0x270] sm:$0xff]  ;;  %v562_v44 = vld [vmem:[%s2460_s7 + $0x258] sm:$0xff] }
 0x305   :  { %v566_v45 = vld [vmem:[%s2460_s7 + $0x278] sm:$0xff]  ;;  %v1616_v48 = vcombine.high %v561_v42, %v565_v43  ;;  %v1615_v54 = vcombine.low %v561_v42, %v565_v43 }
 0x306   :  { %v1618_v49 = vcombine.high %v562_v44, %v566_v45  ;;  %v1617_v55 = vcombine.low %v562_v44, %v566_v45 }
 0x307   :  { %1396 = vmatpush1.bf16.msra.mxu0 %v1551_v50  ;;  %1439 = vmatpush1.bf16.msra.mxu1 %v1553_v51  ;;  %v553_v50 = vld [vmem:[%s2460_s7 + $0x210] sm:$0xff] }
 0x308   :  { %1397 = vmatprep.subr.bf16.mxu0 %v1544_v52  ;;  %1440 = vmatprep.subr.bf16.mxu1 %v1546_v53  ;;  %v557_v51 = vld [vmem:[%s2460_s7 + $0x230] sm:$0xff]  ;;  %v554_v52 = vld [vmem:[%s2460_s7 + $0x218] sm:$0xff] }
 0x309   :  { %v558_v53 = vld [vmem:[%s2460_s7 + $0x238] sm:$0xff]  ;;  %v1608_v56 = vcombine.high %v553_v50, %v557_v51 }
 0x30a   :  { %v1610_v59 = vcombine.high %v554_v52, %v558_v53 }
 0x30b   :  { %1398 = vmatpush1.bf16.msra.mxu0 %v1543_v61  ;;  %1441 = vmatpush1.bf16.msra.mxu1 %v1545_v62  ;;  %v1607_v61 = vcombine.low %v553_v50, %v557_v51  ;;  %v1609_v62 = vcombine.low %v554_v52, %v558_v53 }
 0x30c   :  { %1399 = vmatprep.subr.bf16.mxu0 %v1664_v63  ;;  %1442 = vmatprep.subr.bf16.mxu1 %v1666_v0  ;;  %v627_v63 = vsub.s32 2, %v2051_v57  ;;  %v615_v0 = vld [vmem:[%s2463_s8] sm:$0xff] }
 0x30d   :  { %v620_v2 = vrot.slane %v615_v0, %v2060_v60  ;;  %v624_v5 = vrot.slane %v615_v0, %v2054_v58 }
 0x30e   :  { %v628_v4 = vrot.slane %v615_v0, %v627_v63 }
 0x30f   :  { %1400 = vmatpush2.bf16.msra.mxu0 %v1663_v6  ;;  %1443 = vmatpush2.bf16.msra.mxu1 %v1665_v7  ;;  %v632_v6 = vrot.slane %v615_v0, %v631_v1 }
 0x310   :  { %1401 = vmatprep.subr.bf16.mxu0 %v1656_v8  ;;  %1444 = vmatprep.subr.bf16.mxu1 %v1658_v9 }
 0x313   :  { %1402 = vmatpush2.bf16.msra.mxu0 %v1655_v15  ;;  %1445 = vmatpush2.bf16.msra.mxu1 %v1657_v16 }
 0x314   :  { %1403 = vmatprep.subr.bf16.mxu0 %v1648_v18  ;;  %1446 = vmatprep.subr.bf16.mxu1 %v1650_v19 }
 0x317   :  { %1404 = vmatpush2.bf16.msra.mxu0 %v1647_v25  ;;  %1447 = vmatpush2.bf16.msra.mxu1 %v1649_v26  ;;  %v639_v25 = vsub.s32 5, %v2051_v57  ;;  %v647_v26 = vsub.s32 7, %v2051_v57 }
 0x318   :  { %1405 = vmatprep.subr.bf16.mxu0 %v1640_v14  ;;  %1448 = vmatprep.subr.bf16.mxu1 %v1642_v17  ;;  %v636_v14 = vrot.slane %v615_v0, %v635_v23  ;;  %v644_v17 = vrot.slane %v615_v0, %v643_v24 }
 0x319   :  { %v640_v20 = vrot.slane %v615_v0, %v639_v25  ;;  %v648_v27 = vrot.slane %v615_v0, %v647_v26 }
 0x31b   :  { %1406 = vmatpush2.bf16.msra.mxu0 %v1639_v30  ;;  %1449 = vmatpush2.bf16.msra.mxu1 %v1641_v31 }
 0x31c   :  { %1407 = vmatprep.subr.bf16.mxu0 %v1632_v32  ;;  %1450 = vmatprep.subr.bf16.mxu1 %v1634_v33 }
 0x31f   :  { %1408 = vmatpush2.bf16.msra.mxu0 %v1631_v38  ;;  %1451 = vmatpush2.bf16.msra.mxu1 %v1633_v39 }
 0x320   :  { %1409 = vmatprep.subr.bf16.mxu0 %v1624_v40  ;;  %1452 = vmatprep.subr.bf16.mxu1 %v1626_v41 }
 0x323   :  { %1410 = vmatpush2.bf16.msra.mxu0 %v1623_v46  ;;  %1453 = vmatpush2.bf16.msra.mxu1 %v1625_v47 }
 0x324   :  { %1411 = vmatprep.subr.bf16.mxu0 %v1616_v48  ;;  %1454 = vmatprep.subr.bf16.mxu1 %v1618_v49 }
 0x327   :  { %1412 = vmatpush2.bf16.msra.mxu0 %v1615_v54  ;;  %1455 = vmatpush2.bf16.msra.mxu1 %v1617_v55 }
 0x328   :  { %1413 = vmatprep.subr.bf16.mxu0 %v1608_v56  ;;  %1456 = vmatprep.subr.bf16.mxu1 %v1610_v59 }
 0x32b   :  { %1414 = vmatpush2.bf16.msra.mxu0 %v1607_v61  ;;  %1457 = vmatpush2.bf16.msra.mxu1 %v1609_v62 }
 0x32e   :  { %1416 = vmatmul.mubr.bf16.vlgmr.msra.gmra.mxu0 %v2222_v3  ;;  %1459 = vmatmul.mubr.bf16.vlgmr.msra.gmra.mxu1 %v2222_v3 }
 0x3ae   :  { %v1331_v7 = vpop.f32.mrf.mxu0  ;;  %v1374_v8 = vpop.f32.mrf.mxu1 }
 0x3af   :  { %v1332_v9 = vadd.f32 %v1331_v7, %v620_v2  ;;  %v1375_v10 = vadd.f32 %v1374_v8, %v628_v4 }
 0x3b0   :  { %v1333_v11 = vpop.f32.mrf.mxu0  ;;  %v1376_v3 = vpop.f32.mrf.mxu1 }
 0x3b1   :  { %1469 = vst [vmem:[%s2464_s9] sm:$0xff] %v1332_v9  ;;  %1471 = vst [vmem:[%s2464_s9 + $0x10] sm:$0xff] %v1375_v10  ;;  %v1334_v12 = vadd.f32 %v1333_v11, %v624_v5  ;;  %v1377_v60 = vadd.f32 %v1376_v3, %v632_v6 }
 0x3b2   :  { %v1335_v13 = vpop.f32.mrf.mxu0  ;;  %v1378_v15 = vpop.f32.mrf.mxu1 }
 0x3b3   :  { %1470 = vst [vmem:[%s2464_s9 + $0x8] sm:$0xff] %v1334_v12  ;;  %1472 = vst [vmem:[%s2464_s9 + $0x18] sm:$0xff] %v1377_v60  ;;  %v1336_v58 = vadd.f32 %v1335_v13, %v620_v2  ;;  %v1379_v16 = vadd.f32 %v1378_v15, %v628_v4 }
 0x3b4   :  { %v1337_v18 = vpop.f32.mrf.mxu0  ;;  %v1380_v19 = vpop.f32.mrf.mxu1 }
 0x3b5   :  { %1477 = vst [vmem:[%s2464_s9 + $0x40] sm:$0xff] %v1336_v58  ;;  %1479 = vst [vmem:[%s2464_s9 + $0x50] sm:$0xff] %v1379_v16  ;;  %v1338_v21 = vadd.f32 %v1337_v18, %v624_v5  ;;  %v1381_v22 = vadd.f32 %v1380_v19, %v632_v6 }
 0x3b7   :  { %1478 = vst [vmem:[%s2464_s9 + $0x48] sm:$0xff] %v1338_v21  ;;  %1480 = vst [vmem:[%s2464_s9 + $0x58] sm:$0xff] %v1381_v22 }
 0x3ee   :  { %v1417_v28 = vpop.f32.mrf.mxu0  ;;  %v1460_v29 = vpop.f32.mrf.mxu1 }
 0x3ef   :  { %v1418_v30 = vadd.f32 %v1417_v28, %v636_v14  ;;  %v1461_v31 = vadd.f32 %v1460_v29, %v644_v17 }
 0x3f0   :  { %v1419_v32 = vpop.f32.mrf.mxu0  ;;  %v1462_v33 = vpop.f32.mrf.mxu1 }
 0x3f1   :  { %1473 = vst [vmem:[%s2464_s9 + $0x20] sm:$0xff] %v1418_v30  ;;  %1475 = vst [vmem:[%s2464_s9 + $0x30] sm:$0xff] %v1461_v31  ;;  %v1420_v34 = vadd.f32 %v1419_v32, %v640_v20  ;;  %v1463_v57 = vadd.f32 %v1462_v33, %v648_v27 }
 0x3f2   :  { %v1421_v35 = vpop.f32.mrf.mxu0  ;;  %v1464_v36 = vpop.f32.mrf.mxu1 }
 0x3f3   :  { %1474 = vst [vmem:[%s2464_s9 + $0x28] sm:$0xff] %v1420_v34  ;;  %1476 = vst [vmem:[%s2464_s9 + $0x38] sm:$0xff] %v1463_v57  ;;  %v1422_v37 = vadd.f32 %v1421_v35, %v636_v14  ;;  %v1465_v38 = vadd.f32 %v1464_v36, %v644_v17 }
 0x3f4   :  { %v1423_v39 = vpop.f32.mrf.mxu0  ;;  %v1466_v40 = vpop.f32.mrf.mxu1 }
 0x3f5   :  { %1481 = vst [vmem:[%s2464_s9 + $0x60] sm:$0xff] %v1422_v37  ;;  %1483 = vst [vmem:[%s2464_s9 + $0x70] sm:$0xff] %v1465_v38  ;;  %v1424_v41 = vadd.f32 %v1423_v39, %v640_v20  ;;  %v1467_v42 = vadd.f32 %v1466_v40, %v648_v27 }
 0x3f7   :  { %1482 = vst [vmem:[%s2464_s9 + $0x68] sm:$0xff] %v1424_v41  ;;  %1484 = vst [vmem:[%s2464_s9 + $0x78] sm:$0xff] %v1467_v42 }

</bundles_post_ra>
